<compile_context>
chip_gen: v6e
topology: v6e:2x2x1
jax: 0.10.0
libtpu: 0.0.40
codegen_flags: <defaults>
</compile_context>

<pallas_src>
import functools

import jax
import jax.numpy as jnp
from jax import lax
from jax.experimental import pallas as pl
from jax.experimental.pallas import tpu as pltpu

_SUBLANE = 8
_UNROLL = 4


# ----------------------------------------------------------------------------
# Fused Pallas kernel
# ----------------------------------------------------------------------------
def _birnn_kernel(
    # inputs
    x_ref,                                                    # (T*Bp, D) time-major, batch padded
    wih0F, wih0B, bih0F, bih0B, whh0F, whh0B, bhh0F, bhh0B,   # layer 0 (per direction)
    wih1Ff, wih1Fb, bih1F, whh1F, bhh1F,                      # layer 1 forward
    wih1Bf, wih1Bb, bih1B, bhh1B,                             # layer 1 backward (single step)
    wfcF, wfcB, bfc,                                          # FC head (split fwd/bwd halves)
    # output
    out_ref,                                                  # (Bp, O)
    # scratch
    gx0F_s, gx0B_s,                                           # (T*Bp, 3H) hoisted input gates, layer 0
    seqF_s, seqB_s,                                           # (T*Bp, H)  layer-0 outputs per direction
    gx1F_s,                                                   # (T*Bp, 3H) hoisted input gates, layer 1 fwd
    *, T, Bp, H,
):
    f32 = jnp.float32
    H2, H3 = 2 * H, 3 * H
    rows = T * Bp

    # PyTorch GRU cell math (gate order r, z, n; b_hn stays inside the r* term).
    def gru_gates(gx, gh, h):
        r = jax.nn.sigmoid(gx[:, 0:H] + gh[:, 0:H])
        z = jax.nn.sigmoid(gx[:, H:H2] + gh[:, H:H2])
        n = jnp.tanh(gx[:, H2:H3] + r * gh[:, H2:H3])
        return (1.0 - z) * n + z * h

    # Hoisted input projection: dst[r] = sum_i src_i[r] @ W_i + bias,
    # done in big row chunks (keeps register pressure bounded, fills MXU rows).
    def project(dst_ref, terms, bias_ref, chunk=256):
        for r0 in range(0, rows, chunk):
            r1 = min(r0 + chunk, rows)
            acc = bias_ref[...]
            for src_ref, w_ref in terms:
                acc = acc + jnp.dot(src_ref[r0:r1, :], w_ref[...],
                                    preferred_element_type=f32)
            dst_ref[r0:r1, :] = acc

    n_main = (T // _UNROLL) * _UNROLL
    zeros_h = jnp.zeros((Bp, H), f32)

    # ------------------------- layer 0 ---------------------------------------
    project(gx0F_s, [(x_ref, wih0F)], bih0F)
    project(gx0B_s, [(x_ref, wih0B)], bih0B)

    bhh0F_b = jnp.broadcast_to(bhh0F[...], (Bp, H3))          # hoisted broadcasts
    bhh0B_b = jnp.broadcast_to(bhh0B[...], (Bp, H3))

    def l0_step(t, hf, hb):
        if isinstance(t, int):                                # static tail steps
            rowf = t * Bp
            rowb = (T - 1 - t) * Bp
        else:
            rowf = pl.multiple_of(t * Bp, Bp)
            rowb = pl.multiple_of((T - 1 - t) * Bp, Bp)
        # Two independent small MXU pushes (no concat / cross-vreg slicing).
        ghf = jnp.dot(hf, whh0F[...], preferred_element_type=f32) + bhh0F_b
        ghb = jnp.dot(hb, whh0B[...], preferred_element_type=f32) + bhh0B_b
        hf = gru_gates(gx0F_s[pl.ds(rowf, Bp), :], ghf, hf)
        hb = gru_gates(gx0B_s[pl.ds(rowb, Bp), :], ghb, hb)
        seqF_s[pl.ds(rowf, Bp), :] = hf                       # output at time t
        seqB_s[pl.ds(rowb, Bp), :] = hb                       # output at time T-1-t
        return hf, hb

    def l0_block(i, carry):
        hf, hb = carry
        for u in range(_UNROLL):
            hf, hb = l0_step(i * _UNROLL + u, hf, hb)
        return (hf, hb)

    hf, hb = lax.fori_loop(0, T // _UNROLL, l0_block, (zeros_h, zeros_h))
    for t in range(n_main, T):                                # static remainder
        hf, hb = l0_step(t, hf, hb)

    # ------------------------- layer 1 forward -------------------------------
    # Hoisted input projection over the whole layer-0 output sequence
    # (split weights avoid concatenating seqF/seqB).
    project(gx1F_s, [(seqF_s, wih1Ff), (seqB_s, wih1Fb)], bih1F)

    bhh1F_b = jnp.broadcast_to(bhh1F[...], (Bp, H3))

    def l1_step(t, h):
        if isinstance(t, int):
            row = t * Bp
        else:
            row = pl.multiple_of(t * Bp, Bp)
        gh = jnp.dot(h, whh1F[...], preferred_element_type=f32) + bhh1F_b
        # no per-step output store: only the final hidden is consumed
        return gru_gates(gx1F_s[pl.ds(row, Bp), :], gh, h)

    def l1_block(i, h):
        for u in range(_UNROLL):
            h = l1_step(i * _UNROLL + u, h)
        return h

    h1f = lax.fori_loop(0, T // _UNROLL, l1_block, zeros_h)
    for t in range(n_main, T):
        h1f = l1_step(t, h1f)                                 # fwd hidden at t = T-1

    # ------------------------- layer 1 backward (single step) ----------------
    # Bidirectional out[:, -1, H:] == one GRU step on seq[T-1] from h0 == 0,
    # so h @ W_hh vanishes and only the hidden bias remains.
    xF_last = seqF_s[(T - 1) * Bp:T * Bp, :]
    xB_last = seqB_s[(T - 1) * Bp:T * Bp, :]
    gx_b = (jnp.dot(xF_last, wih1Bf[...], preferred_element_type=f32)
            + jnp.dot(xB_last, wih1Bb[...], preferred_element_type=f32)
            + bih1B[...])
    gh_b = jnp.broadcast_to(bhh1B[...], (Bp, H3))
    h1b = gru_gates(gx_b, gh_b, jnp.zeros((Bp, H), f32))

    # ------------------------- FC head ---------------------------------------
    out_ref[...] = (jnp.dot(h1f, wfcF[...], preferred_element_type=f32)
                    + jnp.dot(h1b, wfcB[...], preferred_element_type=f32)
                    + bfc[...])


def _vmem():
    return pl.BlockSpec(memory_space=pltpu.MemorySpace.VMEM)


_PARAM_ORDER = ("wih0F", "wih0B", "bih0F", "bih0B", "whh0F", "whh0B", "bhh0F", "bhh0B",
                "wih1Ff", "wih1Fb", "bih1F", "whh1F", "bhh1F",
                "wih1Bf", "wih1Bb", "bih1B", "bhh1B",
                "wfcF", "wfcB", "bfc")


# ----------------------------------------------------------------------------
# One-time parameter preparation (pre-transpose / pre-split, PyTorch layout in)
# ----------------------------------------------------------------------------
def prepare_params(params, hidden_size):
    H = hidden_size
    w_ihF0, w_hhF0, b_ihF0, b_hhF0 = params["gru_l0_d0"]
    w_ihB0, w_hhB0, b_ihB0, b_hhB0 = params["gru_l0_d1"]
    w_ihF1, w_hhF1, b_ihF1, b_hhF1 = params["gru_l1_d0"]
    w_ihB1, _w_hhB1, b_ihB1, b_hhB1 = params["gru_l1_d1"]   # W_hh_l1_bwd unused (h0 == 0)
    w_fc, b_fc = params["fc"]

    wih1F_T = jnp.transpose(w_ihF1)     # (2H, 3H)
    wih1B_T = jnp.transpose(w_ihB1)     # (2H, 3H)
    w_fc_T = jnp.transpose(w_fc)        # (2H, O)

    return dict(
        wih0F=jnp.transpose(w_ihF0), wih0B=jnp.transpose(w_ihB0),
        bih0F=b_ihF0[None, :], bih0B=b_ihB0[None, :],
        whh0F=jnp.transpose(w_hhF0), whh0B=jnp.transpose(w_hhB0),
        bhh0F=b_hhF0[None, :], bhh0B=b_hhB0[None, :],
        wih1Ff=wih1F_T[:H], wih1Fb=wih1F_T[H:],
        bih1F=b_ihF1[None, :],
        whh1F=jnp.transpose(w_hhF1), bhh1F=b_hhF1[None, :],
        wih1Bf=wih1B_T[:H], wih1Bb=wih1B_T[H:],
        bih1B=b_ihB1[None, :], bhh1B=b_hhB1[None, :],
        wfcF=w_fc_T[:H], wfcB=w_fc_T[H:],
        bfc=b_fc[None, :],
    )


# ----------------------------------------------------------------------------
# Forward wrapper (fused kernel supports the module's num_layers == 2)
# ----------------------------------------------------------------------------
@jax.jit
def birnn_forward(x, prep):
    B = x.shape[0]
    D = x.shape[-1]
    x = x.astype(jnp.float32).reshape(B, -1, D)         # input.view(B, -1, last_dim)
    T = x.shape[1]
    Bp = ((B + _SUBLANE - 1) // _SUBLANE) * _SUBLANE
    H = prep["whh1F"].shape[0]
    O = prep["bfc"].shape[-1]

    xt = jnp.transpose(x, (1, 0, 2))                     # (T, B, D) time-major
    xt = jnp.pad(xt, ((0, 0), (0, Bp - B), (0, 0)))      # pad batch to sublane multiple
    x2 = xt.reshape(T * Bp, D)                           # rows grouped by time step

    kernel = functools.partial(_birnn_kernel, T=T, Bp=Bp, H=H)
    args = (x2,) + tuple(prep[k] for k in _PARAM_ORDER)

    # Conservative VMEM budget: scratch + resident inputs, 2x margin, capped.
    scratch_bytes = T * Bp * (3 * H + 3 * H + H + H + 3 * H) * 4
    resident_bytes = T * Bp * D * 4 + Bp * O * 4 + 2 * 1024 * 1024
    vmem_limit = int(min(64 * 1024 * 1024,
                         max(32 * 1024 * 1024, 2 * (scratch_bytes + resident_bytes))))

    out = pl.pallas_call(
        kernel,
        out_shape=jax.ShapeDtypeStruct((Bp, O), jnp.float32),
        in_specs=[_vmem()] * len(args),
        out_specs=_vmem(),
        scratch_shapes=[
            pltpu.VMEM((T * Bp, 3 * H), jnp.float32),    # gx0F (hoisted input gates)
            pltpu.VMEM((T * Bp, 3 * H), jnp.float32),    # gx0B
            pltpu.VMEM((T * Bp, H), jnp.float32),        # layer-0 fwd outputs
            pltpu.VMEM((T * Bp, H), jnp.float32),        # layer-0 bwd outputs
            pltpu.VMEM((T * Bp, 3 * H), jnp.float32),    # gx1F
        ],
        compiler_params=pltpu.CompilerParams(vmem_limit_bytes=vmem_limit),
    )(*args)
    return out[:B]


# ----------------------------------------------------------------------------
# Pure-JAX reference (same math, lax.scan) for correctness check
# ----------------------------------------------------------------------------
def _gru_layer_ref(x_tbd, w_ih, w_hh, b_ih, b_hh):
    H = w_hh.shape[1]
    wih_t, whh_t = jnp.transpose(w_ih), jnp.transpose(w_hh)

    def step(h, x_t):
        gx = x_t @ wih_t + b_ih
        gh = h @ whh_t + b_hh
        r = jax.nn.sigmoid(gx[:, :H] + gh[:, :H])
        z = jax.nn.sigmoid(gx[:, H:2 * H] + gh[:, H:2 * H])
        n = jnp.tanh(gx[:, 2 * H:] + r * gh[:, 2 * H:])
        h_new = (1.0 - z) * n + z * h
        return h_new, h_new

    h0 = jnp.zeros((x_tbd.shape[1], H), jnp.float32)
    _, ys = lax.scan(step, h0, x_tbd)
    return ys


def birnn_forward_ref(x, params, num_layers=2):
    B, D = x.shape[0], x.shape[-1]
    x = x.astype(jnp.float32).reshape(B, -1, D)
    seq = jnp.transpose(x, (1, 0, 2))
    for layer in range(num_layers):
        outs = []
        for direction in range(2):
            w_ih, w_hh, b_ih, b_hh = params[f"gru_l{layer}_d{direction}"]
            inp = seq if direction == 0 else seq[::-1]
            out = _gru_layer_ref(inp, w_ih, w_hh, b_ih, b_hh)
            if direction == 1:
                out = out[::-1]
            outs.append(out)
        seq = jnp.concatenate(outs, axis=-1)
    w_fc, b_fc = params["fc"]
    return seq[-1] @ jnp.transpose(w_fc) + b_fc


# ----------------------------------------------------------------------------
# Deterministic parameter init (PyTorch-like uniform(-1/sqrt(H), 1/sqrt(H)))
# ----------------------------------------------------------------------------
def init_params(key, input_size, hidden_size, output_size, num_layers=2):
    params = {}
    bound = 1.0 / jnp.sqrt(hidden_size)
    for layer in range(num_layers):
        d_in = input_size if layer == 0 else 2 * hidden_size
        for direction in range(2):
            key, k1, k2, k3, k4 = jax.random.split(key, 5)
            w_ih = jax.random.uniform(k1, (3 * hidden_size, d_in), jnp.float32, -bound, bound)
            w_hh = jax.random.uniform(k2, (3 * hidden_size, hidden_size), jnp.float32, -bound, bound)
            b_ih = jax.random.uniform(k3, (3 * hidden_size,), jnp.float32, -bound, bound)
            b_hh = jax.random.uniform(k4, (3 * hidden_size,), jnp.float32, -bound, bound)
            params[f"gru_l{layer}_d{direction}"] = (w_ih, w_hh, b_ih, b_hh)
    key, k1, k2 = jax.random.split(key, 3)
    fc_bound = 1.0 / jnp.sqrt(2 * hidden_size)
    w_fc = jax.random.uniform(k1, (output_size, 2 * hidden_size), jnp.float32, -fc_bound, fc_bound)
    b_fc = jax.random.uniform(k2, (output_size,), jnp.float32, -fc_bound, fc_bound)
    params["fc"] = (w_fc, b_fc)
    return params


# ----------------------------------------------------------------------------
if __name__ == "__main__":
    key = jax.random.PRNGKey(0)
    key, kx, kp = jax.random.split(key, 3)

    # input (B, C, H, W) = (2, 4, 16, 16) -> view -> (B, T=64, input_size=16)
    B, C, Hsp, Wsp = 2, 4, 16, 16
    input_size = Wsp
    hidden_size = 32
    output_size = 10
    num_layers = 2

    x = jax.random.normal(kx, (B, C, Hsp, Wsp), dtype=jnp.float32)
    params = init_params(kp, input_size, hidden_size, output_size, num_layers)
    prep = prepare_params(params, hidden_size)            # one-time weight re-layout

    out = birnn_forward(x, prep)
    out = jax.block_until_ready(out)
    assert out.shape == (B, output_size), out.shape

    ref = birnn_forward_ref(x, params, num_layers=num_layers)
    assert jnp.allclose(out, ref, atol=1e-4, rtol=1e-4), (out, ref)

    print("KERNEL_OK")
</pallas_src>

<mosaic_0001>
module attributes {stable_mosaic.version = 11 : i64} {
  func.func @_birnn_kernel(%arg0: memref<512x16xf32, #tpu.memory_space<vmem>>, %arg1: memref<16x96xf32, #tpu.memory_space<vmem>>, %arg2: memref<16x96xf32, #tpu.memory_space<vmem>>, %arg3: memref<1x96xf32, #tpu.memory_space<vmem>>, %arg4: memref<1x96xf32, #tpu.memory_space<vmem>>, %arg5: memref<32x96xf32, #tpu.memory_space<vmem>>, %arg6: memref<32x96xf32, #tpu.memory_space<vmem>>, %arg7: memref<1x96xf32, #tpu.memory_space<vmem>>, %arg8: memref<1x96xf32, #tpu.memory_space<vmem>>, %arg9: memref<32x96xf32, #tpu.memory_space<vmem>>, %arg10: memref<32x96xf32, #tpu.memory_space<vmem>>, %arg11: memref<1x96xf32, #tpu.memory_space<vmem>>, %arg12: memref<32x96xf32, #tpu.memory_space<vmem>>, %arg13: memref<1x96xf32, #tpu.memory_space<vmem>>, %arg14: memref<32x96xf32, #tpu.memory_space<vmem>>, %arg15: memref<32x96xf32, #tpu.memory_space<vmem>>, %arg16: memref<1x96xf32, #tpu.memory_space<vmem>>, %arg17: memref<1x96xf32, #tpu.memory_space<vmem>>, %arg18: memref<32x10xf32, #tpu.memory_space<vmem>>, %arg19: memref<32x10xf32, #tpu.memory_space<vmem>>, %arg20: memref<1x10xf32, #tpu.memory_space<vmem>>, %arg21: memref<8x10xf32, #tpu.memory_space<vmem>>, %arg22: memref<512x96xf32, #tpu.memory_space<vmem>>, %arg23: memref<512x96xf32, #tpu.memory_space<vmem>>, %arg24: memref<512x32xf32, #tpu.memory_space<vmem>>, %arg25: memref<512x32xf32, #tpu.memory_space<vmem>>, %arg26: memref<512x96xf32, #tpu.memory_space<vmem>>) attributes {dimension_semantics = [], scalar_prefetch = 0 : i64, scratch_operands = 5 : i64, tpu.core_type = #tpu.core_type<tc>} {
    %cst = arith.constant 0.000000e+00 : f32
    %0 = vector.broadcast %cst : f32 to vector<8x32xf32>
    %c0 = arith.constant 0 : index
    %c0_0 = arith.constant 0 : index
    %1 = vector.load %arg3[%c0, %c0_0] : memref<1x96xf32, #tpu.memory_space<vmem>>, vector<1x96xf32>
    %c0_1 = arith.constant 0 : index
    %c0_2 = arith.constant 0 : index
    %2 = vector.load %arg0[%c0_1, %c0_2] : memref<512x16xf32, #tpu.memory_space<vmem>>, vector<256x16xf32>
    %c0_3 = arith.constant 0 : index
    %c0_4 = arith.constant 0 : index
    %3 = vector.load %arg1[%c0_3, %c0_4] : memref<16x96xf32, #tpu.memory_space<vmem>>, vector<16x96xf32>
    %cst_5 = arith.constant dense<0.000000e+00> : vector<256x96xf32>
    %4 = tpu.matmul %2, %3, %cst_5 {dimension_numbers = #tpu.dot_dimension_numbers<[1], [0], [0], [1], [0, 0, 1, 1], [], []>} : vector<256x16xf32>, vector<16x96xf32>, vector<256x96xf32> -> vector<256x96xf32>
    %5 = vector.broadcast %1 : vector<1x96xf32> to vector<256x96xf32>
    %6 = arith.addf %5, %4 : vector<256x96xf32>
    %c0_6 = arith.constant 0 : index
    %c0_7 = arith.constant 0 : index
    %7 = vector.load %arg22[%c0_6, %c0_7] : memref<512x96xf32, #tpu.memory_space<vmem>>, vector<256x96xf32>
    tpu.vector_store %arg22[%c0_6, %c0_7], %6 {strides = array<i32>} : memref<512x96xf32, #tpu.memory_space<vmem>>, vector<256x96xf32>,
    %c0_8 = arith.constant 0 : index
    %c0_9 = arith.constant 0 : index
    %8 = vector.load %arg3[%c0_8, %c0_9] : memref<1x96xf32, #tpu.memory_space<vmem>>, vector<1x96xf32>
    %c256 = arith.constant 256 : index
    %c0_10 = arith.constant 0 : index
    %9 = vector.load %arg0[%c256, %c0_10] : memref<512x16xf32, #tpu.memory_space<vmem>>, vector<256x16xf32>
    %c0_11 = arith.constant 0 : index
    %c0_12 = arith.constant 0 : index
    %10 = vector.load %arg1[%c0_11, %c0_12] : memref<16x96xf32, #tpu.memory_space<vmem>>, vector<16x96xf32>
    %cst_13 = arith.constant dense<0.000000e+00> : vector<256x96xf32>
    %11 = tpu.matmul %9, %10, %cst_13 {dimension_numbers = #tpu.dot_dimension_numbers<[1], [0], [0], [1], [0, 0, 1, 1], [], []>} : vector<256x16xf32>, vector<16x96xf32>, vector<256x96xf32> -> vector<256x96xf32>
    %12 = vector.broadcast %8 : vector<1x96xf32> to vector<256x96xf32>
    %13 = arith.addf %12, %11 : vector<256x96xf32>
    %c256_14 = arith.constant 256 : index
    %c0_15 = arith.constant 0 : index
    %14 = vector.load %arg22[%c256_14, %c0_15] : memref<512x96xf32, #tpu.memory_space<vmem>>, vector<256x96xf32>
    tpu.vector_store %arg22[%c256_14, %c0_15], %13 {strides = array<i32>} : memref<512x96xf32, #tpu.memory_space<vmem>>, vector<256x96xf32>,
    %c0_16 = arith.constant 0 : index
    %c0_17 = arith.constant 0 : index
    %15 = vector.load %arg4[%c0_16, %c0_17] : memref<1x96xf32, #tpu.memory_space<vmem>>, vector<1x96xf32>
    %c0_18 = arith.constant 0 : index
    %c0_19 = arith.constant 0 : index
    %16 = vector.load %arg0[%c0_18, %c0_19] : memref<512x16xf32, #tpu.memory_space<vmem>>, vector<256x16xf32>
    %c0_20 = arith.constant 0 : index
    %c0_21 = arith.constant 0 : index
    %17 = vector.load %arg2[%c0_20, %c0_21] : memref<16x96xf32, #tpu.memory_space<vmem>>, vector<16x96xf32>
    %cst_22 = arith.constant dense<0.000000e+00> : vector<256x96xf32>
    %18 = tpu.matmul %16, %17, %cst_22 {dimension_numbers = #tpu.dot_dimension_numbers<[1], [0], [0], [1], [0, 0, 1, 1], [], []>} : vector<256x16xf32>, vector<16x96xf32>, vector<256x96xf32> -> vector<256x96xf32>
    %19 = vector.broadcast %15 : vector<1x96xf32> to vector<256x96xf32>
    %20 = arith.addf %19, %18 : vector<256x96xf32>
    %c0_23 = arith.constant 0 : index
    %c0_24 = arith.constant 0 : index
    %21 = vector.load %arg23[%c0_23, %c0_24] : memref<512x96xf32, #tpu.memory_space<vmem>>, vector<256x96xf32>
    tpu.vector_store %arg23[%c0_23, %c0_24], %20 {strides = array<i32>} : memref<512x96xf32, #tpu.memory_space<vmem>>, vector<256x96xf32>,
    %c0_25 = arith.constant 0 : index
    %c0_26 = arith.constant 0 : index
    %22 = vector.load %arg4[%c0_25, %c0_26] : memref<1x96xf32, #tpu.memory_space<vmem>>, vector<1x96xf32>
    %c256_27 = arith.constant 256 : index
    %c0_28 = arith.constant 0 : index
    %23 = vector.load %arg0[%c256_27, %c0_28] : memref<512x16xf32, #tpu.memory_space<vmem>>, vector<256x16xf32>
    %c0_29 = arith.constant 0 : index
    %c0_30 = arith.constant 0 : index
    %24 = vector.load %arg2[%c0_29, %c0_30] : memref<16x96xf32, #tpu.memory_space<vmem>>, vector<16x96xf32>
    %cst_31 = arith.constant dense<0.000000e+00> : vector<256x96xf32>
    %25 = tpu.matmul %23, %24, %cst_31 {dimension_numbers = #tpu.dot_dimension_numbers<[1], [0], [0], [1], [0, 0, 1, 1], [], []>} : vector<256x16xf32>, vector<16x96xf32>, vector<256x96xf32> -> vector<256x96xf32>
    %26 = vector.broadcast %22 : vector<1x96xf32> to vector<256x96xf32>
    %27 = arith.addf %26, %25 : vector<256x96xf32>
    %c256_32 = arith.constant 256 : index
    %c0_33 = arith.constant 0 : index
    %28 = vector.load %arg23[%c256_32, %c0_33] : memref<512x96xf32, #tpu.memory_space<vmem>>, vector<256x96xf32>
    tpu.vector_store %arg23[%c256_32, %c0_33], %27 {strides = array<i32>} : memref<512x96xf32, #tpu.memory_space<vmem>>, vector<256x96xf32>,
    %c0_34 = arith.constant 0 : index
    %c0_35 = arith.constant 0 : index
    %29 = vector.load %arg7[%c0_34, %c0_35] : memref<1x96xf32, #tpu.memory_space<vmem>>, vector<1x96xf32>
    %30 = vector.shape_cast %29 : vector<1x96xf32> to vector<1x96xf32>
    %31 = vector.broadcast %30 : vector<1x96xf32> to vector<8x96xf32>
    %c0_36 = arith.constant 0 : index
    %c0_37 = arith.constant 0 : index
    %32 = vector.load %arg8[%c0_36, %c0_37] : memref<1x96xf32, #tpu.memory_space<vmem>>, vector<1x96xf32>
    %33 = vector.shape_cast %32 : vector<1x96xf32> to vector<1x96xf32>
    %34 = vector.broadcast %33 : vector<1x96xf32> to vector<8x96xf32>
    %c0_i32 = arith.constant 0 : i32
    %c16_i32 = arith.constant 16 : i32
    %35 = arith.addi %c0_i32, %c16_i32 : i32
    %c1_i32 = arith.constant 1 : i32
    %36:2 = scf.for %arg27 = %c0_i32 to %35 step %c1_i32 iter_args(%arg28 = %0, %arg29 = %0) -> (vector<8x32xf32>, vector<8x32xf32>)  : i32 {
      %c4_i32 = arith.constant 4 : i32
      %113 = arith.muli %arg27, %c4_i32 : i32
      %c0_i32_100 = arith.constant 0 : i32
      %114 = arith.addi %113, %c0_i32_100 : i32
      %c8_i32 = arith.constant 8 : i32
      %115 = arith.muli %114, %c8_i32 : i32
      %116 = tpu.assume_multiple %115, 8 : i32
      %c63_i32 = arith.constant 63 : i32
      %117 = arith.subi %c63_i32, %114 : i32
      %c8_i32_101 = arith.constant 8 : i32
      %118 = arith.muli %117, %c8_i32_101 : i32
      %119 = tpu.assume_multiple %118, 8 : i32
      %c0_102 = arith.constant 0 : index
      %c0_103 = arith.constant 0 : index
      %120 = vector.load %arg5[%c0_102, %c0_103] : memref<32x96xf32, #tpu.memory_space<vmem>>, vector<32x96xf32>
      %cst_104 = arith.constant dense<0.000000e+00> : vector<8x96xf32>
      %121 = tpu.matmul %arg28, %120, %cst_104 {dimension_numbers = #tpu.dot_dimension_numbers<[1], [0], [0], [1], [0, 0, 1, 1], [], []>} : vector<8x32xf32>, vector<32x96xf32>, vector<8x96xf32> -> vector<8x96xf32>
      %122 = arith.addf %121, %31 : vector<8x96xf32>
      %c0_105 = arith.constant 0 : index
      %c0_106 = arith.constant 0 : index
      %123 = vector.load %arg6[%c0_105, %c0_106] : memref<32x96xf32, #tpu.memory_space<vmem>>, vector<32x96xf32>
      %cst_107 = arith.constant dense<0.000000e+00> : vector<8x96xf32>
      %124 = tpu.matmul %arg29, %123, %cst_107 {dimension_numbers = #tpu.dot_dimension_numbers<[1], [0], [0], [1], [0, 0, 1, 1], [], []>} : vector<8x32xf32>, vector<32x96xf32>, vector<8x96xf32> -> vector<8x96xf32>
      %125 = arith.addf %124, %34 : vector<8x96xf32>
      %126 = arith.index_cast %116 : i32 to index
      %c0_108 = arith.constant 0 : index
      %127 = vector.load %arg22[%126, %c0_108] : memref<512x96xf32, #tpu.memory_space<vmem>>, vector<8x96xf32>
      %128 = vector.extract_strided_slice %127 {offsets = [0, 0], sizes = [8, 32], strides = [1, 1]} : vector<8x96xf32> to vector<8x32xf32>
      %129 = vector.extract_strided_slice %122 {offsets = [0, 0], sizes = [8, 32], strides = [1, 1]} : vector<8x96xf32> to vector<8x32xf32>
      %130 = arith.addf %128, %129 : vector<8x32xf32>
      %131 = arith.negf %130 : vector<8x32xf32>
      %132 = math.exp %131 : vector<8x32xf32>
      %cst_109 = arith.constant 1.000000e+00 : f32
      %133 = vector.broadcast %cst_109 : f32 to vector<8x32xf32>
      %134 = arith.addf %133, %132 : vector<8x32xf32>
      %135 = arith.divf %133, %134 : vector<8x32xf32>
      %136 = vector.extract_strided_slice %127 {offsets = [0, 32], sizes = [8, 32], strides = [1, 1]} : vector<8x96xf32> to vector<8x32xf32>
      %137 = vector.extract_strided_slice %122 {offsets = [0, 32], sizes = [8, 32], strides = [1, 1]} : vector<8x96xf32> to vector<8x32xf32>
      %138 = arith.addf %136, %137 : vector<8x32xf32>
      %139 = arith.negf %138 : vector<8x32xf32>
      %140 = math.exp %139 : vector<8x32xf32>
      %cst_110 = arith.constant 1.000000e+00 : f32
      %141 = vector.broadcast %cst_110 : f32 to vector<8x32xf32>
      %142 = arith.addf %141, %140 : vector<8x32xf32>
      %143 = arith.divf %141, %142 : vector<8x32xf32>
      %144 = vector.extract_strided_slice %127 {offsets = [0, 64], sizes = [8, 32], strides = [1, 1]} : vector<8x96xf32> to vector<8x32xf32>
      %145 = vector.extract_strided_slice %122 {offsets = [0, 64], sizes = [8, 32], strides = [1, 1]} : vector<8x96xf32> to vector<8x32xf32>
      %146 = arith.mulf %135, %145 : vector<8x32xf32>
      %147 = arith.addf %144, %146 : vector<8x32xf32>
      %148 = math.tanh %147 : vector<8x32xf32>
      %cst_111 = arith.constant 1.000000e+00 : f32
      %149 = vector.broadcast %cst_111 : f32 to vector<8x32xf32>
      %150 = arith.subf %149, %143 : vector<8x32xf32>
      %151 = arith.mulf %150, %148 : vector<8x32xf32>
      %152 = arith.mulf %143, %arg28 : vector<8x32xf32>
      %153 = arith.addf %151, %152 : vector<8x32xf32>
      %154 = arith.index_cast %119 : i32 to index
      %c0_112 = arith.constant 0 : index
      %155 = vector.load %arg23[%154, %c0_112] : memref<512x96xf32, #tpu.memory_space<vmem>>, vector<8x96xf32>
      %156 = vector.extract_strided_slice %155 {offsets = [0, 0], sizes = [8, 32], strides = [1, 1]} : vector<8x96xf32> to vector<8x32xf32>
      %157 = vector.extract_strided_slice %125 {offsets = [0, 0], sizes = [8, 32], strides = [1, 1]} : vector<8x96xf32> to vector<8x32xf32>
      %158 = arith.addf %156, %157 : vector<8x32xf32>
      %159 = arith.negf %158 : vector<8x32xf32>
      %160 = math.exp %159 : vector<8x32xf32>
      %cst_113 = arith.constant 1.000000e+00 : f32
      %161 = vector.broadcast %cst_113 : f32 to vector<8x32xf32>
      %162 = arith.addf %161, %160 : vector<8x32xf32>
      %163 = arith.divf %161, %162 : vector<8x32xf32>
      %164 = vector.extract_strided_slice %155 {offsets = [0, 32], sizes = [8, 32], strides = [1, 1]} : vector<8x96xf32> to vector<8x32xf32>
      %165 = vector.extract_strided_slice %125 {offsets = [0, 32], sizes = [8, 32], strides = [1, 1]} : vector<8x96xf32> to vector<8x32xf32>
      %166 = arith.addf %164, %165 : vector<8x32xf32>
      %167 = arith.negf %166 : vector<8x32xf32>
      %168 = math.exp %167 : vector<8x32xf32>
      %cst_114 = arith.constant 1.000000e+00 : f32
      %169 = vector.broadcast %cst_114 : f32 to vector<8x32xf32>
      %170 = arith.addf %169, %168 : vector<8x32xf32>
      %171 = arith.divf %169, %170 : vector<8x32xf32>
      %172 = vector.extract_strided_slice %155 {offsets = [0, 64], sizes = [8, 32], strides = [1, 1]} : vector<8x96xf32> to vector<8x32xf32>
      %173 = vector.extract_strided_slice %125 {offsets = [0, 64], sizes = [8, 32], strides = [1, 1]} : vector<8x96xf32> to vector<8x32xf32>
      %174 = arith.mulf %163, %173 : vector<8x32xf32>
      %175 = arith.addf %172, %174 : vector<8x32xf32>
      %176 = math.tanh %175 : vector<8x32xf32>
      %cst_115 = arith.constant 1.000000e+00 : f32
      %177 = vector.broadcast %cst_115 : f32 to vector<8x32xf32>
      %178 = arith.subf %177, %171 : vector<8x32xf32>
      %179 = arith.mulf %178, %176 : vector<8x32xf32>
      %180 = arith.mulf %171, %arg29 : vector<8x32xf32>
      %181 = arith.addf %179, %180 : vector<8x32xf32>
      %182 = arith.index_cast %116 : i32 to index
      %c0_116 = arith.constant 0 : index
      %183 = vector.load %arg24[%182, %c0_116] : memref<512x32xf32, #tpu.memory_space<vmem>>, vector<8x32xf32>
      tpu.vector_store %arg24[%182, %c0_116], %153 {strides = array<i32>} : memref<512x32xf32, #tpu.memory_space<vmem>>, vector<8x32xf32>,
      %184 = arith.index_cast %119 : i32 to index
      %c0_117 = arith.constant 0 : index
      %185 = vector.load %arg25[%184, %c0_117] : memref<512x32xf32, #tpu.memory_space<vmem>>, vector<8x32xf32>
      tpu.vector_store %arg25[%184, %c0_117], %181 {strides = array<i32>} : memref<512x32xf32, #tpu.memory_space<vmem>>, vector<8x32xf32>,
      %c4_i32_118 = arith.constant 4 : i32
      %186 = arith.muli %arg27, %c4_i32_118 : i32
      %c1_i32_119 = arith.constant 1 : i32
      %187 = arith.addi %186, %c1_i32_119 : i32
      %c8_i32_120 = arith.constant 8 : i32
      %188 = arith.muli %187, %c8_i32_120 : i32
      %189 = tpu.assume_multiple %188, 8 : i32
      %c63_i32_121 = arith.constant 63 : i32
      %190 = arith.subi %c63_i32_121, %187 : i32
      %c8_i32_122 = arith.constant 8 : i32
      %191 = arith.muli %190, %c8_i32_122 : i32
      %192 = tpu.assume_multiple %191, 8 : i32
      %c0_123 = arith.constant 0 : index
      %c0_124 = arith.constant 0 : index
      %193 = vector.load %arg5[%c0_123, %c0_124] : memref<32x96xf32, #tpu.memory_space<vmem>>, vector<32x96xf32>
      %cst_125 = arith.constant dense<0.000000e+00> : vector<8x96xf32>
      %194 = tpu.matmul %153, %193, %cst_125 {dimension_numbers = #tpu.dot_dimension_numbers<[1], [0], [0], [1], [0, 0, 1, 1], [], []>} : vector<8x32xf32>, vector<32x96xf32>, vector<8x96xf32> -> vector<8x96xf32>
      %195 = arith.addf %194, %31 : vector<8x96xf32>
      %c0_126 = arith.constant 0 : index
      %c0_127 = arith.constant 0 : index
      %196 = vector.load %arg6[%c0_126, %c0_127] : memref<32x96xf32, #tpu.memory_space<vmem>>, vector<32x96xf32>
      %cst_128 = arith.constant dense<0.000000e+00> : vector<8x96xf32>
      %197 = tpu.matmul %181, %196, %cst_128 {dimension_numbers = #tpu.dot_dimension_numbers<[1], [0], [0], [1], [0, 0, 1, 1], [], []>} : vector<8x32xf32>, vector<32x96xf32>, vector<8x96xf32> -> vector<8x96xf32>
      %198 = arith.addf %197, %34 : vector<8x96xf32>
      %199 = arith.index_cast %189 : i32 to index
      %c0_129 = arith.constant 0 : index
      %200 = vector.load %arg22[%199, %c0_129] : memref<512x96xf32, #tpu.memory_space<vmem>>, vector<8x96xf32>
      %201 = vector.extract_strided_slice %200 {offsets = [0, 0], sizes = [8, 32], strides = [1, 1]} : vector<8x96xf32> to vector<8x32xf32>
      %202 = vector.extract_strided_slice %195 {offsets = [0, 0], sizes = [8, 32], strides = [1, 1]} : vector<8x96xf32> to vector<8x32xf32>
      %203 = arith.addf %201, %202 : vector<8x32xf32>
      %204 = arith.negf %203 : vector<8x32xf32>
      %205 = math.exp %204 : vector<8x32xf32>
      %cst_130 = arith.constant 1.000000e+00 : f32
      %206 = vector.broadcast %cst_130 : f32 to vector<8x32xf32>
      %207 = arith.addf %206, %205 : vector<8x32xf32>
      %208 = arith.divf %206, %207 : vector<8x32xf32>
      %209 = vector.extract_strided_slice %200 {offsets = [0, 32], sizes = [8, 32], strides = [1, 1]} : vector<8x96xf32> to vector<8x32xf32>
      %210 = vector.extract_strided_slice %195 {offsets = [0, 32], sizes = [8, 32], strides = [1, 1]} : vector<8x96xf32> to vector<8x32xf32>
      %211 = arith.addf %209, %210 : vector<8x32xf32>
      %212 = arith.negf %211 : vector<8x32xf32>
      %213 = math.exp %212 : vector<8x32xf32>
      %cst_131 = arith.constant 1.000000e+00 : f32
      %214 = vector.broadcast %cst_131 : f32 to vector<8x32xf32>
      %215 = arith.addf %214, %213 : vector<8x32xf32>
      %216 = arith.divf %214, %215 : vector<8x32xf32>
      %217 = vector.extract_strided_slice %200 {offsets = [0, 64], sizes = [8, 32], strides = [1, 1]} : vector<8x96xf32> to vector<8x32xf32>
      %218 = vector.extract_strided_slice %195 {offsets = [0, 64], sizes = [8, 32], strides = [1, 1]} : vector<8x96xf32> to vector<8x32xf32>
      %219 = arith.mulf %208, %218 : vector<8x32xf32>
      %220 = arith.addf %217, %219 : vector<8x32xf32>
      %221 = math.tanh %220 : vector<8x32xf32>
      %cst_132 = arith.constant 1.000000e+00 : f32
      %222 = vector.broadcast %cst_132 : f32 to vector<8x32xf32>
      %223 = arith.subf %222, %216 : vector<8x32xf32>
      %224 = arith.mulf %223, %221 : vector<8x32xf32>
      %225 = arith.mulf %216, %153 : vector<8x32xf32>
      %226 = arith.addf %224, %225 : vector<8x32xf32>
      %227 = arith.index_cast %192 : i32 to index
      %c0_133 = arith.constant 0 : index
      %228 = vector.load %arg23[%227, %c0_133] : memref<512x96xf32, #tpu.memory_space<vmem>>, vector<8x96xf32>
      %229 = vector.extract_strided_slice %228 {offsets = [0, 0], sizes = [8, 32], strides = [1, 1]} : vector<8x96xf32> to vector<8x32xf32>
      %230 = vector.extract_strided_slice %198 {offsets = [0, 0], sizes = [8, 32], strides = [1, 1]} : vector<8x96xf32> to vector<8x32xf32>
      %231 = arith.addf %229, %230 : vector<8x32xf32>
      %232 = arith.negf %231 : vector<8x32xf32>
      %233 = math.exp %232 : vector<8x32xf32>
      %cst_134 = arith.constant 1.000000e+00 : f32
      %234 = vector.broadcast %cst_134 : f32 to vector<8x32xf32>
      %235 = arith.addf %234, %233 : vector<8x32xf32>
      %236 = arith.divf %234, %235 : vector<8x32xf32>
      %237 = vector.extract_strided_slice %228 {offsets = [0, 32], sizes = [8, 32], strides = [1, 1]} : vector<8x96xf32> to vector<8x32xf32>
      %238 = vector.extract_strided_slice %198 {offsets = [0, 32], sizes = [8, 32], strides = [1, 1]} : vector<8x96xf32> to vector<8x32xf32>
      %239 = arith.addf %237, %238 : vector<8x32xf32>
      %240 = arith.negf %239 : vector<8x32xf32>
      %241 = math.exp %240 : vector<8x32xf32>
      %cst_135 = arith.constant 1.000000e+00 : f32
      %242 = vector.broadcast %cst_135 : f32 to vector<8x32xf32>
      %243 = arith.addf %242, %241 : vector<8x32xf32>
      %244 = arith.divf %242, %243 : vector<8x32xf32>
      %245 = vector.extract_strided_slice %228 {offsets = [0, 64], sizes = [8, 32], strides = [1, 1]} : vector<8x96xf32> to vector<8x32xf32>
      %246 = vector.extract_strided_slice %198 {offsets = [0, 64], sizes = [8, 32], strides = [1, 1]} : vector<8x96xf32> to vector<8x32xf32>
      %247 = arith.mulf %236, %246 : vector<8x32xf32>
      %248 = arith.addf %245, %247 : vector<8x32xf32>
      %249 = math.tanh %248 : vector<8x32xf32>
      %cst_136 = arith.constant 1.000000e+00 : f32
      %250 = vector.broadcast %cst_136 : f32 to vector<8x32xf32>
      %251 = arith.subf %250, %244 : vector<8x32xf32>
      %252 = arith.mulf %251, %249 : vector<8x32xf32>
      %253 = arith.mulf %244, %181 : vector<8x32xf32>
      %254 = arith.addf %252, %253 : vector<8x32xf32>
      %255 = arith.index_cast %189 : i32 to index
      %c0_137 = arith.constant 0 : index
      %256 = vector.load %arg24[%255, %c0_137] : memref<512x32xf32, #tpu.memory_space<vmem>>, vector<8x32xf32>
      tpu.vector_store %arg24[%255, %c0_137], %226 {strides = array<i32>} : memref<512x32xf32, #tpu.memory_space<vmem>>, vector<8x32xf32>,
      %257 = arith.index_cast %192 : i32 to index
      %c0_138 = arith.constant 0 : index
      %258 = vector.load %arg25[%257, %c0_138] : memref<512x32xf32, #tpu.memory_space<vmem>>, vector<8x32xf32>
      tpu.vector_store %arg25[%257, %c0_138], %254 {strides = array<i32>} : memref<512x32xf32, #tpu.memory_space<vmem>>, vector<8x32xf32>,
      %c4_i32_139 = arith.constant 4 : i32
      %259 = arith.muli %arg27, %c4_i32_139 : i32
      %c2_i32 = arith.constant 2 : i32
      %260 = arith.addi %259, %c2_i32 : i32
      %c8_i32_140 = arith.constant 8 : i32
      %261 = arith.muli %260, %c8_i32_140 : i32
      %262 = tpu.assume_multiple %261, 8 : i32
      %c63_i32_141 = arith.constant 63 : i32
      %263 = arith.subi %c63_i32_141, %260 : i32
      %c8_i32_142 = arith.constant 8 : i32
      %264 = arith.muli %263, %c8_i32_142 : i32
      %265 = tpu.assume_multiple %264, 8 : i32
      %c0_143 = arith.constant 0 : index
      %c0_144 = arith.constant 0 : index
      %266 = vector.load %arg5[%c0_143, %c0_144] : memref<32x96xf32, #tpu.memory_space<vmem>>, vector<32x96xf32>
      %cst_145 = arith.constant dense<0.000000e+00> : vector<8x96xf32>
      %267 = tpu.matmul %226, %266, %cst_145 {dimension_numbers = #tpu.dot_dimension_numbers<[1], [0], [0], [1], [0, 0, 1, 1], [], []>} : vector<8x32xf32>, vector<32x96xf32>, vector<8x96xf32> -> vector<8x96xf32>
      %268 = arith.addf %267, %31 : vector<8x96xf32>
      %c0_146 = arith.constant 0 : index
      %c0_147 = arith.constant 0 : index
      %269 = vector.load %arg6[%c0_146, %c0_147] : memref<32x96xf32, #tpu.memory_space<vmem>>, vector<32x96xf32>
      %cst_148 = arith.constant dense<0.000000e+00> : vector<8x96xf32>
      %270 = tpu.matmul %254, %269, %cst_148 {dimension_numbers = #tpu.dot_dimension_numbers<[1], [0], [0], [1], [0, 0, 1, 1], [], []>} : vector<8x32xf32>, vector<32x96xf32>, vector<8x96xf32> -> vector<8x96xf32>
      %271 = arith.addf %270, %34 : vector<8x96xf32>
      %272 = arith.index_cast %262 : i32 to index
      %c0_149 = arith.constant 0 : index
      %273 = vector.load %arg22[%272, %c0_149] : memref<512x96xf32, #tpu.memory_space<vmem>>, vector<8x96xf32>
      %274 = vector.extract_strided_slice %273 {offsets = [0, 0], sizes = [8, 32], strides = [1, 1]} : vector<8x96xf32> to vector<8x32xf32>
      %275 = vector.extract_strided_slice %268 {offsets = [0, 0], sizes = [8, 32], strides = [1, 1]} : vector<8x96xf32> to vector<8x32xf32>
      %276 = arith.addf %274, %275 : vector<8x32xf32>
      %277 = arith.negf %276 : vector<8x32xf32>
      %278 = math.exp %277 : vector<8x32xf32>
      %cst_150 = arith.constant 1.000000e+00 : f32
      %279 = vector.broadcast %cst_150 : f32 to vector<8x32xf32>
      %280 = arith.addf %279, %278 : vector<8x32xf32>
      %281 = arith.divf %279, %280 : vector<8x32xf32>
      %282 = vector.extract_strided_slice %273 {offsets = [0, 32], sizes = [8, 32], strides = [1, 1]} : vector<8x96xf32> to vector<8x32xf32>
      %283 = vector.extract_strided_slice %268 {offsets = [0, 32], sizes = [8, 32], strides = [1, 1]} : vector<8x96xf32> to vector<8x32xf32>
      %284 = arith.addf %282, %283 : vector<8x32xf32>
      %285 = arith.negf %284 : vector<8x32xf32>
      %286 = math.exp %285 : vector<8x32xf32>
      %cst_151 = arith.constant 1.000000e+00 : f32
      %287 = vector.broadcast %cst_151 : f32 to vector<8x32xf32>
      %288 = arith.addf %287, %286 : vector<8x32xf32>
      %289 = arith.divf %287, %288 : vector<8x32xf32>
      %290 = vector.extract_strided_slice %273 {offsets = [0, 64], sizes = [8, 32], strides = [1, 1]} : vector<8x96xf32> to vector<8x32xf32>
      %291 = vector.extract_strided_slice %268 {offsets = [0, 64], sizes = [8, 32], strides = [1, 1]} : vector<8x96xf32> to vector<8x32xf32>
      %292 = arith.mulf %281, %291 : vector<8x32xf32>
      %293 = arith.addf %290, %292 : vector<8x32xf32>
      %294 = math.tanh %293 : vector<8x32xf32>
      %cst_152 = arith.constant 1.000000e+00 : f32
      %295 = vector.broadcast %cst_152 : f32 to vector<8x32xf32>
      %296 = arith.subf %295, %289 : vector<8x32xf32>
      %297 = arith.mulf %296, %294 : vector<8x32xf32>
      %298 = arith.mulf %289, %226 : vector<8x32xf32>
      %299 = arith.addf %297, %298 : vector<8x32xf32>
      %300 = arith.index_cast %265 : i32 to index
      %c0_153 = arith.constant 0 : index
      %301 = vector.load %arg23[%300, %c0_153] : memref<512x96xf32, #tpu.memory_space<vmem>>, vector<8x96xf32>
      %302 = vector.extract_strided_slice %301 {offsets = [0, 0], sizes = [8, 32], strides = [1, 1]} : vector<8x96xf32> to vector<8x32xf32>
      %303 = vector.extract_strided_slice %271 {offsets = [0, 0], sizes = [8, 32], strides = [1, 1]} : vector<8x96xf32> to vector<8x32xf32>
      %304 = arith.addf %302, %303 : vector<8x32xf32>
      %305 = arith.negf %304 : vector<8x32xf32>
      %306 = math.exp %305 : vector<8x32xf32>
      %cst_154 = arith.constant 1.000000e+00 : f32
      %307 = vector.broadcast %cst_154 : f32 to vector<8x32xf32>
      %308 = arith.addf %307, %306 : vector<8x32xf32>
      %309 = arith.divf %307, %308 : vector<8x32xf32>
      %310 = vector.extract_strided_slice %301 {offsets = [0, 32], sizes = [8, 32], strides = [1, 1]} : vector<8x96xf32> to vector<8x32xf32>
      %311 = vector.extract_strided_slice %271 {offsets = [0, 32], sizes = [8, 32], strides = [1, 1]} : vector<8x96xf32> to vector<8x32xf32>
      %312 = arith.addf %310, %311 : vector<8x32xf32>
      %313 = arith.negf %312 : vector<8x32xf32>
      %314 = math.exp %313 : vector<8x32xf32>
      %cst_155 = arith.constant 1.000000e+00 : f32
      %315 = vector.broadcast %cst_155 : f32 to vector<8x32xf32>
      %316 = arith.addf %315, %314 : vector<8x32xf32>
      %317 = arith.divf %315, %316 : vector<8x32xf32>
      %318 = vector.extract_strided_slice %301 {offsets = [0, 64], sizes = [8, 32], strides = [1, 1]} : vector<8x96xf32> to vector<8x32xf32>
      %319 = vector.extract_strided_slice %271 {offsets = [0, 64], sizes = [8, 32], strides = [1, 1]} : vector<8x96xf32> to vector<8x32xf32>
      %320 = arith.mulf %309, %319 : vector<8x32xf32>
      %321 = arith.addf %318, %320 : vector<8x32xf32>
      %322 = math.tanh %321 : vector<8x32xf32>
      %cst_156 = arith.constant 1.000000e+00 : f32
      %323 = vector.broadcast %cst_156 : f32 to vector<8x32xf32>
      %324 = arith.subf %323, %317 : vector<8x32xf32>
      %325 = arith.mulf %324, %322 : vector<8x32xf32>
      %326 = arith.mulf %317, %254 : vector<8x32xf32>
      %327 = arith.addf %325, %326 : vector<8x32xf32>
      %328 = arith.index_cast %262 : i32 to index
      %c0_157 = arith.constant 0 : index
      %329 = vector.load %arg24[%328, %c0_157] : memref<512x32xf32, #tpu.memory_space<vmem>>, vector<8x32xf32>
      tpu.vector_store %arg24[%328, %c0_157], %299 {strides = array<i32>} : memref<512x32xf32, #tpu.memory_space<vmem>>, vector<8x32xf32>,
      %330 = arith.index_cast %265 : i32 to index
      %c0_158 = arith.constant 0 : index
      %331 = vector.load %arg25[%330, %c0_158] : memref<512x32xf32, #tpu.memory_space<vmem>>, vector<8x32xf32>
      tpu.vector_store %arg25[%330, %c0_158], %327 {strides = array<i32>} : memref<512x32xf32, #tpu.memory_space<vmem>>, vector<8x32xf32>,
      %c4_i32_159 = arith.constant 4 : i32
      %332 = arith.muli %arg27, %c4_i32_159 : i32
      %c3_i32 = arith.constant 3 : i32
      %333 = arith.addi %332, %c3_i32 : i32
      %c8_i32_160 = arith.constant 8 : i32
      %334 = arith.muli %333, %c8_i32_160 : i32
      %335 = tpu.assume_multiple %334, 8 : i32
      %c63_i32_161 = arith.constant 63 : i32
      %336 = arith.subi %c63_i32_161, %333 : i32
      %c8_i32_162 = arith.constant 8 : i32
      %337 = arith.muli %336, %c8_i32_162 : i32
      %338 = tpu.assume_multiple %337, 8 : i32
      %c0_163 = arith.constant 0 : index
      %c0_164 = arith.constant 0 : index
      %339 = vector.load %arg5[%c0_163, %c0_164] : memref<32x96xf32, #tpu.memory_space<vmem>>, vector<32x96xf32>
      %cst_165 = arith.constant dense<0.000000e+00> : vector<8x96xf32>
      %340 = tpu.matmul %299, %339, %cst_165 {dimension_numbers = #tpu.dot_dimension_numbers<[1], [0], [0], [1], [0, 0, 1, 1], [], []>} : vector<8x32xf32>, vector<32x96xf32>, vector<8x96xf32> -> vector<8x96xf32>
      %341 = arith.addf %340, %31 : vector<8x96xf32>
      %c0_166 = arith.constant 0 : index
      %c0_167 = arith.constant 0 : index
      %342 = vector.load %arg6[%c0_166, %c0_167] : memref<32x96xf32, #tpu.memory_space<vmem>>, vector<32x96xf32>
      %cst_168 = arith.constant dense<0.000000e+00> : vector<8x96xf32>
      %343 = tpu.matmul %327, %342, %cst_168 {dimension_numbers = #tpu.dot_dimension_numbers<[1], [0], [0], [1], [0, 0, 1, 1], [], []>} : vector<8x32xf32>, vector<32x96xf32>, vector<8x96xf32> -> vector<8x96xf32>
      %344 = arith.addf %343, %34 : vector<8x96xf32>
      %345 = arith.index_cast %335 : i32 to index
      %c0_169 = arith.constant 0 : index
      %346 = vector.load %arg22[%345, %c0_169] : memref<512x96xf32, #tpu.memory_space<vmem>>, vector<8x96xf32>
      %347 = vector.extract_strided_slice %346 {offsets = [0, 0], sizes = [8, 32], strides = [1, 1]} : vector<8x96xf32> to vector<8x32xf32>
      %348 = vector.extract_strided_slice %341 {offsets = [0, 0], sizes = [8, 32], strides = [1, 1]} : vector<8x96xf32> to vector<8x32xf32>
      %349 = arith.addf %347, %348 : vector<8x32xf32>
      %350 = arith.negf %349 : vector<8x32xf32>
      %351 = math.exp %350 : vector<8x32xf32>
      %cst_170 = arith.constant 1.000000e+00 : f32
      %352 = vector.broadcast %cst_170 : f32 to vector<8x32xf32>
      %353 = arith.addf %352, %351 : vector<8x32xf32>
      %354 = arith.divf %352, %353 : vector<8x32xf32>
      %355 = vector.extract_strided_slice %346 {offsets = [0, 32], sizes = [8, 32], strides = [1, 1]} : vector<8x96xf32> to vector<8x32xf32>
      %356 = vector.extract_strided_slice %341 {offsets = [0, 32], sizes = [8, 32], strides = [1, 1]} : vector<8x96xf32> to vector<8x32xf32>
      %357 = arith.addf %355, %356 : vector<8x32xf32>
      %358 = arith.negf %357 : vector<8x32xf32>
      %359 = math.exp %358 : vector<8x32xf32>
      %cst_171 = arith.constant 1.000000e+00 : f32
      %360 = vector.broadcast %cst_171 : f32 to vector<8x32xf32>
      %361 = arith.addf %360, %359 : vector<8x32xf32>
      %362 = arith.divf %360, %361 : vector<8x32xf32>
      %363 = vector.extract_strided_slice %346 {offsets = [0, 64], sizes = [8, 32], strides = [1, 1]} : vector<8x96xf32> to vector<8x32xf32>
      %364 = vector.extract_strided_slice %341 {offsets = [0, 64], sizes = [8, 32], strides = [1, 1]} : vector<8x96xf32> to vector<8x32xf32>
      %365 = arith.mulf %354, %364 : vector<8x32xf32>
      %366 = arith.addf %363, %365 : vector<8x32xf32>
      %367 = math.tanh %366 : vector<8x32xf32>
      %cst_172 = arith.constant 1.000000e+00 : f32
      %368 = vector.broadcast %cst_172 : f32 to vector<8x32xf32>
      %369 = arith.subf %368, %362 : vector<8x32xf32>
      %370 = arith.mulf %369, %367 : vector<8x32xf32>
      %371 = arith.mulf %362, %299 : vector<8x32xf32>
      %372 = arith.addf %370, %371 : vector<8x32xf32>
      %373 = arith.index_cast %338 : i32 to index
      %c0_173 = arith.constant 0 : index
      %374 = vector.load %arg23[%373, %c0_173] : memref<512x96xf32, #tpu.memory_space<vmem>>, vector<8x96xf32>
      %375 = vector.extract_strided_slice %374 {offsets = [0, 0], sizes = [8, 32], strides = [1, 1]} : vector<8x96xf32> to vector<8x32xf32>
      %376 = vector.extract_strided_slice %344 {offsets = [0, 0], sizes = [8, 32], strides = [1, 1]} : vector<8x96xf32> to vector<8x32xf32>
      %377 = arith.addf %375, %376 : vector<8x32xf32>
      %378 = arith.negf %377 : vector<8x32xf32>
      %379 = math.exp %378 : vector<8x32xf32>
      %cst_174 = arith.constant 1.000000e+00 : f32
      %380 = vector.broadcast %cst_174 : f32 to vector<8x32xf32>
      %381 = arith.addf %380, %379 : vector<8x32xf32>
      %382 = arith.divf %380, %381 : vector<8x32xf32>
      %383 = vector.extract_strided_slice %374 {offsets = [0, 32], sizes = [8, 32], strides = [1, 1]} : vector<8x96xf32> to vector<8x32xf32>
      %384 = vector.extract_strided_slice %344 {offsets = [0, 32], sizes = [8, 32], strides = [1, 1]} : vector<8x96xf32> to vector<8x32xf32>
      %385 = arith.addf %383, %384 : vector<8x32xf32>
      %386 = arith.negf %385 : vector<8x32xf32>
      %387 = math.exp %386 : vector<8x32xf32>
      %cst_175 = arith.constant 1.000000e+00 : f32
      %388 = vector.broadcast %cst_175 : f32 to vector<8x32xf32>
      %389 = arith.addf %388, %387 : vector<8x32xf32>
      %390 = arith.divf %388, %389 : vector<8x32xf32>
      %391 = vector.extract_strided_slice %374 {offsets = [0, 64], sizes = [8, 32], strides = [1, 1]} : vector<8x96xf32> to vector<8x32xf32>
      %392 = vector.extract_strided_slice %344 {offsets = [0, 64], sizes = [8, 32], strides = [1, 1]} : vector<8x96xf32> to vector<8x32xf32>
      %393 = arith.mulf %382, %392 : vector<8x32xf32>
      %394 = arith.addf %391, %393 : vector<8x32xf32>
      %395 = math.tanh %394 : vector<8x32xf32>
      %cst_176 = arith.constant 1.000000e+00 : f32
      %396 = vector.broadcast %cst_176 : f32 to vector<8x32xf32>
      %397 = arith.subf %396, %390 : vector<8x32xf32>
      %398 = arith.mulf %397, %395 : vector<8x32xf32>
      %399 = arith.mulf %390, %327 : vector<8x32xf32>
      %400 = arith.addf %398, %399 : vector<8x32xf32>
      %401 = arith.index_cast %335 : i32 to index
      %c0_177 = arith.constant 0 : index
      %402 = vector.load %arg24[%401, %c0_177] : memref<512x32xf32, #tpu.memory_space<vmem>>, vector<8x32xf32>
      tpu.vector_store %arg24[%401, %c0_177], %372 {strides = array<i32>} : memref<512x32xf32, #tpu.memory_space<vmem>>, vector<8x32xf32>,
      %403 = arith.index_cast %338 : i32 to index
      %c0_178 = arith.constant 0 : index
      %404 = vector.load %arg25[%403, %c0_178] : memref<512x32xf32, #tpu.memory_space<vmem>>, vector<8x32xf32>
      tpu.vector_store %arg25[%403, %c0_178], %400 {strides = array<i32>} : memref<512x32xf32, #tpu.memory_space<vmem>>, vector<8x32xf32>,
      scf.yield %372, %400 : vector<8x32xf32>, vector<8x32xf32>
    }
    %c16_i32_38 = arith.constant 16 : i32
    %c0_39 = arith.constant 0 : index
    %c0_40 = arith.constant 0 : index
    %37 = vector.load %arg11[%c0_39, %c0_40] : memref<1x96xf32, #tpu.memory_space<vmem>>, vector<1x96xf32>
    %c0_41 = arith.constant 0 : index
    %c0_42 = arith.constant 0 : index
    %38 = vector.load %arg24[%c0_41, %c0_42] : memref<512x32xf32, #tpu.memory_space<vmem>>, vector<256x32xf32>
    %c0_43 = arith.constant 0 : index
    %c0_44 = arith.constant 0 : index
    %39 = vector.load %arg9[%c0_43, %c0_44] : memref<32x96xf32, #tpu.memory_space<vmem>>, vector<32x96xf32>
    %cst_45 = arith.constant dense<0.000000e+00> : vector<256x96xf32>
    %40 = tpu.matmul %38, %39, %cst_45 {dimension_numbers = #tpu.dot_dimension_numbers<[1], [0], [0], [1], [0, 0, 1, 1], [], []>} : vector<256x32xf32>, vector<32x96xf32>, vector<256x96xf32> -> vector<256x96xf32>
    %41 = vector.broadcast %37 : vector<1x96xf32> to vector<256x96xf32>
    %42 = arith.addf %41, %40 : vector<256x96xf32>
    %c0_46 = arith.constant 0 : index
    %c0_47 = arith.constant 0 : index
    %43 = vector.load %arg25[%c0_46, %c0_47] : memref<512x32xf32, #tpu.memory_space<vmem>>, vector<256x32xf32>
    %c0_48 = arith.constant 0 : index
    %c0_49 = arith.constant 0 : index
    %44 = vector.load %arg10[%c0_48, %c0_49] : memref<32x96xf32, #tpu.memory_space<vmem>>, vector<32x96xf32>
    %cst_50 = arith.constant dense<0.000000e+00> : vector<256x96xf32>
    %45 = tpu.matmul %43, %44, %cst_50 {dimension_numbers = #tpu.dot_dimension_numbers<[1], [0], [0], [1], [0, 0, 1, 1], [], []>} : vector<256x32xf32>, vector<32x96xf32>, vector<256x96xf32> -> vector<256x96xf32>
    %46 = arith.addf %42, %45 : vector<256x96xf32>
    %c0_51 = arith.constant 0 : index
    %c0_52 = arith.constant 0 : index
    %47 = vector.load %arg26[%c0_51, %c0_52] : memref<512x96xf32, #tpu.memory_space<vmem>>, vector<256x96xf32>
    tpu.vector_store %arg26[%c0_51, %c0_52], %46 {strides = array<i32>} : memref<512x96xf32, #tpu.memory_space<vmem>>, vector<256x96xf32>,
    %c0_53 = arith.constant 0 : index
    %c0_54 = arith.constant 0 : index
    %48 = vector.load %arg11[%c0_53, %c0_54] : memref<1x96xf32, #tpu.memory_space<vmem>>, vector<1x96xf32>
    %c256_55 = arith.constant 256 : index
    %c0_56 = arith.constant 0 : index
    %49 = vector.load %arg24[%c256_55, %c0_56] : memref<512x32xf32, #tpu.memory_space<vmem>>, vector<256x32xf32>
    %c0_57 = arith.constant 0 : index
    %c0_58 = arith.constant 0 : index
    %50 = vector.load %arg9[%c0_57, %c0_58] : memref<32x96xf32, #tpu.memory_space<vmem>>, vector<32x96xf32>
    %cst_59 = arith.constant dense<0.000000e+00> : vector<256x96xf32>
    %51 = tpu.matmul %49, %50, %cst_59 {dimension_numbers = #tpu.dot_dimension_numbers<[1], [0], [0], [1], [0, 0, 1, 1], [], []>} : vector<256x32xf32>, vector<32x96xf32>, vector<256x96xf32> -> vector<256x96xf32>
    %52 = vector.broadcast %48 : vector<1x96xf32> to vector<256x96xf32>
    %53 = arith.addf %52, %51 : vector<256x96xf32>
    %c256_60 = arith.constant 256 : index
    %c0_61 = arith.constant 0 : index
    %54 = vector.load %arg25[%c256_60, %c0_61] : memref<512x32xf32, #tpu.memory_space<vmem>>, vector<256x32xf32>
    %c0_62 = arith.constant 0 : index
    %c0_63 = arith.constant 0 : index
    %55 = vector.load %arg10[%c0_62, %c0_63] : memref<32x96xf32, #tpu.memory_space<vmem>>, vector<32x96xf32>
    %cst_64 = arith.constant dense<0.000000e+00> : vector<256x96xf32>
    %56 = tpu.matmul %54, %55, %cst_64 {dimension_numbers = #tpu.dot_dimension_numbers<[1], [0], [0], [1], [0, 0, 1, 1], [], []>} : vector<256x32xf32>, vector<32x96xf32>, vector<256x96xf32> -> vector<256x96xf32>
    %57 = arith.addf %53, %56 : vector<256x96xf32>
    %c256_65 = arith.constant 256 : index
    %c0_66 = arith.constant 0 : index
    %58 = vector.load %arg26[%c256_65, %c0_66] : memref<512x96xf32, #tpu.memory_space<vmem>>, vector<256x96xf32>
    tpu.vector_store %arg26[%c256_65, %c0_66], %57 {strides = array<i32>} : memref<512x96xf32, #tpu.memory_space<vmem>>, vector<256x96xf32>,
    %c0_67 = arith.constant 0 : index
    %c0_68 = arith.constant 0 : index
    %59 = vector.load %arg13[%c0_67, %c0_68] : memref<1x96xf32, #tpu.memory_space<vmem>>, vector<1x96xf32>
    %60 = vector.shape_cast %59 : vector<1x96xf32> to vector<1x96xf32>
    %61 = vector.broadcast %60 : vector<1x96xf32> to vector<8x96xf32>
    %c0_i32_69 = arith.constant 0 : i32
    %c16_i32_70 = arith.constant 16 : i32
    %62 = arith.addi %c0_i32_69, %c16_i32_70 : i32
    %c1_i32_71 = arith.constant 1 : i32
    %63 = scf.for %arg27 = %c0_i32_69 to %62 step %c1_i32_71 iter_args(%arg28 = %0) -> (vector<8x32xf32>)  : i32 {
      %c4_i32 = arith.constant 4 : i32
      %113 = arith.muli %arg27, %c4_i32 : i32
      %c0_i32_100 = arith.constant 0 : i32
      %114 = arith.addi %113, %c0_i32_100 : i32
      %c8_i32 = arith.constant 8 : i32
      %115 = arith.muli %114, %c8_i32 : i32
      %116 = tpu.assume_multiple %115, 8 : i32
      %c0_101 = arith.constant 0 : index
      %c0_102 = arith.constant 0 : index
      %117 = vector.load %arg12[%c0_101, %c0_102] : memref<32x96xf32, #tpu.memory_space<vmem>>, vector<32x96xf32>
      %cst_103 = arith.constant dense<0.000000e+00> : vector<8x96xf32>
      %118 = tpu.matmul %arg28, %117, %cst_103 {dimension_numbers = #tpu.dot_dimension_numbers<[1], [0], [0], [1], [0, 0, 1, 1], [], []>} : vector<8x32xf32>, vector<32x96xf32>, vector<8x96xf32> -> vector<8x96xf32>
      %119 = arith.addf %118, %61 : vector<8x96xf32>
      %120 = arith.index_cast %116 : i32 to index
      %c0_104 = arith.constant 0 : index
      %121 = vector.load %arg26[%120, %c0_104] : memref<512x96xf32, #tpu.memory_space<vmem>>, vector<8x96xf32>
      %122 = vector.extract_strided_slice %121 {offsets = [0, 0], sizes = [8, 32], strides = [1, 1]} : vector<8x96xf32> to vector<8x32xf32>
      %123 = vector.extract_strided_slice %119 {offsets = [0, 0], sizes = [8, 32], strides = [1, 1]} : vector<8x96xf32> to vector<8x32xf32>
      %124 = arith.addf %122, %123 : vector<8x32xf32>
      %125 = arith.negf %124 : vector<8x32xf32>
      %126 = math.exp %125 : vector<8x32xf32>
      %cst_105 = arith.constant 1.000000e+00 : f32
      %127 = vector.broadcast %cst_105 : f32 to vector<8x32xf32>
      %128 = arith.addf %127, %126 : vector<8x32xf32>
      %129 = arith.divf %127, %128 : vector<8x32xf32>
      %130 = vector.extract_strided_slice %121 {offsets = [0, 32], sizes = [8, 32], strides = [1, 1]} : vector<8x96xf32> to vector<8x32xf32>
      %131 = vector.extract_strided_slice %119 {offsets = [0, 32], sizes = [8, 32], strides = [1, 1]} : vector<8x96xf32> to vector<8x32xf32>
      %132 = arith.addf %130, %131 : vector<8x32xf32>
      %133 = arith.negf %132 : vector<8x32xf32>
      %134 = math.exp %133 : vector<8x32xf32>
      %cst_106 = arith.constant 1.000000e+00 : f32
      %135 = vector.broadcast %cst_106 : f32 to vector<8x32xf32>
      %136 = arith.addf %135, %134 : vector<8x32xf32>
      %137 = arith.divf %135, %136 : vector<8x32xf32>
      %138 = vector.extract_strided_slice %121 {offsets = [0, 64], sizes = [8, 32], strides = [1, 1]} : vector<8x96xf32> to vector<8x32xf32>
      %139 = vector.extract_strided_slice %119 {offsets = [0, 64], sizes = [8, 32], strides = [1, 1]} : vector<8x96xf32> to vector<8x32xf32>
      %140 = arith.mulf %129, %139 : vector<8x32xf32>
      %141 = arith.addf %138, %140 : vector<8x32xf32>
      %142 = math.tanh %141 : vector<8x32xf32>
      %cst_107 = arith.constant 1.000000e+00 : f32
      %143 = vector.broadcast %cst_107 : f32 to vector<8x32xf32>
      %144 = arith.subf %143, %137 : vector<8x32xf32>
      %145 = arith.mulf %144, %142 : vector<8x32xf32>
      %146 = arith.mulf %137, %arg28 : vector<8x32xf32>
      %147 = arith.addf %145, %146 : vector<8x32xf32>
      %c4_i32_108 = arith.constant 4 : i32
      %148 = arith.muli %arg27, %c4_i32_108 : i32
      %c1_i32_109 = arith.constant 1 : i32
      %149 = arith.addi %148, %c1_i32_109 : i32
      %c8_i32_110 = arith.constant 8 : i32
      %150 = arith.muli %149, %c8_i32_110 : i32
      %151 = tpu.assume_multiple %150, 8 : i32
      %c0_111 = arith.constant 0 : index
      %c0_112 = arith.constant 0 : index
      %152 = vector.load %arg12[%c0_111, %c0_112] : memref<32x96xf32, #tpu.memory_space<vmem>>, vector<32x96xf32>
      %cst_113 = arith.constant dense<0.000000e+00> : vector<8x96xf32>
      %153 = tpu.matmul %147, %152, %cst_113 {dimension_numbers = #tpu.dot_dimension_numbers<[1], [0], [0], [1], [0, 0, 1, 1], [], []>} : vector<8x32xf32>, vector<32x96xf32>, vector<8x96xf32> -> vector<8x96xf32>
      %154 = arith.addf %153, %61 : vector<8x96xf32>
      %155 = arith.index_cast %151 : i32 to index
      %c0_114 = arith.constant 0 : index
      %156 = vector.load %arg26[%155, %c0_114] : memref<512x96xf32, #tpu.memory_space<vmem>>, vector<8x96xf32>
      %157 = vector.extract_strided_slice %156 {offsets = [0, 0], sizes = [8, 32], strides = [1, 1]} : vector<8x96xf32> to vector<8x32xf32>
      %158 = vector.extract_strided_slice %154 {offsets = [0, 0], sizes = [8, 32], strides = [1, 1]} : vector<8x96xf32> to vector<8x32xf32>
      %159 = arith.addf %157, %158 : vector<8x32xf32>
      %160 = arith.negf %159 : vector<8x32xf32>
      %161 = math.exp %160 : vector<8x32xf32>
      %cst_115 = arith.constant 1.000000e+00 : f32
      %162 = vector.broadcast %cst_115 : f32 to vector<8x32xf32>
      %163 = arith.addf %162, %161 : vector<8x32xf32>
      %164 = arith.divf %162, %163 : vector<8x32xf32>
      %165 = vector.extract_strided_slice %156 {offsets = [0, 32], sizes = [8, 32], strides = [1, 1]} : vector<8x96xf32> to vector<8x32xf32>
      %166 = vector.extract_strided_slice %154 {offsets = [0, 32], sizes = [8, 32], strides = [1, 1]} : vector<8x96xf32> to vector<8x32xf32>
      %167 = arith.addf %165, %166 : vector<8x32xf32>
      %168 = arith.negf %167 : vector<8x32xf32>
      %169 = math.exp %168 : vector<8x32xf32>
      %cst_116 = arith.constant 1.000000e+00 : f32
      %170 = vector.broadcast %cst_116 : f32 to vector<8x32xf32>
      %171 = arith.addf %170, %169 : vector<8x32xf32>
      %172 = arith.divf %170, %171 : vector<8x32xf32>
      %173 = vector.extract_strided_slice %156 {offsets = [0, 64], sizes = [8, 32], strides = [1, 1]} : vector<8x96xf32> to vector<8x32xf32>
      %174 = vector.extract_strided_slice %154 {offsets = [0, 64], sizes = [8, 32], strides = [1, 1]} : vector<8x96xf32> to vector<8x32xf32>
      %175 = arith.mulf %164, %174 : vector<8x32xf32>
      %176 = arith.addf %173, %175 : vector<8x32xf32>
      %177 = math.tanh %176 : vector<8x32xf32>
      %cst_117 = arith.constant 1.000000e+00 : f32
      %178 = vector.broadcast %cst_117 : f32 to vector<8x32xf32>
      %179 = arith.subf %178, %172 : vector<8x32xf32>
      %180 = arith.mulf %179, %177 : vector<8x32xf32>
      %181 = arith.mulf %172, %147 : vector<8x32xf32>
      %182 = arith.addf %180, %181 : vector<8x32xf32>
      %c4_i32_118 = arith.constant 4 : i32
      %183 = arith.muli %arg27, %c4_i32_118 : i32
      %c2_i32 = arith.constant 2 : i32
      %184 = arith.addi %183, %c2_i32 : i32
      %c8_i32_119 = arith.constant 8 : i32
      %185 = arith.muli %184, %c8_i32_119 : i32
      %186 = tpu.assume_multiple %185, 8 : i32
      %c0_120 = arith.constant 0 : index
      %c0_121 = arith.constant 0 : index
      %187 = vector.load %arg12[%c0_120, %c0_121] : memref<32x96xf32, #tpu.memory_space<vmem>>, vector<32x96xf32>
      %cst_122 = arith.constant dense<0.000000e+00> : vector<8x96xf32>
      %188 = tpu.matmul %182, %187, %cst_122 {dimension_numbers = #tpu.dot_dimension_numbers<[1], [0], [0], [1], [0, 0, 1, 1], [], []>} : vector<8x32xf32>, vector<32x96xf32>, vector<8x96xf32> -> vector<8x96xf32>
      %189 = arith.addf %188, %61 : vector<8x96xf32>
      %190 = arith.index_cast %186 : i32 to index
      %c0_123 = arith.constant 0 : index
      %191 = vector.load %arg26[%190, %c0_123] : memref<512x96xf32, #tpu.memory_space<vmem>>, vector<8x96xf32>
      %192 = vector.extract_strided_slice %191 {offsets = [0, 0], sizes = [8, 32], strides = [1, 1]} : vector<8x96xf32> to vector<8x32xf32>
      %193 = vector.extract_strided_slice %189 {offsets = [0, 0], sizes = [8, 32], strides = [1, 1]} : vector<8x96xf32> to vector<8x32xf32>
      %194 = arith.addf %192, %193 : vector<8x32xf32>
      %195 = arith.negf %194 : vector<8x32xf32>
      %196 = math.exp %195 : vector<8x32xf32>
      %cst_124 = arith.constant 1.000000e+00 : f32
      %197 = vector.broadcast %cst_124 : f32 to vector<8x32xf32>
      %198 = arith.addf %197, %196 : vector<8x32xf32>
      %199 = arith.divf %197, %198 : vector<8x32xf32>
      %200 = vector.extract_strided_slice %191 {offsets = [0, 32], sizes = [8, 32], strides = [1, 1]} : vector<8x96xf32> to vector<8x32xf32>
      %201 = vector.extract_strided_slice %189 {offsets = [0, 32], sizes = [8, 32], strides = [1, 1]} : vector<8x96xf32> to vector<8x32xf32>
      %202 = arith.addf %200, %201 : vector<8x32xf32>
      %203 = arith.negf %202 : vector<8x32xf32>
      %204 = math.exp %203 : vector<8x32xf32>
      %cst_125 = arith.constant 1.000000e+00 : f32
      %205 = vector.broadcast %cst_125 : f32 to vector<8x32xf32>
      %206 = arith.addf %205, %204 : vector<8x32xf32>
      %207 = arith.divf %205, %206 : vector<8x32xf32>
      %208 = vector.extract_strided_slice %191 {offsets = [0, 64], sizes = [8, 32], strides = [1, 1]} : vector<8x96xf32> to vector<8x32xf32>
      %209 = vector.extract_strided_slice %189 {offsets = [0, 64], sizes = [8, 32], strides = [1, 1]} : vector<8x96xf32> to vector<8x32xf32>
      %210 = arith.mulf %199, %209 : vector<8x32xf32>
      %211 = arith.addf %208, %210 : vector<8x32xf32>
      %212 = math.tanh %211 : vector<8x32xf32>
      %cst_126 = arith.constant 1.000000e+00 : f32
      %213 = vector.broadcast %cst_126 : f32 to vector<8x32xf32>
      %214 = arith.subf %213, %207 : vector<8x32xf32>
      %215 = arith.mulf %214, %212 : vector<8x32xf32>
      %216 = arith.mulf %207, %182 : vector<8x32xf32>
      %217 = arith.addf %215, %216 : vector<8x32xf32>
      %c4_i32_127 = arith.constant 4 : i32
      %218 = arith.muli %arg27, %c4_i32_127 : i32
      %c3_i32 = arith.constant 3 : i32
      %219 = arith.addi %218, %c3_i32 : i32
      %c8_i32_128 = arith.constant 8 : i32
      %220 = arith.muli %219, %c8_i32_128 : i32
      %221 = tpu.assume_multiple %220, 8 : i32
      %c0_129 = arith.constant 0 : index
      %c0_130 = arith.constant 0 : index
      %222 = vector.load %arg12[%c0_129, %c0_130] : memref<32x96xf32, #tpu.memory_space<vmem>>, vector<32x96xf32>
      %cst_131 = arith.constant dense<0.000000e+00> : vector<8x96xf32>
      %223 = tpu.matmul %217, %222, %cst_131 {dimension_numbers = #tpu.dot_dimension_numbers<[1], [0], [0], [1], [0, 0, 1, 1], [], []>} : vector<8x32xf32>, vector<32x96xf32>, vector<8x96xf32> -> vector<8x96xf32>
      %224 = arith.addf %223, %61 : vector<8x96xf32>
      %225 = arith.index_cast %221 : i32 to index
      %c0_132 = arith.constant 0 : index
      %226 = vector.load %arg26[%225, %c0_132] : memref<512x96xf32, #tpu.memory_space<vmem>>, vector<8x96xf32>
      %227 = vector.extract_strided_slice %226 {offsets = [0, 0], sizes = [8, 32], strides = [1, 1]} : vector<8x96xf32> to vector<8x32xf32>
      %228 = vector.extract_strided_slice %224 {offsets = [0, 0], sizes = [8, 32], strides = [1, 1]} : vector<8x96xf32> to vector<8x32xf32>
      %229 = arith.addf %227, %228 : vector<8x32xf32>
      %230 = arith.negf %229 : vector<8x32xf32>
      %231 = math.exp %230 : vector<8x32xf32>
      %cst_133 = arith.constant 1.000000e+00 : f32
      %232 = vector.broadcast %cst_133 : f32 to vector<8x32xf32>
      %233 = arith.addf %232, %231 : vector<8x32xf32>
      %234 = arith.divf %232, %233 : vector<8x32xf32>
      %235 = vector.extract_strided_slice %226 {offsets = [0, 32], sizes = [8, 32], strides = [1, 1]} : vector<8x96xf32> to vector<8x32xf32>
      %236 = vector.extract_strided_slice %224 {offsets = [0, 32], sizes = [8, 32], strides = [1, 1]} : vector<8x96xf32> to vector<8x32xf32>
      %237 = arith.addf %235, %236 : vector<8x32xf32>
      %238 = arith.negf %237 : vector<8x32xf32>
      %239 = math.exp %238 : vector<8x32xf32>
      %cst_134 = arith.constant 1.000000e+00 : f32
      %240 = vector.broadcast %cst_134 : f32 to vector<8x32xf32>
      %241 = arith.addf %240, %239 : vector<8x32xf32>
      %242 = arith.divf %240, %241 : vector<8x32xf32>
      %243 = vector.extract_strided_slice %226 {offsets = [0, 64], sizes = [8, 32], strides = [1, 1]} : vector<8x96xf32> to vector<8x32xf32>
      %244 = vector.extract_strided_slice %224 {offsets = [0, 64], sizes = [8, 32], strides = [1, 1]} : vector<8x96xf32> to vector<8x32xf32>
      %245 = arith.mulf %234, %244 : vector<8x32xf32>
      %246 = arith.addf %243, %245 : vector<8x32xf32>
      %247 = math.tanh %246 : vector<8x32xf32>
      %cst_135 = arith.constant 1.000000e+00 : f32
      %248 = vector.broadcast %cst_135 : f32 to vector<8x32xf32>
      %249 = arith.subf %248, %242 : vector<8x32xf32>
      %250 = arith.mulf %249, %247 : vector<8x32xf32>
      %251 = arith.mulf %242, %217 : vector<8x32xf32>
      %252 = arith.addf %250, %251 : vector<8x32xf32>
      scf.yield %252 : vector<8x32xf32>
    }
    %c16_i32_72 = arith.constant 16 : i32
    %c504 = arith.constant 504 : index
    %c0_73 = arith.constant 0 : index
    %64 = vector.load %arg24[%c504, %c0_73] : memref<512x32xf32, #tpu.memory_space<vmem>>, vector<8x32xf32>
    %c504_74 = arith.constant 504 : index
    %c0_75 = arith.constant 0 : index
    %65 = vector.load %arg25[%c504_74, %c0_75] : memref<512x32xf32, #tpu.memory_space<vmem>>, vector<8x32xf32>
    %c0_76 = arith.constant 0 : index
    %c0_77 = arith.constant 0 : index
    %66 = vector.load %arg14[%c0_76, %c0_77] : memref<32x96xf32, #tpu.memory_space<vmem>>, vector<32x96xf32>
    %cst_78 = arith.constant dense<0.000000e+00> : vector<8x96xf32>
    %67 = tpu.matmul %64, %66, %cst_78 {dimension_numbers = #tpu.dot_dimension_numbers<[1], [0], [0], [1], [0, 0, 1, 1], [], []>} : vector<8x32xf32>, vector<32x96xf32>, vector<8x96xf32> -> vector<8x96xf32>
    %c0_79 = arith.constant 0 : index
    %c0_80 = arith.constant 0 : index
    %68 = vector.load %arg15[%c0_79, %c0_80] : memref<32x96xf32, #tpu.memory_space<vmem>>, vector<32x96xf32>
    %cst_81 = arith.constant dense<0.000000e+00> : vector<8x96xf32>
    %69 = tpu.matmul %65, %68, %cst_81 {dimension_numbers = #tpu.dot_dimension_numbers<[1], [0], [0], [1], [0, 0, 1, 1], [], []>} : vector<8x32xf32>, vector<32x96xf32>, vector<8x96xf32> -> vector<8x96xf32>
    %70 = arith.addf %67, %69 : vector<8x96xf32>
    %c0_82 = arith.constant 0 : index
    %c0_83 = arith.constant 0 : index
    %71 = vector.load %arg16[%c0_82, %c0_83] : memref<1x96xf32, #tpu.memory_space<vmem>>, vector<1x96xf32>
    %72 = vector.broadcast %71 : vector<1x96xf32> to vector<8x96xf32>
    %73 = arith.addf %70, %72 : vector<8x96xf32>
    %c0_84 = arith.constant 0 : index
    %c0_85 = arith.constant 0 : index
    %74 = vector.load %arg17[%c0_84, %c0_85] : memref<1x96xf32, #tpu.memory_space<vmem>>, vector<1x96xf32>
    %75 = vector.shape_cast %74 : vector<1x96xf32> to vector<1x96xf32>
    %76 = vector.broadcast %75 : vector<1x96xf32> to vector<8x96xf32>
    %cst_86 = arith.constant 0.000000e+00 : f32
    %77 = vector.broadcast %cst_86 : f32 to vector<8x32xf32>
    %78 = vector.extract_strided_slice %73 {offsets = [0, 0], sizes = [8, 32], strides = [1, 1]} : vector<8x96xf32> to vector<8x32xf32>
    %79 = vector.extract_strided_slice %76 {offsets = [0, 0], sizes = [8, 32], strides = [1, 1]} : vector<8x96xf32> to vector<8x32xf32>
    %80 = arith.addf %78, %79 : vector<8x32xf32>
    %81 = arith.negf %80 : vector<8x32xf32>
    %82 = math.exp %81 : vector<8x32xf32>
    %cst_87 = arith.constant 1.000000e+00 : f32
    %83 = vector.broadcast %cst_87 : f32 to vector<8x32xf32>
    %84 = arith.addf %83, %82 : vector<8x32xf32>
    %85 = arith.divf %83, %84 : vector<8x32xf32>
    %86 = vector.extract_strided_slice %73 {offsets = [0, 32], sizes = [8, 32], strides = [1, 1]} : vector<8x96xf32> to vector<8x32xf32>
    %87 = vector.extract_strided_slice %76 {offsets = [0, 32], sizes = [8, 32], strides = [1, 1]} : vector<8x96xf32> to vector<8x32xf32>
    %88 = arith.addf %86, %87 : vector<8x32xf32>
    %89 = arith.negf %88 : vector<8x32xf32>
    %90 = math.exp %89 : vector<8x32xf32>
    %cst_88 = arith.constant 1.000000e+00 : f32
    %91 = vector.broadcast %cst_88 : f32 to vector<8x32xf32>
    %92 = arith.addf %91, %90 : vector<8x32xf32>
    %93 = arith.divf %91, %92 : vector<8x32xf32>
    %94 = vector.extract_strided_slice %73 {offsets = [0, 64], sizes = [8, 32], strides = [1, 1]} : vector<8x96xf32> to vector<8x32xf32>
    %95 = vector.extract_strided_slice %76 {offsets = [0, 64], sizes = [8, 32], strides = [1, 1]} : vector<8x96xf32> to vector<8x32xf32>
    %96 = arith.mulf %85, %95 : vector<8x32xf32>
    %97 = arith.addf %94, %96 : vector<8x32xf32>
    %98 = math.tanh %97 : vector<8x32xf32>
    %cst_89 = arith.constant 1.000000e+00 : f32
    %99 = vector.broadcast %cst_89 : f32 to vector<8x32xf32>
    %100 = arith.subf %99, %93 : vector<8x32xf32>
    %101 = arith.mulf %100, %98 : vector<8x32xf32>
    %102 = arith.mulf %93, %77 : vector<8x32xf32>
    %103 = arith.addf %101, %102 : vector<8x32xf32>
    %c0_90 = arith.constant 0 : index
    %c0_91 = arith.constant 0 : index
    %104 = vector.load %arg18[%c0_90, %c0_91] : memref<32x10xf32, #tpu.memory_space<vmem>>, vector<32x10xf32>
    %cst_92 = arith.constant dense<0.000000e+00> : vector<8x10xf32>
    %105 = tpu.matmul %63, %104, %cst_92 {dimension_numbers = #tpu.dot_dimension_numbers<[1], [0], [0], [1], [0, 0, 1, 1], [], []>} : vector<8x32xf32>, vector<32x10xf32>, vector<8x10xf32> -> vector<8x10xf32>
    %c0_93 = arith.constant 0 : index
    %c0_94 = arith.constant 0 : index
    %106 = vector.load %arg19[%c0_93, %c0_94] : memref<32x10xf32, #tpu.memory_space<vmem>>, vector<32x10xf32>
    %cst_95 = arith.constant dense<0.000000e+00> : vector<8x10xf32>
    %107 = tpu.matmul %103, %106, %cst_95 {dimension_numbers = #tpu.dot_dimension_numbers<[1], [0], [0], [1], [0, 0, 1, 1], [], []>} : vector<8x32xf32>, vector<32x10xf32>, vector<8x10xf32> -> vector<8x10xf32>
    %108 = arith.addf %105, %107 : vector<8x10xf32>
    %c0_96 = arith.constant 0 : index
    %c0_97 = arith.constant 0 : index
    %109 = vector.load %arg20[%c0_96, %c0_97] : memref<1x10xf32, #tpu.memory_space<vmem>>, vector<1x10xf32>
    %110 = vector.broadcast %109 : vector<1x10xf32> to vector<8x10xf32>
    %111 = arith.addf %108, %110 : vector<8x10xf32>
    %c0_98 = arith.constant 0 : index
    %c0_99 = arith.constant 0 : index
    %112 = vector.load %arg21[%c0_98, %c0_99] : memref<8x10xf32, #tpu.memory_space<vmem>>, vector<8x10xf32>
    tpu.vector_store %arg21[%c0_98, %c0_99], %111 {strides = array<i32>} : memref<8x10xf32, #tpu.memory_space<vmem>>, vector<8x10xf32>,
    return
  }
}

</mosaic_0001>

<bundles_post_ra>
// kernel: birnn_forward.1
= control target key start
LH: loop header
LB: loop body
LE: loop exit
PB: predicated region body
PF: predicated region fallthrough
CT: control target
= control target key end

     0   :  { %vm103_vm0 = vcmask 130048   ;;  %vm463_vm1 = vcmask 785408   ;;  %s8426_s1 = inlined_call_operand.vmem [shape: f32[16,96], index: 1, kind: input, shape index: {}]   ;;  %s8427_s5 = inlined_call_operand.vmem [shape: f32[32,96], index: 5, kind: input, shape index: {}]   ;;  %s8428_s6 = inlined_call_operand.vmem [shape: f32[32,96], index: 6, kind: input, shape index: {}]   ;;  %s8429_s9 = inlined_call_operand.vmem [shape: f32[32,96], index: 9, kind: input, shape index: {}]   ;;  %s8430_s10 = inlined_call_operand.vmem [shape: f32[32,96], index: 10, kind: input, shape index: {}]   ;;  %s8431_s11 = inlined_call_operand.vmem [shape: f32[1,96], index: 11, kind: input, shape index: {}]   ;;  %s8432_s12 = inlined_call_operand.vmem [shape: f32[32,96], index: 12, kind: input, shape index: {}]   ;;  %s8433_s13 = inlined_call_operand.vmem [shape: f32[1,96], index: 13, kind: input, shape index: {}]   ;;  %s8434_s14 = inlined_call_operand.vmem [shape: f32[32,96], index: 14, kind: input, shape index: {}]   ;;  %s8435_s15 = inlined_call_operand.vmem [shape: f32[32,96], index: 15, kind: input, shape index: {}]   ;;  %s8436_s16 = inlined_call_operand.vmem [shape: f32[1,96], index: 16, kind: input, shape index: {}]   ;;  %s8437_s17 = inlined_call_operand.vmem [shape: f32[1,96], index: 17, kind: input, shape index: {}]   ;;  %s8438_s18 = inlined_call_operand.vmem [shape: f32[32,10], index: 18, kind: input, shape index: {}]   ;;  %s8439_s19 = inlined_call_operand.vmem [shape: f32[32,10], index: 19, kind: input, shape index: {}]   ;;  %s8440_s20 = inlined_call_operand.vmem [shape: f32[1,10], index: 20, kind: input, shape index: {}]   ;;  %s8441_s21 = inlined_call_operand.vmem [shape: f32[8,10], index: 21, kind: output, shape index: {}]   ;;  %s8442_s0 = inlined_call_operand.vmem [shape: f32[512,16], index: 0, kind: input, shape index: {}]   ;;  %s8443_s2 = inlined_call_operand.vmem [shape: f32[16,96], index: 2, kind: input, shape index: {}]   ;;  %s8444_s3 = inlined_call_operand.vmem [shape: f32[1,96], index: 3, kind: input, shape index: {}]   ;;  %s8445_s7 = inlined_call_operand.vmem [shape: f32[1,96], index: 7, kind: input, shape index: {}]   ;;  %s8446_s8 = inlined_call_operand.vmem [shape: f32[1,96], index: 8, kind: input, shape index: {}]   ;;  %s8447_s4 = inlined_call_operand.vmem [shape: f32[1,96], index: 4, kind: input, shape index: {}]  }
   0x1   :  { %8453 = sst [smem:[#allocation7_spill]] %s8426_s1  ;;  %v6826_v2 = vld [vmem:[%s8442_s0] sm:$0xff]  ;;  %v6836_v4 = vld [vmem:[%s8442_s0 + $0x8] sm:$0xff]  ;;  %v6857_v7 = vld [vmem:[%s8442_s0 + $0x10] sm:$0xff] }
   0x2   :  { %8454 = sst [smem:[#allocation8_spill]] %s8427_s5  ;;  %v6831_v3 = vld [vmem:[%s8442_s0 + $0x100] sm:$0xff]  ;;  %v6841_v5 = vld [vmem:[%s8442_s0 + $0x108] sm:$0xff]  ;;  %5921 = vmatprep.mubr.msk.f32.mxu0 %vm103_vm0, %v6826_v2  ;;  %v6862_v8 = vld [vmem:[%s8442_s0 + $0x110] sm:$0xff] }
   0x3   :  { %8455 = sst [smem:[#allocation9_spill]] %s8428_s6  ;;  %v956_v6 = vld [vmem:[%s8443_s2 + $0x8] sm:$0xff]  ;;  %5973 = vmatprep.mubr.msk.f32.mxu1 %vm103_vm0, %v6831_v3  ;;  %v6867_v9 = vld [vmem:[%s8442_s0 + $0x18] sm:$0xff]  ;;  %v6877_v11 = vld [vmem:[%s8442_s0 + $0x20] sm:$0xff] }
   0x4   :  { %8456 = sst [smem:[#allocation10_spill]] %s8429_s9  ;;  %v6872_v10 = vld [vmem:[%s8442_s0 + $0x118] sm:$0xff]  ;;  %v6882_v12 = vld [vmem:[%s8442_s0 + $0x120] sm:$0xff]  ;;  %v6899_v13 = vld [vmem:[%s8442_s0 + $0x28] sm:$0xff] }
   0x5   :  { %8457 = sst [smem:[#allocation11_spill]] %s8430_s10  ;;  %v6904_v14 = vld [vmem:[%s8442_s0 + $0x128] sm:$0xff]  ;;  %v6909_v15 = vld [vmem:[%s8442_s0 + $0x30] sm:$0xff]  ;;  %v955_v17 = vld [vmem:[%s8443_s2] sm:$0xff] }
   0x6   :  { %8458 = sst [smem:[#allocation12_spill]] %s8431_s11  ;;  %v6914_v16 = vld [vmem:[%s8442_s0 + $0x130] sm:$0xff]  ;;  %v6930_v18 = vld [vmem:[%s8442_s0 + $0x38] sm:$0xff]  ;;  %v6940_v20 = vld [vmem:[%s8442_s0 + $0x40] sm:$0xff] }
   0x7   :  { %s8459_s26 = sld [smem:[#allocation7_spill]]  ;;  %v6935_v19 = vld [vmem:[%s8442_s0 + $0x138] sm:$0xff]  ;;  %v6945_v21 = vld [vmem:[%s8442_s0 + $0x140] sm:$0xff]  ;;  %v6958_v22 = vld [vmem:[%s8442_s0 + $0x48] sm:$0xff] }
   0x8   :  { %v6963_v23 = vld [vmem:[%s8442_s0 + $0x148] sm:$0xff]  ;;  %v6968_v24 = vld [vmem:[%s8442_s0 + $0x50] sm:$0xff]  ;;  %v6986_v26 = vld [vmem:[%s8442_s0 + $0x58] sm:$0xff] }
   0x9   :  { %v6973_v25 = vld [vmem:[%s8442_s0 + $0x150] sm:$0xff]  ;;  %v6991_v27 = vld [vmem:[%s8442_s0 + $0x158] sm:$0xff]  ;;  %v6996_v28 = vld [vmem:[%s8442_s0 + $0x60] sm:$0xff] }
   0xa   :  { %v7001_v29 = vld [vmem:[%s8442_s0 + $0x160] sm:$0xff]  ;;  %v7014_v30 = vld [vmem:[%s8442_s0 + $0x68] sm:$0xff]  ;;  %v7024_v32 = vld [vmem:[%s8442_s0 + $0x70] sm:$0xff] }
   0xb   :  { %v7019_v31 = vld [vmem:[%s8442_s0 + $0x168] sm:$0xff]  ;;  %v7029_v33 = vld [vmem:[%s8442_s0 + $0x170] sm:$0xff]  ;;  %v7042_v34 = vld [vmem:[%s8442_s0 + $0x78] sm:$0xff] }
   0xc   :  { %v7047_v35 = vld [vmem:[%s8442_s0 + $0x178] sm:$0xff]  ;;  %v7052_v36 = vld [vmem:[%s8442_s0 + $0x80] sm:$0xff]  ;;  %v7070_v38 = vld [vmem:[%s8442_s0 + $0x88] sm:$0xff] }
   0xd   :  { %v102_v0 = vld [vmem:[%s8459_s26 + $0x8] sm:$0xff]  ;;  %v101_v1 = vld [vmem:[%s8459_s26] sm:$0xff]  ;;  %v7080_v40 = vld [vmem:[%s8442_s0 + $0x90] sm:$0xff] }
   0xe   :  { %5917 = vmatprep.subr.mxu0 %v102_v0  ;;  %5969 = vmatprep.subr.mxu1 %v102_v0  ;;  %v7057_v37 = vld [vmem:[%s8442_s0 + $0x180] sm:$0xff]  ;;  %v7075_v39 = vld [vmem:[%s8442_s0 + $0x188] sm:$0xff]  ;;  %v7085_v41 = vld [vmem:[%s8442_s0 + $0x190] sm:$0xff] }
   0xf   :  { %5918 = vmatpush3.msra.mxu0 %v102_v0  ;;  %5970 = vmatpush3.msra.mxu1 %v102_v0  ;;  %v7098_v42 = vld [vmem:[%s8442_s0 + $0x98] sm:$0xff]  ;;  %v7108_v44 = vld [vmem:[%s8442_s0 + $0xa0] sm:$0xff]  ;;  %v7126_v46 = vld [vmem:[%s8442_s0 + $0xa8] sm:$0xff] }
  0x10   :  { %5919 = vmatprep.subr.mxu0 %v101_v1  ;;  %5971 = vmatprep.subr.mxu1 %v101_v1  ;;  %v7103_v43 = vld [vmem:[%s8442_s0 + $0x198] sm:$0xff]  ;;  %v7113_v45 = vld [vmem:[%s8442_s0 + $0x1a0] sm:$0xff]  ;;  %v7131_v47 = vld [vmem:[%s8442_s0 + $0x1a8] sm:$0xff] }
  0x11   :  { %5920 = vmatpush3.msra.mxu0 %v101_v1  ;;  %5972 = vmatpush3.msra.mxu1 %v101_v1  ;;  %v7136_v48 = vld [vmem:[%s8442_s0 + $0xb0] sm:$0xff]  ;;  %v7154_v50 = vld [vmem:[%s8442_s0 + $0xb8] sm:$0xff]  ;;  %v7164_v52 = vld [vmem:[%s8442_s0 + $0xc0] sm:$0xff] }
  0x12   :  { %5922 = vmatmul.mubr.msk.f32.vlgmr.msra.gmra.mxu0 %vm103_vm0, %v6836_v4  ;;  %5974 = vmatmul.mubr.msk.f32.vlgmr.msra.gmra.mxu1 %vm103_vm0, %v6841_v5  ;;  %v7141_v49 = vld [vmem:[%s8442_s0 + $0x1b0] sm:$0xff]  ;;  %v7159_v51 = vld [vmem:[%s8442_s0 + $0x1b8] sm:$0xff]  ;;  %v7169_v53 = vld [vmem:[%s8442_s0 + $0x1c0] sm:$0xff] }
  0x13   :  { %6021 = vmatprep.subr.mxu0 %v956_v6  ;;  %6073 = vmatprep.subr.mxu1 %v956_v6  ;;  %v7182_v54 = vld [vmem:[%s8442_s0 + $0xc8] sm:$0xff]  ;;  %v7192_v56 = vld [vmem:[%s8442_s0 + $0xd0] sm:$0xff]  ;;  %v7210_v58 = vld [vmem:[%s8442_s0 + $0xd8] sm:$0xff] }
  0x14   :  { %6022 = vmatpush3.msra.mxu0 %v956_v6  ;;  %6074 = vmatpush3.msra.mxu1 %v956_v6  ;;  %v7187_v55 = vld [vmem:[%s8442_s0 + $0x1c8] sm:$0xff]  ;;  %v7197_v57 = vld [vmem:[%s8442_s0 + $0x1d0] sm:$0xff]  ;;  %v7215_v59 = vld [vmem:[%s8442_s0 + $0x1d8] sm:$0xff] }
  0x15   :  { %5924 = vmatprep.mubr.msk.f32.mxu0 %vm103_vm0, %v6857_v7  ;;  %5976 = vmatprep.mubr.msk.f32.mxu1 %vm103_vm0, %v6862_v8  ;;  %v7220_v60 = vld [vmem:[%s8442_s0 + $0xe0] sm:$0xff]  ;;  %v7238_v62 = vld [vmem:[%s8442_s0 + $0xe8] sm:$0xff]  ;;  %v7248_v0 = vld [vmem:[%s8442_s0 + $0xf0] sm:$0xff] }
  0x16   :  { %5925 = vmatmul.mubr.msk.f32.gmra.mxu0 %vm103_vm0, %v6867_v9  ;;  %5977 = vmatmul.mubr.msk.f32.gmra.mxu1 %vm103_vm0, %v6872_v10  ;;  %v7225_v61 = vld [vmem:[%s8442_s0 + $0x1e0] sm:$0xff]  ;;  %v7243_v63 = vld [vmem:[%s8442_s0 + $0x1e8] sm:$0xff]  ;;  %v7253_v1 = vld [vmem:[%s8442_s0 + $0x1f0] sm:$0xff] }
  0x17   :  { %5927 = vmatprep.mubr.msk.f32.mxu0 %vm103_vm0, %v6877_v11  ;;  %5979 = vmatprep.mubr.msk.f32.mxu1 %vm103_vm0, %v6882_v12  ;;  %v7266_v6 = vld [vmem:[%s8442_s0 + $0xf8] sm:$0xff] }
  0x18   :  { %6023 = vmatprep.subr.mxu0 %v955_v17  ;;  %6075 = vmatprep.subr.mxu1 %v955_v17 }
  0x19   :  { %6024 = vmatpush3.msra.mxu0 %v955_v17  ;;  %6076 = vmatpush3.msra.mxu1 %v955_v17  ;;  %v7271_v17 = vld [vmem:[%s8442_s0 + $0x1f8] sm:$0xff] }
  0x1a   :  { %5928 = vmatmul.mubr.msk.f32.gmra.mxu0 %vm103_vm0, %v6899_v13  ;;  %5980 = vmatmul.mubr.msk.f32.gmra.mxu1 %vm103_vm0, %v6904_v14 }
  0x1b   :  { %5930 = vmatprep.mubr.msk.f32.mxu0 %vm103_vm0, %v6909_v15  ;;  %5982 = vmatprep.mubr.msk.f32.mxu1 %vm103_vm0, %v6914_v16 }
  0x1e   :  { %5931 = vmatmul.mubr.msk.f32.gmra.mxu0 %vm103_vm0, %v6930_v18  ;;  %5983 = vmatmul.mubr.msk.f32.gmra.mxu1 %vm103_vm0, %v6935_v19 }
  0x1f   :  { %5933 = vmatprep.mubr.msk.f32.mxu0 %vm103_vm0, %v6940_v20  ;;  %5985 = vmatprep.mubr.msk.f32.mxu1 %vm103_vm0, %v6945_v21 }
  0x22   :  { %5934 = vmatmul.mubr.msk.f32.gmra.mxu0 %vm103_vm0, %v6958_v22  ;;  %5986 = vmatmul.mubr.msk.f32.gmra.mxu1 %vm103_vm0, %v6963_v23 }
  0x23   :  { %5936 = vmatprep.mubr.msk.f32.mxu0 %vm103_vm0, %v6968_v24  ;;  %5988 = vmatprep.mubr.msk.f32.mxu1 %vm103_vm0, %v6973_v25 }
  0x26   :  { %5937 = vmatmul.mubr.msk.f32.gmra.mxu0 %vm103_vm0, %v6986_v26  ;;  %5989 = vmatmul.mubr.msk.f32.gmra.mxu1 %vm103_vm0, %v6991_v27 }
  0x27   :  { %5939 = vmatprep.mubr.msk.f32.mxu0 %vm103_vm0, %v6996_v28  ;;  %5991 = vmatprep.mubr.msk.f32.mxu1 %vm103_vm0, %v7001_v29 }
  0x2a   :  { %5940 = vmatmul.mubr.msk.f32.gmra.mxu0 %vm103_vm0, %v7014_v30  ;;  %5992 = vmatmul.mubr.msk.f32.gmra.mxu1 %vm103_vm0, %v7019_v31 }
  0x2b   :  { %5942 = vmatprep.mubr.msk.f32.mxu0 %vm103_vm0, %v7024_v32  ;;  %5994 = vmatprep.mubr.msk.f32.mxu1 %vm103_vm0, %v7029_v33 }
  0x2e   :  { %5943 = vmatmul.mubr.msk.f32.gmra.mxu0 %vm103_vm0, %v7042_v34  ;;  %5995 = vmatmul.mubr.msk.f32.gmra.mxu1 %vm103_vm0, %v7047_v35 }
  0x2f   :  { %5945 = vmatprep.mubr.msk.f32.mxu0 %vm103_vm0, %v7052_v36  ;;  %5997 = vmatprep.mubr.msk.f32.mxu1 %vm103_vm0, %v7057_v37 }
  0x32   :  { %5946 = vmatmul.mubr.msk.f32.gmra.mxu0 %vm103_vm0, %v7070_v38  ;;  %5998 = vmatmul.mubr.msk.f32.gmra.mxu1 %vm103_vm0, %v7075_v39 }
  0x33   :  { %5948 = vmatprep.mubr.msk.f32.mxu0 %vm103_vm0, %v7080_v40  ;;  %6000 = vmatprep.mubr.msk.f32.mxu1 %vm103_vm0, %v7085_v41 }
  0x36   :  { %5949 = vmatmul.mubr.msk.f32.gmra.mxu0 %vm103_vm0, %v7098_v42  ;;  %6001 = vmatmul.mubr.msk.f32.gmra.mxu1 %vm103_vm0, %v7103_v43 }
  0x37   :  { %5951 = vmatprep.mubr.msk.f32.mxu0 %vm103_vm0, %v7108_v44  ;;  %6003 = vmatprep.mubr.msk.f32.mxu1 %vm103_vm0, %v7113_v45 }
  0x3a   :  { %5952 = vmatmul.mubr.msk.f32.gmra.mxu0 %vm103_vm0, %v7126_v46  ;;  %6004 = vmatmul.mubr.msk.f32.gmra.mxu1 %vm103_vm0, %v7131_v47 }
  0x3b   :  { %5954 = vmatprep.mubr.msk.f32.mxu0 %vm103_vm0, %v7136_v48  ;;  %6006 = vmatprep.mubr.msk.f32.mxu1 %vm103_vm0, %v7141_v49 }
  0x3e   :  { %5955 = vmatmul.mubr.msk.f32.gmra.mxu0 %vm103_vm0, %v7154_v50  ;;  %6007 = vmatmul.mubr.msk.f32.gmra.mxu1 %vm103_vm0, %v7159_v51 }
  0x3f   :  { %5957 = vmatprep.mubr.msk.f32.mxu0 %vm103_vm0, %v7164_v52  ;;  %6009 = vmatprep.mubr.msk.f32.mxu1 %vm103_vm0, %v7169_v53 }
  0x42   :  { %5958 = vmatmul.mubr.msk.f32.gmra.mxu0 %vm103_vm0, %v7182_v54  ;;  %6010 = vmatmul.mubr.msk.f32.gmra.mxu1 %vm103_vm0, %v7187_v55 }
  0x43   :  { %5960 = vmatprep.mubr.msk.f32.mxu0 %vm103_vm0, %v7192_v56  ;;  %6012 = vmatprep.mubr.msk.f32.mxu1 %vm103_vm0, %v7197_v57 }
  0x46   :  { %5961 = vmatmul.mubr.msk.f32.gmra.mxu0 %vm103_vm0, %v7210_v58  ;;  %6013 = vmatmul.mubr.msk.f32.gmra.mxu1 %vm103_vm0, %v7215_v59 }
  0x47   :  { %5963 = vmatprep.mubr.msk.f32.mxu0 %vm103_vm0, %v7220_v60  ;;  %6015 = vmatprep.mubr.msk.f32.mxu1 %vm103_vm0, %v7225_v61 }
  0x4a   :  { %5964 = vmatmul.mubr.msk.f32.gmra.mxu0 %vm103_vm0, %v7238_v62  ;;  %6016 = vmatmul.mubr.msk.f32.gmra.mxu1 %vm103_vm0, %v7243_v63 }
  0x4b   :  { %5966 = vmatprep.mubr.msk.f32.mxu0 %vm103_vm0, %v7248_v0  ;;  %6018 = vmatprep.mubr.msk.f32.mxu1 %vm103_vm0, %v7253_v1 }
  0x4e   :  { %5967 = vmatmul.mubr.msk.f32.gmra.mxu0 %vm103_vm0, %v7266_v6  ;;  %6019 = vmatmul.mubr.msk.f32.gmra.mxu1 %vm103_vm0, %v7271_v17 }
  0x4f   :  { %6025 = vmatprep.mubr.msk.f32.mxu0 %vm103_vm0, %v6826_v2  ;;  %6077 = vmatprep.mubr.msk.f32.mxu1 %vm103_vm0, %v6831_v3  ;;  %v7408_v2 = vld [vmem:[%s8444_s3] ss:$0 sm:$0xff] }
  0x52   :  { %6026 = vmatmul.mubr.msk.f32.vlgmr.msra.gmra.mxu0 %vm103_vm0, %v6836_v4  ;;  %6078 = vmatmul.mubr.msk.f32.vlgmr.msra.gmra.mxu1 %vm103_vm0, %v6841_v5 }
  0x53   :  { %6028 = vmatprep.mubr.msk.f32.mxu0 %vm103_vm0, %v6857_v7  ;;  %6080 = vmatprep.mubr.msk.f32.mxu1 %vm103_vm0, %v6862_v8  ;;  %v7415_v8 = vld [vmem:[%s8445_s7] ss:$0 sm:$0xff] }
  0x56   :  { %6029 = vmatmul.mubr.msk.f32.gmra.mxu0 %vm103_vm0, %v6867_v9  ;;  %6081 = vmatmul.mubr.msk.f32.gmra.mxu1 %vm103_vm0, %v6872_v10  ;;  %v7420_v9 = vld [vmem:[%s8446_s8] ss:$0 sm:$0xff] }
  0x57   :  { %6031 = vmatprep.mubr.msk.f32.mxu0 %vm103_vm0, %v6877_v11  ;;  %6083 = vmatprep.mubr.msk.f32.mxu1 %vm103_vm0, %v6882_v12 }
  0x5a   :  { %6032 = vmatmul.mubr.msk.f32.gmra.mxu0 %vm103_vm0, %v6899_v13  ;;  %6084 = vmatmul.mubr.msk.f32.gmra.mxu1 %vm103_vm0, %v6904_v14 }
  0x5b   :  { %6034 = vmatprep.mubr.msk.f32.mxu0 %vm103_vm0, %v6909_v15  ;;  %6086 = vmatprep.mubr.msk.f32.mxu1 %vm103_vm0, %v6914_v16 }
  0x5e   :  { %6035 = vmatmul.mubr.msk.f32.gmra.mxu0 %vm103_vm0, %v6930_v18  ;;  %6087 = vmatmul.mubr.msk.f32.gmra.mxu1 %vm103_vm0, %v6935_v19 }
  0x5f   :  { %6037 = vmatprep.mubr.msk.f32.mxu0 %vm103_vm0, %v6940_v20  ;;  %6089 = vmatprep.mubr.msk.f32.mxu1 %vm103_vm0, %v6945_v21 }
  0x62   :  { %6038 = vmatmul.mubr.msk.f32.gmra.mxu0 %vm103_vm0, %v6958_v22  ;;  %6090 = vmatmul.mubr.msk.f32.gmra.mxu1 %vm103_vm0, %v6963_v23 }
  0x63   :  { %6040 = vmatprep.mubr.msk.f32.mxu0 %vm103_vm0, %v6968_v24  ;;  %6092 = vmatprep.mubr.msk.f32.mxu1 %vm103_vm0, %v6973_v25 }
  0x66   :  { %6041 = vmatmul.mubr.msk.f32.gmra.mxu0 %vm103_vm0, %v6986_v26  ;;  %6093 = vmatmul.mubr.msk.f32.gmra.mxu1 %vm103_vm0, %v6991_v27 }
  0x67   :  { %6043 = vmatprep.mubr.msk.f32.mxu0 %vm103_vm0, %v6996_v28  ;;  %6095 = vmatprep.mubr.msk.f32.mxu1 %vm103_vm0, %v7001_v29 }
  0x6a   :  { %6044 = vmatmul.mubr.msk.f32.gmra.mxu0 %vm103_vm0, %v7014_v30  ;;  %6096 = vmatmul.mubr.msk.f32.gmra.mxu1 %vm103_vm0, %v7019_v31 }
  0x6b   :  { %6046 = vmatprep.mubr.msk.f32.mxu0 %vm103_vm0, %v7024_v32  ;;  %6098 = vmatprep.mubr.msk.f32.mxu1 %vm103_vm0, %v7029_v33 }
  0x6e   :  { %6047 = vmatmul.mubr.msk.f32.gmra.mxu0 %vm103_vm0, %v7042_v34  ;;  %6099 = vmatmul.mubr.msk.f32.gmra.mxu1 %vm103_vm0, %v7047_v35 }
  0x6f   :  { %6049 = vmatprep.mubr.msk.f32.mxu0 %vm103_vm0, %v7052_v36  ;;  %6101 = vmatprep.mubr.msk.f32.mxu1 %vm103_vm0, %v7057_v37 }
  0x72   :  { %6050 = vmatmul.mubr.msk.f32.gmra.mxu0 %vm103_vm0, %v7070_v38  ;;  %6102 = vmatmul.mubr.msk.f32.gmra.mxu1 %vm103_vm0, %v7075_v39 }
  0x73   :  { %6052 = vmatprep.mubr.msk.f32.mxu0 %vm103_vm0, %v7080_v40  ;;  %6104 = vmatprep.mubr.msk.f32.mxu1 %vm103_vm0, %v7085_v41 }
  0x76   :  { %6053 = vmatmul.mubr.msk.f32.gmra.mxu0 %vm103_vm0, %v7098_v42  ;;  %6105 = vmatmul.mubr.msk.f32.gmra.mxu1 %vm103_vm0, %v7103_v43 }
  0x77   :  { %6055 = vmatprep.mubr.msk.f32.mxu0 %vm103_vm0, %v7108_v44  ;;  %6107 = vmatprep.mubr.msk.f32.mxu1 %vm103_vm0, %v7113_v45 }
  0x7a   :  { %6056 = vmatmul.mubr.msk.f32.gmra.mxu0 %vm103_vm0, %v7126_v46  ;;  %6108 = vmatmul.mubr.msk.f32.gmra.mxu1 %vm103_vm0, %v7131_v47 }
  0x7b   :  { %6058 = vmatprep.mubr.msk.f32.mxu0 %vm103_vm0, %v7136_v48  ;;  %6110 = vmatprep.mubr.msk.f32.mxu1 %vm103_vm0, %v7141_v49 }
  0x7e   :  { %6059 = vmatmul.mubr.msk.f32.gmra.mxu0 %vm103_vm0, %v7154_v50  ;;  %6111 = vmatmul.mubr.msk.f32.gmra.mxu1 %vm103_vm0, %v7159_v51 }
  0x7f   :  { %6061 = vmatprep.mubr.msk.f32.mxu0 %vm103_vm0, %v7164_v52  ;;  %6113 = vmatprep.mubr.msk.f32.mxu1 %vm103_vm0, %v7169_v53 }
  0x82   :  { %6062 = vmatmul.mubr.msk.f32.gmra.mxu0 %vm103_vm0, %v7182_v54  ;;  %6114 = vmatmul.mubr.msk.f32.gmra.mxu1 %vm103_vm0, %v7187_v55 }
  0x83   :  { %6064 = vmatprep.mubr.msk.f32.mxu0 %vm103_vm0, %v7192_v56  ;;  %6116 = vmatprep.mubr.msk.f32.mxu1 %vm103_vm0, %v7197_v57 }
  0x86   :  { %6065 = vmatmul.mubr.msk.f32.gmra.mxu0 %vm103_vm0, %v7210_v58  ;;  %6117 = vmatmul.mubr.msk.f32.gmra.mxu1 %vm103_vm0, %v7215_v59 }
  0x87   :  { %6067 = vmatprep.mubr.msk.f32.mxu0 %vm103_vm0, %v7220_v60  ;;  %6119 = vmatprep.mubr.msk.f32.mxu1 %vm103_vm0, %v7225_v61 }
  0x8a   :  { %6068 = vmatmul.mubr.msk.f32.gmra.mxu0 %vm103_vm0, %v7238_v62  ;;  %6120 = vmatmul.mubr.msk.f32.gmra.mxu1 %vm103_vm0, %v7243_v63 }
  0x8b   :  { %6070 = vmatprep.mubr.msk.f32.mxu0 %vm103_vm0, %v7248_v0  ;;  %6122 = vmatprep.mubr.msk.f32.mxu1 %vm103_vm0, %v7253_v1 }
  0x8e   :  { %6071 = vmatmul.mubr.msk.f32.gmra.mxu0 %vm103_vm0, %v7266_v6  ;;  %6123 = vmatmul.mubr.msk.f32.gmra.mxu1 %vm103_vm0, %v7271_v17 }
  0xd2   :  { %v5923_v3 = vpop.f32.mrf.mxu0  ;;  %v5975_v4 = vpop.f32.mrf.mxu1 }
  0xd3   :  { %v432_v5 = vadd.f32 %v5923_v3, %v7408_v2  ;;  %v859_v7 = vadd.f32 %v5975_v4, %v7408_v2 }
  0xd4   :  { %v266_v10 = vpop.f32.mrf.mxu0  ;;  %v693_v11 = vpop.f32.mrf.mxu1 }
  0xd5   :  { %465 = vst.msk [vmem:[#allocation2 + $0x8] sm:$0xff] %vm463_vm1, %v432_v5  ;;  %891 = vst.msk [vmem:[#allocation2 + $0x108] sm:$0xff] %vm463_vm1, %v859_v7  ;;  %v431_v12 = vadd.f32 %v7408_v2, %v266_v10  ;;  %v858_v13 = vadd.f32 %v7408_v2, %v693_v11 }
  0xd6   :  { %v5926_v14 = vpop.f32.mrf.mxu0  ;;  %v5978_v15 = vpop.f32.mrf.mxu1 }
  0xd7   :  { %464 = vst.msk [vmem:[#allocation2] sm:$0xff] %vm463_vm1, %v431_v12  ;;  %890 = vst.msk [vmem:[#allocation2 + $0x100] sm:$0xff] %vm463_vm1, %v858_v13  ;;  %v434_v16 = vadd.f32 %v5926_v14, %v7408_v2  ;;  %v861_v18 = vadd.f32 %v5978_v15, %v7408_v2 }
  0xd8   :  { %v276_v19 = vpop.f32.mrf.mxu0  ;;  %v703_v20 = vpop.f32.mrf.mxu1 }
  0xd9   :  { %467 = vst.msk [vmem:[#allocation2 + $0x18] sm:$0xff] %vm463_vm1, %v434_v16  ;;  %893 = vst.msk [vmem:[#allocation2 + $0x118] sm:$0xff] %vm463_vm1, %v861_v18  ;;  %v433_v21 = vadd.f32 %v7408_v2, %v276_v19  ;;  %v860_v22 = vadd.f32 %v7408_v2, %v703_v20 }
  0xda   :  { %v5929_v23 = vpop.f32.mrf.mxu0  ;;  %v5981_v24 = vpop.f32.mrf.mxu1 }
  0xdb   :  { %466 = vst.msk [vmem:[#allocation2 + $0x10] sm:$0xff] %vm463_vm1, %v433_v21  ;;  %892 = vst.msk [vmem:[#allocation2 + $0x110] sm:$0xff] %vm463_vm1, %v860_v22  ;;  %v436_v25 = vadd.f32 %v5929_v23, %v7408_v2  ;;  %v863_v26 = vadd.f32 %v5981_v24, %v7408_v2 }
  0xdc   :  { %v286_v27 = vpop.f32.mrf.mxu0  ;;  %v713_v28 = vpop.f32.mrf.mxu1 }
  0xdd   :  { %469 = vst.msk [vmem:[#allocation2 + $0x28] sm:$0xff] %vm463_vm1, %v436_v25  ;;  %895 = vst.msk [vmem:[#allocation2 + $0x128] sm:$0xff] %vm463_vm1, %v863_v26  ;;  %v435_v29 = vadd.f32 %v7408_v2, %v286_v27  ;;  %v862_v30 = vadd.f32 %v7408_v2, %v713_v28 }
  0xde   :  { %v5932_v31 = vpop.f32.mrf.mxu0  ;;  %v5984_v32 = vpop.f32.mrf.mxu1 }
  0xdf   :  { %468 = vst.msk [vmem:[#allocation2 + $0x20] sm:$0xff] %vm463_vm1, %v435_v29  ;;  %894 = vst.msk [vmem:[#allocation2 + $0x120] sm:$0xff] %vm463_vm1, %v862_v30  ;;  %v438_v33 = vadd.f32 %v5932_v31, %v7408_v2  ;;  %v865_v34 = vadd.f32 %v5984_v32, %v7408_v2 }
  0xe0   :  { %v296_v35 = vpop.f32.mrf.mxu0  ;;  %v723_v36 = vpop.f32.mrf.mxu1 }
  0xe1   :  { %471 = vst.msk [vmem:[#allocation2 + $0x38] sm:$0xff] %vm463_vm1, %v438_v33  ;;  %897 = vst.msk [vmem:[#allocation2 + $0x138] sm:$0xff] %vm463_vm1, %v865_v34  ;;  %v437_v37 = vadd.f32 %v7408_v2, %v296_v35  ;;  %v864_v38 = vadd.f32 %v7408_v2, %v723_v36 }
  0xe2   :  { %v5935_v39 = vpop.f32.mrf.mxu0  ;;  %v5987_v40 = vpop.f32.mrf.mxu1 }
  0xe3   :  { %470 = vst.msk [vmem:[#allocation2 + $0x30] sm:$0xff] %vm463_vm1, %v437_v37  ;;  %896 = vst.msk [vmem:[#allocation2 + $0x130] sm:$0xff] %vm463_vm1, %v864_v38  ;;  %v440_v41 = vadd.f32 %v5935_v39, %v7408_v2  ;;  %v867_v42 = vadd.f32 %v5987_v40, %v7408_v2 }
  0xe4   :  { %v306_v43 = vpop.f32.mrf.mxu0  ;;  %v733_v44 = vpop.f32.mrf.mxu1 }
  0xe5   :  { %473 = vst.msk [vmem:[#allocation2 + $0x48] sm:$0xff] %vm463_vm1, %v440_v41  ;;  %899 = vst.msk [vmem:[#allocation2 + $0x148] sm:$0xff] %vm463_vm1, %v867_v42  ;;  %v439_v45 = vadd.f32 %v7408_v2, %v306_v43  ;;  %v866_v46 = vadd.f32 %v7408_v2, %v733_v44 }
  0xe6   :  { %v5938_v47 = vpop.f32.mrf.mxu0  ;;  %v5990_v48 = vpop.f32.mrf.mxu1 }
  0xe7   :  { %472 = vst.msk [vmem:[#allocation2 + $0x40] sm:$0xff] %vm463_vm1, %v439_v45  ;;  %898 = vst.msk [vmem:[#allocation2 + $0x140] sm:$0xff] %vm463_vm1, %v866_v46  ;;  %v442_v49 = vadd.f32 %v5938_v47, %v7408_v2  ;;  %v869_v50 = vadd.f32 %v5990_v48, %v7408_v2 }
  0xe8   :  { %v316_v51 = vpop.f32.mrf.mxu0  ;;  %v743_v52 = vpop.f32.mrf.mxu1 }
  0xe9   :  { %475 = vst.msk [vmem:[#allocation2 + $0x58] sm:$0xff] %vm463_vm1, %v442_v49  ;;  %901 = vst.msk [vmem:[#allocation2 + $0x158] sm:$0xff] %vm463_vm1, %v869_v50  ;;  %v441_v53 = vadd.f32 %v7408_v2, %v316_v51  ;;  %v868_v54 = vadd.f32 %v7408_v2, %v743_v52 }
  0xea   :  { %v5941_v55 = vpop.f32.mrf.mxu0  ;;  %v5993_v56 = vpop.f32.mrf.mxu1 }
  0xeb   :  { %474 = vst.msk [vmem:[#allocation2 + $0x50] sm:$0xff] %vm463_vm1, %v441_v53  ;;  %900 = vst.msk [vmem:[#allocation2 + $0x150] sm:$0xff] %vm463_vm1, %v868_v54  ;;  %v444_v57 = vadd.f32 %v5941_v55, %v7408_v2  ;;  %v871_v58 = vadd.f32 %v5993_v56, %v7408_v2 }
  0xec   :  { %v326_v59 = vpop.f32.mrf.mxu0  ;;  %v753_v60 = vpop.f32.mrf.mxu1 }
  0xed   :  { %477 = vst.msk [vmem:[#allocation2 + $0x68] sm:$0xff] %vm463_vm1, %v444_v57  ;;  %903 = vst.msk [vmem:[#allocation2 + $0x168] sm:$0xff] %vm463_vm1, %v871_v58  ;;  %v443_v61 = vadd.f32 %v7408_v2, %v326_v59  ;;  %v870_v62 = vadd.f32 %v7408_v2, %v753_v60 }
  0xee   :  { %v5944_v63 = vpop.f32.mrf.mxu0  ;;  %v5996_v0 = vpop.f32.mrf.mxu1 }
  0xef   :  { %476 = vst.msk [vmem:[#allocation2 + $0x60] sm:$0xff] %vm463_vm1, %v443_v61  ;;  %902 = vst.msk [vmem:[#allocation2 + $0x160] sm:$0xff] %vm463_vm1, %v870_v62  ;;  %v446_v1 = vadd.f32 %v5944_v63, %v7408_v2  ;;  %v873_v6 = vadd.f32 %v5996_v0, %v7408_v2 }
  0xf0   :  { %v336_v17 = vpop.f32.mrf.mxu0  ;;  %v763_v3 = vpop.f32.mrf.mxu1 }
  0xf1   :  { %479 = vst.msk [vmem:[#allocation2 + $0x78] sm:$0xff] %vm463_vm1, %v446_v1  ;;  %905 = vst.msk [vmem:[#allocation2 + $0x178] sm:$0xff] %vm463_vm1, %v873_v6  ;;  %v445_v4 = vadd.f32 %v7408_v2, %v336_v17  ;;  %v872_v5 = vadd.f32 %v7408_v2, %v763_v3 }
  0xf2   :  { %v5947_v7 = vpop.f32.mrf.mxu0  ;;  %v5999_v10 = vpop.f32.mrf.mxu1 }
  0xf3   :  { %478 = vst.msk [vmem:[#allocation2 + $0x70] sm:$0xff] %vm463_vm1, %v445_v4  ;;  %904 = vst.msk [vmem:[#allocation2 + $0x170] sm:$0xff] %vm463_vm1, %v872_v5  ;;  %v448_v11 = vadd.f32 %v5947_v7, %v7408_v2  ;;  %v875_v12 = vadd.f32 %v5999_v10, %v7408_v2  ;;  %v7545_v10 = vld [vmem:[%s8447_s4] ss:$0 sm:$0xff]  ;;  %s7685_s4 = smov 0  }
  0xf4   :  { %v346_v13 = vpop.f32.mrf.mxu0  ;;  %v773_v14 = vpop.f32.mrf.mxu1 }
  0xf5   :  { %481 = vst.msk [vmem:[#allocation2 + $0x88] sm:$0xff] %vm463_vm1, %v448_v11  ;;  %907 = vst.msk [vmem:[#allocation2 + $0x188] sm:$0xff] %vm463_vm1, %v875_v12  ;;  %v447_v15 = vadd.f32 %v7408_v2, %v346_v13  ;;  %v874_v16 = vadd.f32 %v7408_v2, %v773_v14 }
  0xf6   :  { %v5950_v18 = vpop.f32.mrf.mxu0  ;;  %v6002_v19 = vpop.f32.mrf.mxu1 }
  0xf7   :  { %480 = vst.msk [vmem:[#allocation2 + $0x80] sm:$0xff] %vm463_vm1, %v447_v15  ;;  %906 = vst.msk [vmem:[#allocation2 + $0x180] sm:$0xff] %vm463_vm1, %v874_v16  ;;  %v450_v20 = vadd.f32 %v5950_v18, %v7408_v2  ;;  %v877_v21 = vadd.f32 %v6002_v19, %v7408_v2 }
  0xf8   :  { %v356_v22 = vpop.f32.mrf.mxu0  ;;  %v783_v23 = vpop.f32.mrf.mxu1 }
  0xf9   :  { %483 = vst.msk [vmem:[#allocation2 + $0x98] sm:$0xff] %vm463_vm1, %v450_v20  ;;  %909 = vst.msk [vmem:[#allocation2 + $0x198] sm:$0xff] %vm463_vm1, %v877_v21  ;;  %v449_v24 = vadd.f32 %v7408_v2, %v356_v22  ;;  %v876_v25 = vadd.f32 %v7408_v2, %v783_v23 }
  0xfa   :  { %v5953_v26 = vpop.f32.mrf.mxu0  ;;  %v6005_v27 = vpop.f32.mrf.mxu1 }
  0xfb   :  { %482 = vst.msk [vmem:[#allocation2 + $0x90] sm:$0xff] %vm463_vm1, %v449_v24  ;;  %908 = vst.msk [vmem:[#allocation2 + $0x190] sm:$0xff] %vm463_vm1, %v876_v25  ;;  %v452_v28 = vadd.f32 %v5953_v26, %v7408_v2  ;;  %v879_v29 = vadd.f32 %v6005_v27, %v7408_v2 }
  0xfc   :  { %v366_v30 = vpop.f32.mrf.mxu0  ;;  %v793_v31 = vpop.f32.mrf.mxu1 }
  0xfd   :  { %485 = vst.msk [vmem:[#allocation2 + $0xa8] sm:$0xff] %vm463_vm1, %v452_v28  ;;  %911 = vst.msk [vmem:[#allocation2 + $0x1a8] sm:$0xff] %vm463_vm1, %v879_v29  ;;  %v451_v32 = vadd.f32 %v7408_v2, %v366_v30  ;;  %v878_v33 = vadd.f32 %v7408_v2, %v793_v31 }
  0xfe   :  { %v5956_v34 = vpop.f32.mrf.mxu0  ;;  %v6008_v35 = vpop.f32.mrf.mxu1 }
  0xff   :  { %484 = vst.msk [vmem:[#allocation2 + $0xa0] sm:$0xff] %vm463_vm1, %v451_v32  ;;  %910 = vst.msk [vmem:[#allocation2 + $0x1a0] sm:$0xff] %vm463_vm1, %v878_v33  ;;  %v454_v36 = vadd.f32 %v5956_v34, %v7408_v2  ;;  %v881_v37 = vadd.f32 %v6008_v35, %v7408_v2 }
 0x100   :  { %v376_v38 = vpop.f32.mrf.mxu0  ;;  %v803_v39 = vpop.f32.mrf.mxu1 }
 0x101   :  { %487 = vst.msk [vmem:[#allocation2 + $0xb8] sm:$0xff] %vm463_vm1, %v454_v36  ;;  %913 = vst.msk [vmem:[#allocation2 + $0x1b8] sm:$0xff] %vm463_vm1, %v881_v37  ;;  %v453_v40 = vadd.f32 %v7408_v2, %v376_v38  ;;  %v880_v41 = vadd.f32 %v7408_v2, %v803_v39 }
 0x102   :  { %v5959_v42 = vpop.f32.mrf.mxu0  ;;  %v6011_v43 = vpop.f32.mrf.mxu1 }
 0x103   :  { %486 = vst.msk [vmem:[#allocation2 + $0xb0] sm:$0xff] %vm463_vm1, %v453_v40  ;;  %912 = vst.msk [vmem:[#allocation2 + $0x1b0] sm:$0xff] %vm463_vm1, %v880_v41  ;;  %v456_v44 = vadd.f32 %v5959_v42, %v7408_v2  ;;  %v883_v45 = vadd.f32 %v6011_v43, %v7408_v2 }
 0x104   :  { %v386_v46 = vpop.f32.mrf.mxu0  ;;  %v813_v47 = vpop.f32.mrf.mxu1 }
 0x105   :  { %489 = vst.msk [vmem:[#allocation2 + $0xc8] sm:$0xff] %vm463_vm1, %v456_v44  ;;  %915 = vst.msk [vmem:[#allocation2 + $0x1c8] sm:$0xff] %vm463_vm1, %v883_v45  ;;  %v455_v48 = vadd.f32 %v7408_v2, %v386_v46  ;;  %v882_v49 = vadd.f32 %v7408_v2, %v813_v47 }
 0x106   :  { %v5962_v50 = vpop.f32.mrf.mxu0  ;;  %v6014_v51 = vpop.f32.mrf.mxu1 }
 0x107   :  { %488 = vst.msk [vmem:[#allocation2 + $0xc0] sm:$0xff] %vm463_vm1, %v455_v48  ;;  %914 = vst.msk [vmem:[#allocation2 + $0x1c0] sm:$0xff] %vm463_vm1, %v882_v49  ;;  %v458_v52 = vadd.f32 %v5962_v50, %v7408_v2  ;;  %v885_v53 = vadd.f32 %v6014_v51, %v7408_v2 }
 0x108   :  { %v396_v54 = vpop.f32.mrf.mxu0  ;;  %v823_v55 = vpop.f32.mrf.mxu1 }
 0x109   :  { %491 = vst.msk [vmem:[#allocation2 + $0xd8] sm:$0xff] %vm463_vm1, %v458_v52  ;;  %917 = vst.msk [vmem:[#allocation2 + $0x1d8] sm:$0xff] %vm463_vm1, %v885_v53  ;;  %v457_v56 = vadd.f32 %v7408_v2, %v396_v54  ;;  %v884_v57 = vadd.f32 %v7408_v2, %v823_v55 }
 0x10a   :  { %v5965_v58 = vpop.f32.mrf.mxu0  ;;  %v6017_v59 = vpop.f32.mrf.mxu1 }
 0x10b   :  { %490 = vst.msk [vmem:[#allocation2 + $0xd0] sm:$0xff] %vm463_vm1, %v457_v56  ;;  %916 = vst.msk [vmem:[#allocation2 + $0x1d0] sm:$0xff] %vm463_vm1, %v884_v57  ;;  %v460_v60 = vadd.f32 %v5965_v58, %v7408_v2  ;;  %v887_v61 = vadd.f32 %v6017_v59, %v7408_v2 }
 0x10c   :  { %v406_v62 = vpop.f32.mrf.mxu0  ;;  %v833_v63 = vpop.f32.mrf.mxu1 }
 0x10d   :  { %493 = vst.msk [vmem:[#allocation2 + $0xe8] sm:$0xff] %vm463_vm1, %v460_v60  ;;  %919 = vst.msk [vmem:[#allocation2 + $0x1e8] sm:$0xff] %vm463_vm1, %v887_v61  ;;  %v459_v0 = vadd.f32 %v7408_v2, %v406_v62  ;;  %v886_v1 = vadd.f32 %v7408_v2, %v833_v63 }
 0x10e   :  { %v5968_v6 = vpop.f32.mrf.mxu0  ;;  %v6020_v17 = vpop.f32.mrf.mxu1 }
 0x10f   :  { %492 = vst.msk [vmem:[#allocation2 + $0xe0] sm:$0xff] %vm463_vm1, %v459_v0  ;;  %918 = vst.msk [vmem:[#allocation2 + $0x1e0] sm:$0xff] %vm463_vm1, %v886_v1  ;;  %v462_v3 = vadd.f32 %v5968_v6, %v7408_v2  ;;  %v889_v4 = vadd.f32 %v6020_v17, %v7408_v2 }
 0x110   :  { %v416_v5 = vpop.f32.mrf.mxu0  ;;  %v843_v7 = vpop.f32.mrf.mxu1 }
 0x111   :  { %495 = vst.msk [vmem:[#allocation2 + $0xf8] sm:$0xff] %vm463_vm1, %v462_v3  ;;  %921 = vst.msk [vmem:[#allocation2 + $0x1f8] sm:$0xff] %vm463_vm1, %v889_v4  ;;  %v461_v11 = vadd.f32 %v7408_v2, %v416_v5  ;;  %v888_v12 = vadd.f32 %v7408_v2, %v843_v7 }
 0x112   :  { %v6027_v13 = vpop.f32.mrf.mxu0  ;;  %v6079_v14 = vpop.f32.mrf.mxu1 }
 0x113   :  { %494 = vst.msk [vmem:[#allocation2 + $0xf0] sm:$0xff] %vm463_vm1, %v461_v11  ;;  %920 = vst.msk [vmem:[#allocation2 + $0x1f0] sm:$0xff] %vm463_vm1, %v888_v12  ;;  %v1285_v15 = vadd.f32 %v6027_v13, %v7545_v10  ;;  %v1711_v16 = vadd.f32 %v6079_v14, %v7545_v10 }
 0x114   :  { %v1119_v18 = vpop.f32.mrf.mxu0  ;;  %v1545_v19 = vpop.f32.mrf.mxu1 }
 0x115   :  { %1317 = vst.msk [vmem:[#allocation3 + $0x8] sm:$0xff] %vm463_vm1, %v1285_v15  ;;  %1743 = vst.msk [vmem:[#allocation3 + $0x108] sm:$0xff] %vm463_vm1, %v1711_v16  ;;  %v1284_v20 = vadd.f32 %v7545_v10, %v1119_v18  ;;  %v1710_v2 = vadd.f32 %v7545_v10, %v1545_v19 }
 0x116   :  { %v6030_v21 = vpop.f32.mrf.mxu0  ;;  %v6082_v22 = vpop.f32.mrf.mxu1 }
 0x117   :  { %1316 = vst.msk [vmem:[#allocation3] sm:$0xff] %vm463_vm1, %v1284_v20  ;;  %1742 = vst.msk [vmem:[#allocation3 + $0x100] sm:$0xff] %vm463_vm1, %v1710_v2  ;;  %v1287_v23 = vadd.f32 %v6030_v21, %v7545_v10  ;;  %v1713_v24 = vadd.f32 %v6082_v22, %v7545_v10 }
 0x118   :  { %v1129_v25 = vpop.f32.mrf.mxu0  ;;  %v1555_v26 = vpop.f32.mrf.mxu1 }
 0x119   :  { %1319 = vst.msk [vmem:[#allocation3 + $0x18] sm:$0xff] %vm463_vm1, %v1287_v23  ;;  %1745 = vst.msk [vmem:[#allocation3 + $0x118] sm:$0xff] %vm463_vm1, %v1713_v24  ;;  %v1286_v27 = vadd.f32 %v7545_v10, %v1129_v25  ;;  %v1712_v28 = vadd.f32 %v7545_v10, %v1555_v26 }
 0x11a   :  { %v6033_v29 = vpop.f32.mrf.mxu0  ;;  %v6085_v30 = vpop.f32.mrf.mxu1 }
 0x11b   :  { %1318 = vst.msk [vmem:[#allocation3 + $0x10] sm:$0xff] %vm463_vm1, %v1286_v27  ;;  %1744 = vst.msk [vmem:[#allocation3 + $0x110] sm:$0xff] %vm463_vm1, %v1712_v28  ;;  %v1289_v31 = vadd.f32 %v6033_v29, %v7545_v10  ;;  %v1715_v32 = vadd.f32 %v6085_v30, %v7545_v10 }
 0x11c   :  { %v1139_v33 = vpop.f32.mrf.mxu0  ;;  %v1565_v34 = vpop.f32.mrf.mxu1 }
 0x11d   :  { %1321 = vst.msk [vmem:[#allocation3 + $0x28] sm:$0xff] %vm463_vm1, %v1289_v31  ;;  %1747 = vst.msk [vmem:[#allocation3 + $0x128] sm:$0xff] %vm463_vm1, %v1715_v32  ;;  %v1288_v35 = vadd.f32 %v7545_v10, %v1139_v33  ;;  %v1714_v36 = vadd.f32 %v7545_v10, %v1565_v34 }
 0x11e   :  { %v6036_v37 = vpop.f32.mrf.mxu0  ;;  %v6088_v38 = vpop.f32.mrf.mxu1 }
 0x11f   :  { %1320 = vst.msk [vmem:[#allocation3 + $0x20] sm:$0xff] %vm463_vm1, %v1288_v35  ;;  %1746 = vst.msk [vmem:[#allocation3 + $0x120] sm:$0xff] %vm463_vm1, %v1714_v36  ;;  %v1291_v39 = vadd.f32 %v6036_v37, %v7545_v10  ;;  %v1717_v40 = vadd.f32 %v6088_v38, %v7545_v10 }
 0x120   :  { %v1149_v41 = vpop.f32.mrf.mxu0  ;;  %v1575_v42 = vpop.f32.mrf.mxu1 }
 0x121   :  { %1323 = vst.msk [vmem:[#allocation3 + $0x38] sm:$0xff] %vm463_vm1, %v1291_v39  ;;  %1749 = vst.msk [vmem:[#allocation3 + $0x138] sm:$0xff] %vm463_vm1, %v1717_v40  ;;  %v1290_v43 = vadd.f32 %v7545_v10, %v1149_v41  ;;  %v1716_v44 = vadd.f32 %v7545_v10, %v1575_v42 }
 0x122   :  { %v6039_v45 = vpop.f32.mrf.mxu0  ;;  %v6091_v46 = vpop.f32.mrf.mxu1 }
 0x123   :  { %1322 = vst.msk [vmem:[#allocation3 + $0x30] sm:$0xff] %vm463_vm1, %v1290_v43  ;;  %1748 = vst.msk [vmem:[#allocation3 + $0x130] sm:$0xff] %vm463_vm1, %v1716_v44  ;;  %v1293_v47 = vadd.f32 %v6039_v45, %v7545_v10  ;;  %v1719_v48 = vadd.f32 %v6091_v46, %v7545_v10 }
 0x124   :  { %v1159_v49 = vpop.f32.mrf.mxu0  ;;  %v1585_v50 = vpop.f32.mrf.mxu1 }
 0x125   :  { %1325 = vst.msk [vmem:[#allocation3 + $0x48] sm:$0xff] %vm463_vm1, %v1293_v47  ;;  %1751 = vst.msk [vmem:[#allocation3 + $0x148] sm:$0xff] %vm463_vm1, %v1719_v48  ;;  %v1292_v51 = vadd.f32 %v7545_v10, %v1159_v49  ;;  %v1718_v52 = vadd.f32 %v7545_v10, %v1585_v50 }
 0x126   :  { %v6042_v53 = vpop.f32.mrf.mxu0  ;;  %v6094_v54 = vpop.f32.mrf.mxu1 }
 0x127   :  { %1324 = vst.msk [vmem:[#allocation3 + $0x40] sm:$0xff] %vm463_vm1, %v1292_v51  ;;  %1750 = vst.msk [vmem:[#allocation3 + $0x140] sm:$0xff] %vm463_vm1, %v1718_v52  ;;  %v1295_v55 = vadd.f32 %v6042_v53, %v7545_v10  ;;  %v1721_v56 = vadd.f32 %v6094_v54, %v7545_v10 }
 0x128   :  { %v1169_v57 = vpop.f32.mrf.mxu0  ;;  %v1595_v58 = vpop.f32.mrf.mxu1 }
 0x129   :  { %1327 = vst.msk [vmem:[#allocation3 + $0x58] sm:$0xff] %vm463_vm1, %v1295_v55  ;;  %1753 = vst.msk [vmem:[#allocation3 + $0x158] sm:$0xff] %vm463_vm1, %v1721_v56  ;;  %v1294_v59 = vadd.f32 %v7545_v10, %v1169_v57  ;;  %v1720_v60 = vadd.f32 %v7545_v10, %v1595_v58 }
 0x12a   :  { %v6045_v61 = vpop.f32.mrf.mxu0  ;;  %v6097_v62 = vpop.f32.mrf.mxu1 }
 0x12b   :  { %1326 = vst.msk [vmem:[#allocation3 + $0x50] sm:$0xff] %vm463_vm1, %v1294_v59  ;;  %1752 = vst.msk [vmem:[#allocation3 + $0x150] sm:$0xff] %vm463_vm1, %v1720_v60  ;;  %v1297_v63 = vadd.f32 %v6045_v61, %v7545_v10  ;;  %v1723_v0 = vadd.f32 %v6097_v62, %v7545_v10 }
 0x12c   :  { %v1179_v1 = vpop.f32.mrf.mxu0  ;;  %v1605_v6 = vpop.f32.mrf.mxu1 }
 0x12d   :  { %1329 = vst.msk [vmem:[#allocation3 + $0x68] sm:$0xff] %vm463_vm1, %v1297_v63  ;;  %1755 = vst.msk [vmem:[#allocation3 + $0x168] sm:$0xff] %vm463_vm1, %v1723_v0  ;;  %v1296_v17 = vadd.f32 %v7545_v10, %v1179_v1  ;;  %v1722_v3 = vadd.f32 %v7545_v10, %v1605_v6 }
 0x12e   :  { %v6048_v4 = vpop.f32.mrf.mxu0  ;;  %v6100_v5 = vpop.f32.mrf.mxu1 }
 0x12f   :  { %1328 = vst.msk [vmem:[#allocation3 + $0x60] sm:$0xff] %vm463_vm1, %v1296_v17  ;;  %1754 = vst.msk [vmem:[#allocation3 + $0x160] sm:$0xff] %vm463_vm1, %v1722_v3  ;;  %v1299_v7 = vadd.f32 %v6048_v4, %v7545_v10  ;;  %v1725_v11 = vadd.f32 %v6100_v5, %v7545_v10 }
 0x130   :  { %v1189_v12 = vpop.f32.mrf.mxu0  ;;  %v1615_v13 = vpop.f32.mrf.mxu1 }
 0x131   :  { %1331 = vst.msk [vmem:[#allocation3 + $0x78] sm:$0xff] %vm463_vm1, %v1299_v7  ;;  %1757 = vst.msk [vmem:[#allocation3 + $0x178] sm:$0xff] %vm463_vm1, %v1725_v11  ;;  %v1298_v14 = vadd.f32 %v7545_v10, %v1189_v12  ;;  %v1724_v15 = vadd.f32 %v7545_v10, %v1615_v13 }
 0x132   :  { %v6051_v16 = vpop.f32.mrf.mxu0  ;;  %v6103_v18 = vpop.f32.mrf.mxu1 }
 0x133   :  { %1330 = vst.msk [vmem:[#allocation3 + $0x70] sm:$0xff] %vm463_vm1, %v1298_v14  ;;  %1756 = vst.msk [vmem:[#allocation3 + $0x170] sm:$0xff] %vm463_vm1, %v1724_v15  ;;  %v1301_v19 = vadd.f32 %v6051_v16, %v7545_v10  ;;  %v1727_v20 = vadd.f32 %v6103_v18, %v7545_v10 }
 0x134   :  { %v1199_v2 = vpop.f32.mrf.mxu0  ;;  %v1625_v21 = vpop.f32.mrf.mxu1 }
 0x135   :  { %1333 = vst.msk [vmem:[#allocation3 + $0x88] sm:$0xff] %vm463_vm1, %v1301_v19  ;;  %1759 = vst.msk [vmem:[#allocation3 + $0x188] sm:$0xff] %vm463_vm1, %v1727_v20  ;;  %v1300_v22 = vadd.f32 %v7545_v10, %v1199_v2  ;;  %v1726_v23 = vadd.f32 %v7545_v10, %v1625_v21  ;;  %v7681_v20 = vmov 0.0   ;;  %v7683_v2 = vmov 0.0  }
 0x136   :  { %v6054_v24 = vpop.f32.mrf.mxu0  ;;  %v6106_v25 = vpop.f32.mrf.mxu1 }
 0x137   :  { %1332 = vst.msk [vmem:[#allocation3 + $0x80] sm:$0xff] %vm463_vm1, %v1300_v22  ;;  %1758 = vst.msk [vmem:[#allocation3 + $0x180] sm:$0xff] %vm463_vm1, %v1726_v23  ;;  %v1303_v26 = vadd.f32 %v6054_v24, %v7545_v10  ;;  %v1729_v27 = vadd.f32 %v6106_v25, %v7545_v10 }
 0x138   :  { %v1209_v28 = vpop.f32.mrf.mxu0  ;;  %v1635_v29 = vpop.f32.mrf.mxu1 }
 0x139   :  { %1335 = vst.msk [vmem:[#allocation3 + $0x98] sm:$0xff] %vm463_vm1, %v1303_v26  ;;  %1761 = vst.msk [vmem:[#allocation3 + $0x198] sm:$0xff] %vm463_vm1, %v1729_v27  ;;  %v1302_v30 = vadd.f32 %v7545_v10, %v1209_v28  ;;  %v1728_v31 = vadd.f32 %v7545_v10, %v1635_v29 }
 0x13a   :  { %v6057_v32 = vpop.f32.mrf.mxu0  ;;  %v6109_v33 = vpop.f32.mrf.mxu1 }
 0x13b   :  { %1334 = vst.msk [vmem:[#allocation3 + $0x90] sm:$0xff] %vm463_vm1, %v1302_v30  ;;  %1760 = vst.msk [vmem:[#allocation3 + $0x190] sm:$0xff] %vm463_vm1, %v1728_v31  ;;  %v1305_v34 = vadd.f32 %v6057_v32, %v7545_v10  ;;  %v1731_v35 = vadd.f32 %v6109_v33, %v7545_v10 }
 0x13c   :  { %v1219_v36 = vpop.f32.mrf.mxu0  ;;  %v1645_v37 = vpop.f32.mrf.mxu1 }
 0x13d   :  { %1337 = vst.msk [vmem:[#allocation3 + $0xa8] sm:$0xff] %vm463_vm1, %v1305_v34  ;;  %1763 = vst.msk [vmem:[#allocation3 + $0x1a8] sm:$0xff] %vm463_vm1, %v1731_v35  ;;  %v1304_v38 = vadd.f32 %v7545_v10, %v1219_v36  ;;  %v1730_v39 = vadd.f32 %v7545_v10, %v1645_v37 }
 0x13e   :  { %v6060_v40 = vpop.f32.mrf.mxu0  ;;  %v6112_v41 = vpop.f32.mrf.mxu1 }
 0x13f   :  { %1336 = vst.msk [vmem:[#allocation3 + $0xa0] sm:$0xff] %vm463_vm1, %v1304_v38  ;;  %1762 = vst.msk [vmem:[#allocation3 + $0x1a0] sm:$0xff] %vm463_vm1, %v1730_v39  ;;  %v1307_v42 = vadd.f32 %v6060_v40, %v7545_v10  ;;  %v1733_v43 = vadd.f32 %v6112_v41, %v7545_v10 }
 0x140   :  { %v1229_v44 = vpop.f32.mrf.mxu0  ;;  %v1655_v45 = vpop.f32.mrf.mxu1 }
 0x141   :  { %1339 = vst.msk [vmem:[#allocation3 + $0xb8] sm:$0xff] %vm463_vm1, %v1307_v42  ;;  %1765 = vst.msk [vmem:[#allocation3 + $0x1b8] sm:$0xff] %vm463_vm1, %v1733_v43  ;;  %v1306_v46 = vadd.f32 %v7545_v10, %v1229_v44  ;;  %v1732_v47 = vadd.f32 %v7545_v10, %v1655_v45 }
 0x142   :  { %v6063_v48 = vpop.f32.mrf.mxu0  ;;  %v6115_v49 = vpop.f32.mrf.mxu1 }
 0x143   :  { %1338 = vst.msk [vmem:[#allocation3 + $0xb0] sm:$0xff] %vm463_vm1, %v1306_v46  ;;  %1764 = vst.msk [vmem:[#allocation3 + $0x1b0] sm:$0xff] %vm463_vm1, %v1732_v47  ;;  %v1309_v50 = vadd.f32 %v6063_v48, %v7545_v10  ;;  %v1735_v51 = vadd.f32 %v6115_v49, %v7545_v10 }
 0x144   :  { %v1239_v52 = vpop.f32.mrf.mxu0  ;;  %v1665_v53 = vpop.f32.mrf.mxu1 }
 0x145   :  { %1341 = vst.msk [vmem:[#allocation3 + $0xc8] sm:$0xff] %vm463_vm1, %v1309_v50  ;;  %1767 = vst.msk [vmem:[#allocation3 + $0x1c8] sm:$0xff] %vm463_vm1, %v1735_v51  ;;  %v1308_v54 = vadd.f32 %v7545_v10, %v1239_v52  ;;  %v1734_v55 = vadd.f32 %v7545_v10, %v1665_v53 }
 0x146   :  { %v6066_v56 = vpop.f32.mrf.mxu0  ;;  %v6118_v57 = vpop.f32.mrf.mxu1 }
 0x147   :  { %1340 = vst.msk [vmem:[#allocation3 + $0xc0] sm:$0xff] %vm463_vm1, %v1308_v54  ;;  %1766 = vst.msk [vmem:[#allocation3 + $0x1c0] sm:$0xff] %vm463_vm1, %v1734_v55  ;;  %v1311_v58 = vadd.f32 %v6066_v56, %v7545_v10  ;;  %v1737_v59 = vadd.f32 %v6118_v57, %v7545_v10 }
 0x148   :  { %v1249_v60 = vpop.f32.mrf.mxu0  ;;  %v1675_v61 = vpop.f32.mrf.mxu1 }
 0x149   :  { %1343 = vst.msk [vmem:[#allocation3 + $0xd8] sm:$0xff] %vm463_vm1, %v1311_v58  ;;  %1769 = vst.msk [vmem:[#allocation3 + $0x1d8] sm:$0xff] %vm463_vm1, %v1737_v59  ;;  %v1310_v62 = vadd.f32 %v7545_v10, %v1249_v60  ;;  %v1736_v63 = vadd.f32 %v7545_v10, %v1675_v61 }
 0x14a   :  { %v6069_v0 = vpop.f32.mrf.mxu0  ;;  %v6121_v1 = vpop.f32.mrf.mxu1 }
 0x14b   :  { %1342 = vst.msk [vmem:[#allocation3 + $0xd0] sm:$0xff] %vm463_vm1, %v1310_v62  ;;  %1768 = vst.msk [vmem:[#allocation3 + $0x1d0] sm:$0xff] %vm463_vm1, %v1736_v63  ;;  %v1313_v6 = vadd.f32 %v6069_v0, %v7545_v10  ;;  %v1739_v17 = vadd.f32 %v6121_v1, %v7545_v10 }
 0x14c   :  { %v1259_v3 = vpop.f32.mrf.mxu0  ;;  %v1685_v4 = vpop.f32.mrf.mxu1 }
 0x14d   :  { %1345 = vst.msk [vmem:[#allocation3 + $0xe8] sm:$0xff] %vm463_vm1, %v1313_v6  ;;  %1771 = vst.msk [vmem:[#allocation3 + $0x1e8] sm:$0xff] %vm463_vm1, %v1739_v17  ;;  %v1312_v5 = vadd.f32 %v7545_v10, %v1259_v3  ;;  %v1738_v7 = vadd.f32 %v7545_v10, %v1685_v4 }
 0x14e   :  { %v6072_v11 = vpop.f32.mrf.mxu0  ;;  %v6124_v12 = vpop.f32.mrf.mxu1 }
 0x14f   :  { %1344 = vst.msk [vmem:[#allocation3 + $0xe0] sm:$0xff] %vm463_vm1, %v1312_v5  ;;  %1770 = vst.msk [vmem:[#allocation3 + $0x1e0] sm:$0xff] %vm463_vm1, %v1738_v7  ;;  %v1315_v13 = vadd.f32 %v6072_v11, %v7545_v10  ;;  %v1741_v14 = vadd.f32 %v6124_v12, %v7545_v10 }
 0x150   :  { %v1269_v15 = vpop.f32.mrf.mxu0  ;;  %v1695_v16 = vpop.f32.mrf.mxu1 }
 0x151   :  { %1347 = vst.msk [vmem:[#allocation3 + $0xf8] sm:$0xff] %vm463_vm1, %v1315_v13  ;;  %1773 = vst.msk [vmem:[#allocation3 + $0x1f8] sm:$0xff] %vm463_vm1, %v1741_v14  ;;  %v1314_v18 = vadd.f32 %v7545_v10, %v1269_v15  ;;  %v1740_v19 = vadd.f32 %v7545_v10, %v1695_v16 }
 0x153   :  { %1346 = vst.msk [vmem:[#allocation3 + $0xf0] sm:$0xff] %vm463_vm1, %v1314_v18  ;;  %1772 = vst.msk [vmem:[#allocation3 + $0x1f0] sm:$0xff] %vm463_vm1, %v1740_v19 }
 0x154 LB: > { %s8460_s25 = sld [smem:[#allocation8_spill]]  ;;  %v6695_v21 = vmov 0.0   ;;  %s6696_s1 = smov 96   ;;  %vm6697_vm2 = vmmov 0   ;;  %vm1807_vm3 = vcmask 261120   ;;  %s6685_s4 = sphi %s7685_s4, %s1793_s4   ;;  %v6681_v2 = vphi %v7683_v2, %v2658_v2   ;;  %v6677_v20 = vphi %v7681_v20, %v2686_v20  }
 0x155   : > { %6125 = vmatprep.subr.mxu0 %v6695_v21  ;;  %6136 = vmatprep.subr.mxu1 %v6695_v21  ;;  %s8461_s29 = sld [smem:[#allocation9_spill]]  ;;  %s6698_s7 = smov 64  }
 0x156   : > { %1805 = vrot.lane.b32.xlu0 %v6681_v2, %s6696_s1  ;;  %6133 = vmatprep.mubr.msk.f32.mxu0 %vm6697_vm2, %v6695_v21  ;;  %s7789_s8 = sshll.u32 %s6685_s4, 2  ;;  %s5352_s6 = sshll.u32 %s6685_s4, 5 }
 0x157   : > { %6144 = vmatprep.mubr.msk.f32.mxu1 %vm6697_vm2, %v6695_v21  ;;  %s1798_s26 = ssub.s32 63, %s7789_s8  ;;  %s7797_s9 = scalar_lea.vmem [#allocation2], %s5352_s6 }
 0x158   : > { %s7793_s27 = sshll.u32 %s1798_s26, 3  ;;  %v1960_v37 = vld [vmem:[%s7797_s9] sm:$0xff]  ;;  %s7817_s10 = scalar_lea.vmem [#allocation4], %s5352_s6  ;;  %v5363_v16 = vld [vmem:[%s7797_s9 + $0x8] sm:$0xff] }
 0x159   : > { %s1987_s28 = scalar_lea.vmem [#allocation3], %s7793_s27  ;;  %s2025_s30 = scalar_lea.vmem [#allocation5], %s7793_s27 }
 0x15a   : > { %v7699_v10 = vld [vmem:[%s8460_s25 + $0x18] sm:$0xff]  ;;  %v7705_v22 = vld [vmem:[%s8460_s25 + $0x10] sm:$0xff]  ;;  %v7720_v24 = vld [vmem:[%s8460_s25 + $0x8] sm:$0xff]  ;;  %1885 = vrot.lane.b32.xlu0 %v6677_v20, %s6696_s1  ;;  %s2029_s11 = ssub.s32 62, %s7789_s8  ;;  %s2253_s23 = ssub.s32 61, %s7789_s8 }
 0x15b   : > { %v7711_v23 = vld [vmem:[%s8461_s29 + $0x18] sm:$0xff]  ;;  %6126 = vmatpush3.msra.mxu0 %v7699_v10  ;;  %v7728_v25 = vld [vmem:[%s8461_s29 + $0x10] sm:$0xff]  ;;  %v7734_v26 = vld [vmem:[%s8460_s25] sm:$0xff]  ;;  %s7850_s0 = sshll.u32 %s2029_s11, 3  ;;  %s7897_s5 = sshll.u32 %s2253_s23, 3 }
 0x15c   : > { %6127 = vmatprep.subr.mxu0 %v6695_v21  ;;  %6137 = vmatpush3.msra.mxu1 %v7711_v23  ;;  %v7744_v27 = vld [vmem:[%s8461_s29 + $0x8] sm:$0xff]  ;;  %v7753_v28 = vld [vmem:[%s8461_s29] sm:$0xff]  ;;  %s2211_s2 = scalar_lea.vmem [#allocation3], %s7850_s0  ;;  %s2249_s22 = scalar_lea.vmem [#allocation5], %s7850_s0 }
 0x15d   : > { %6128 = vmatpush3.msra.mxu0 %v7705_v22  ;;  %6138 = vmatprep.subr.mxu1 %v6695_v21  ;;  %v1988_v39 = vld [vmem:[%s1987_s28] sm:$0xff]  ;;  %s2435_s24 = scalar_lea.vmem [#allocation3], %s7897_s5  ;;  %s2473_s3 = scalar_lea.vmem [#allocation5], %s7897_s5 }
 0x15e   : > { %6129 = vmatprep.subr.mxu0 %v6695_v21  ;;  %6139 = vmatpush3.msra.mxu1 %v7728_v25  ;;  %v2212_v19 = vld [vmem:[%s2211_s2] sm:$0xff]  ;;  %s2477_s6 = ssub.s32 60, %s7789_s8  ;;  %s1793_s4 = sadd.s32 1, %s6685_s4  }
 0x15f   : > { %6130 = vmatpush3.msra.mxu0 %v7720_v24  ;;  %6140 = vmatprep.subr.mxu1 %v6695_v21  ;;  %s7920_s26 = sshll.u32 %s2477_s6, 3  ;;  %p1790_p0 = scmp.ge.s32.totalorder %s1793_s4, 16  }
 0x160   : > { %6131 = vmatprep.subr.mxu0 %v6695_v21  ;;  %6141 = vmatpush3.msra.mxu1 %v7744_v27  ;;  %s2659_s27 = scalar_lea.vmem [#allocation3], %s7920_s26 }
 0x161   : > { %6132 = vmatpush3.msra.mxu0 %v7734_v26  ;;  %6142 = vmatprep.subr.mxu1 %v6695_v21 }
 0x162   : > { %6147 = vmatprep.subr.mxu0 %v6695_v21  ;;  %6143 = vmatpush3.msra.mxu1 %v7753_v28 }
 0x163   : > { %6158 = vmatprep.subr.mxu1 %v6695_v21 }
 0x1c8   : > { %v1806_v29 = vpop.permute.xlu0 %1805 }
 0x1c9   : > { %6134 = vmatmul.mubr.msk.f32.vlgmr.msra.gmra.mxu0 %vm1807_vm3, %v1806_v29 }
 0x1ca   : > { %6148 = vmatpush3.msra.mxu0 %v7699_v10  ;;  %6155 = vmatprep.mubr.msk.f32.mxu0 %vm6697_vm2, %v6695_v21 }
 0x1cb   : > { %6149 = vmatprep.subr.mxu0 %v6695_v21 }
 0x1cc   : > { %v1886_v30 = vpop.permute.xlu0 %1885  ;;  %6150 = vmatpush3.msra.mxu0 %v7705_v22 }
 0x1cd   : > { %6145 = vmatmul.mubr.msk.f32.vlgmr.msra.gmra.mxu1 %vm1807_vm3, %v1886_v30  ;;  %6151 = vmatprep.subr.mxu0 %v6695_v21 }
 0x1ce   : > { %6152 = vmatpush3.msra.mxu0 %v7720_v24  ;;  %6159 = vmatpush3.msra.mxu1 %v7711_v23 }
 0x1cf   : > { %6153 = vmatprep.subr.mxu0 %v6695_v21  ;;  %6160 = vmatprep.subr.mxu1 %v6695_v21 }
 0x1d0   : > { %6154 = vmatpush3.msra.mxu0 %v7734_v26  ;;  %6161 = vmatpush3.msra.mxu1 %v7728_v25 }
 0x1d1   : > { %6162 = vmatprep.subr.mxu1 %v6695_v21  ;;  %6166 = vmatprep.mubr.msk.f32.mxu1 %vm6697_vm2, %v6695_v21 }
 0x1d2   : > { %6163 = vmatpush3.msra.mxu1 %v7744_v27  ;;  %6169 = vmatprep.subr.mxu0 %v6695_v21 }
 0x1d3   : > { %6164 = vmatprep.subr.mxu1 %v6695_v21 }
 0x1d4   : > { %6165 = vmatpush3.msra.mxu1 %v7753_v28 }
 0x1d5   : > { %6180 = vmatprep.subr.mxu1 %v6695_v21 }
 0x289   : > { %v1876_v31 = vpop.f32.mrf.mxu0 }
 0x28a   : > { %v1877_v32 = vadd.f32 %v7415_v8, %v1876_v31 }
 0x28b   : > { %v6135_v33 = vpop.f32.mrf.mxu0 }
 0x28c   : > { %1969 = vrot.lane.b32.xlu1 %v1877_v32, %s6698_s7  ;;  %v1961_v38 = vadd.f32 %v1960_v37, %v1877_v32 }
 0x28d   : > { %v1955_v34 = vpop.f32.mrf.mxu1 }
 0x28e   : > { %v1956_v35 = vadd.f32 %v7420_v9, %v1955_v34  ;;  %v5356_v40 = vmul.f32 -1.442695, %v1961_v38 }
 0x28f   : > { %v6146_v36 = vpop.f32.mrf.mxu1 }
 0x290   : > { %1997 = vrot.lane.b32.xlu1 %v1956_v35, %s6698_s7  ;;  %v1989_v41 = vadd.f32 %v1988_v39, %v1956_v35  ;;  %6577 = vpow2.f32 %v5356_v40 }
 0x292   : > { %v5357_v42 = vmul.f32 -1.442695, %v1989_v41 }
 0x294   : > { %6579 = vpow2.f32 %v5357_v42 }
 0x29d   : > { %v6578_v43 = vpop.eup %6577 }
 0x29e   : > { %v1965_v44 = vadd.f32 1.0, %v6578_v43 }
 0x2a0   : > { %6581 = vrcp.f32 %v1965_v44 }
 0x2a1   : > { %v6580_v45 = vpop.eup %6579 }
 0x2a2   : > { %v1993_v46 = vadd.f32 1.0, %v6580_v45 }
 0x2a4   : > { %6583 = vrcp.f32 %v1993_v46 }
 0x2ad   : > { %v6582_v47 = vpop.eup %6581 }
 0x2ae   : > { %v1979_v59 = vsub.f32 1.0, %v6582_v47  ;;  %v1985_v61 = vmul.f32 %v6681_v2, %v6582_v47 }
 0x2b1   : > { %v6584_v50 = vpop.eup %6583 }
 0x2b2   : > { %v2007_v0 = vsub.f32 1.0, %v6584_v50  ;;  %v2013_v6 = vmul.f32 %v6677_v20, %v6584_v50 }
 0x2fe   : > { %v1970_v48 = vpop.permute.xlu1 %1969 }
 0x2ff   : > { %v1972_v49 = vmul.f32 %v6582_v47, %v1970_v48 }
 0x301   : > { %1974 = vrot.lane.b32.xlu0 %v1972_v49, %s6698_s7 }
 0x302   : > { %v1998_v51 = vpop.permute.xlu1 %1997 }
 0x303   : > { %v2000_v52 = vmul.f32 %v6584_v50, %v1998_v51 }
 0x305   : > { %2002 = vrot.lane.b32.xlu1 %v2000_v52, %s6698_s7 }
 0x373   : > { %v1975_v53 = vpop.permute.xlu0 %1974 }
 0x374   : > { %v1977_v54 = vadd.f32 %v1975_v53, %v1960_v37 }
 0x376   : > { %6585 = vtanh.f32 %v1977_v54 }
 0x377   : > { %v2003_v55 = vpop.permute.xlu1 %2002 }
 0x378   : > { %v2005_v56 = vadd.f32 %v2003_v55, %v1988_v39 }
 0x37a   : > { %6587 = vtanh.f32 %v2005_v56 }
 0x383   : > { %v6586_v57 = vpop.eup %6585 }
 0x384   : > { %1981 = vrot.lane.b32.xlu0 %v6586_v57, %s6696_s1 }
 0x387   : > { %v6588_v58 = vpop.eup %6587 }
 0x388   : > { %2009 = vrot.lane.b32.xlu1 %v6588_v58, %s6696_s1 }
 0x3f6   : > { %v1982_v60 = vpop.permute.xlu0 %1981 }
 0x3f7   : > { %v1984_v62 = vmul.f32 %v1982_v60, %v1979_v59 }
 0x3f9   : > { %v7806_v63 = vadd.f32 %v1985_v61, %v1984_v62 }
 0x3fa   : > { %v2010_v1 = vpop.permute.xlu1 %2009 }
 0x3fb   : > { %v2012_v17 = vmul.f32 %v2010_v1, %v2007_v0  ;;  %2016 = vrot.lane.b32.xlu0 %v7806_v63, %s6696_s1 }
 0x3fd   : > { %v7811_v3 = vadd.f32 %v2013_v6, %v2012_v17 }
 0x3ff   : > { %2022 = vrot.lane.b32.xlu1 %v7811_v3, %s6696_s1 }
 0x46d   : > { %v2017_v4 = vpop.permute.xlu0 %2016 }
 0x46e   : > { %2020 = vst.msk [vmem:[%s7817_s10] sm:$0xff] %vm1807_vm3, %v2017_v4  ;;  %6156 = vmatmul.mubr.msk.f32.vlgmr.msra.gmra.mxu0 %vm1807_vm3, %v2017_v4 }
 0x46f   : > { %6170 = vmatpush3.msra.mxu0 %v7699_v10  ;;  %6177 = vmatprep.mubr.msk.f32.mxu0 %vm6697_vm2, %v6695_v21 }
 0x470   : > { %6171 = vmatprep.subr.mxu0 %v6695_v21 }
 0x471   : > { %v2023_v5 = vpop.permute.xlu1 %2022  ;;  %6172 = vmatpush3.msra.mxu0 %v7705_v22 }
 0x472   : > { %2026 = vst.msk [vmem:[%s2025_s30] sm:$0xff] %vm1807_vm3, %v2023_v5  ;;  %6167 = vmatmul.mubr.msk.f32.vlgmr.msra.gmra.mxu1 %vm1807_vm3, %v2023_v5  ;;  %6173 = vmatprep.subr.mxu0 %v6695_v21  ;;  %s8463_s30 = sld [smem:[#allocation11_spill]] (%p1790_p0) }
 0x473   : > { %6174 = vmatpush3.msra.mxu0 %v7720_v24  ;;  %6181 = vmatpush3.msra.mxu1 %v7711_v23 }
 0x474   : > { %6175 = vmatprep.subr.mxu0 %v6695_v21  ;;  %6182 = vmatprep.subr.mxu1 %v6695_v21 }
 0x475   : > { %6176 = vmatpush3.msra.mxu0 %v7734_v26  ;;  %6183 = vmatpush3.msra.mxu1 %v7728_v25 }
 0x476   : > { %6184 = vmatprep.subr.mxu1 %v6695_v21  ;;  %6188 = vmatprep.mubr.msk.f32.mxu1 %vm6697_vm2, %v6695_v21 }
 0x477   : > { %6185 = vmatpush3.msra.mxu1 %v7744_v27  ;;  %6191 = vmatprep.subr.mxu0 %v6695_v21 }
 0x478   : > { %6186 = vmatprep.subr.mxu1 %v6695_v21 }
 0x479   : > { %6187 = vmatpush3.msra.mxu1 %v7753_v28 }
 0x47a   : > { %6202 = vmatprep.subr.mxu1 %v6695_v21 }
 0x52e   : > { %v2103_v7 = vpop.f32.mrf.mxu0 }
 0x52f   : > { %v2104_v11 = vadd.f32 %v7415_v8, %v2103_v7 }
 0x530   : > { %v6157_v12 = vpop.f32.mrf.mxu0 }
 0x531   : > { %2193 = vrot.lane.b32.xlu0 %v2104_v11, %s6698_s7  ;;  %v2185_v18 = vadd.f32 %v5363_v16, %v2104_v11 }
 0x532   : > { %v2179_v13 = vpop.f32.mrf.mxu1 }
 0x533   : > { %v2180_v14 = vadd.f32 %v7420_v9, %v2179_v13  ;;  %v5364_v20 = vmul.f32 -1.442695, %v2185_v18 }
 0x534   : > { %v6168_v15 = vpop.f32.mrf.mxu1 }
 0x535   : > { %2221 = vrot.lane.b32.xlu1 %v2180_v14, %s6698_s7  ;;  %v2213_v2 = vadd.f32 %v2212_v19, %v2180_v14  ;;  %6589 = vpow2.f32 %v5364_v20 }
 0x537   : > { %v5365_v29 = vmul.f32 -1.442695, %v2213_v2 }
 0x539   : > { %6591 = vpow2.f32 %v5365_v29 }
 0x542   : > { %v6590_v30 = vpop.eup %6589 }
 0x543   : > { %v2189_v31 = vadd.f32 1.0, %v6590_v30 }
 0x545   : > { %6593 = vrcp.f32 %v2189_v31 }
 0x546   : > { %v6592_v32 = vpop.eup %6591 }
 0x547   : > { %v2217_v33 = vadd.f32 1.0, %v6592_v32 }
 0x549   : > { %6595 = vrcp.f32 %v2217_v33 }
 0x552   : > { %v6594_v34 = vpop.eup %6593 }
 0x553   : > { %v2203_v46 = vsub.f32 1.0, %v6594_v34  ;;  %v2209_v48 = vmul.f32 %v6594_v34, %v7806_v63 }
 0x556   : > { %v6596_v37 = vpop.eup %6595 }
 0x557   : > { %v2231_v51 = vsub.f32 1.0, %v6596_v37  ;;  %v2237_v53 = vmul.f32 %v6596_v37, %v7811_v3 }
 0x5a3   : > { %v2194_v35 = vpop.permute.xlu0 %2193 }
 0x5a4   : > { %v2196_v36 = vmul.f32 %v6594_v34, %v2194_v35 }
 0x5a6   : > { %2198 = vrot.lane.b32.xlu0 %v2196_v36, %s6698_s7 }
 0x5a7   : > { %v2222_v38 = vpop.permute.xlu1 %2221 }
 0x5a8   : > { %v2224_v39 = vmul.f32 %v6596_v37, %v2222_v38 }
 0x5aa   : > { %2226 = vrot.lane.b32.xlu1 %v2224_v39, %s6698_s7 }
 0x618   : > { %v2199_v40 = vpop.permute.xlu0 %2198 }
 0x619   : > { %v2201_v41 = vadd.f32 %v5363_v16, %v2199_v40 }
 0x61b   : > { %6597 = vtanh.f32 %v2201_v41 }
 0x61c   : > { %v2227_v42 = vpop.permute.xlu1 %2226 }
 0x61d   : > { %v2229_v43 = vadd.f32 %v2227_v42, %v2212_v19  ;;  %v5385_v42 = vld [vmem:[%s7797_s9 + $0x18] sm:$0xff] }
 0x61f   : > { %6599 = vtanh.f32 %v2229_v43 }
 0x628   : > { %v6598_v44 = vpop.eup %6597 }
 0x629   : > { %2205 = vrot.lane.b32.xlu0 %v6598_v44, %s6696_s1  ;;  %v2660_v44 = vld [vmem:[%s2659_s27] sm:$0xff] }
 0x62c   : > { %v6600_v45 = vpop.eup %6599 }
 0x62d   : > { %2233 = vrot.lane.b32.xlu1 %v6600_v45, %s6696_s1 }
 0x69b   : > { %v2206_v47 = vpop.permute.xlu0 %2205 }
 0x69c   : > { %v2208_v49 = vmul.f32 %v2206_v47, %v2203_v46 }
 0x69e   : > { %v7859_v50 = vadd.f32 %v2209_v48, %v2208_v49 }
 0x69f   : > { %v2234_v52 = vpop.permute.xlu1 %2233 }
 0x6a0   : > { %v2236_v54 = vmul.f32 %v2234_v52, %v2231_v51  ;;  %2240 = vrot.lane.b32.xlu0 %v7859_v50, %s6696_s1 }
 0x6a2   : > { %v7864_v55 = vadd.f32 %v2237_v53, %v2236_v54 }
 0x6a4   : > { %2246 = vrot.lane.b32.xlu1 %v7864_v55, %s6696_s1 }
 0x712   : > { %v2241_v56 = vpop.permute.xlu0 %2240 }
 0x713   : > { %5368 = vst.msk [vmem:[%s7817_s10 + $0x8] sm:$0xff] %vm1807_vm3, %v2241_v56  ;;  %6178 = vmatmul.mubr.msk.f32.vlgmr.msra.gmra.mxu0 %vm1807_vm3, %v2241_v56 }
 0x714   : > { %6192 = vmatpush3.msra.mxu0 %v7699_v10  ;;  %6199 = vmatprep.mubr.msk.f32.mxu0 %vm6697_vm2, %v6695_v21 }
 0x715   : > { %6193 = vmatprep.subr.mxu0 %v6695_v21 }
 0x716   : > { %v2247_v57 = vpop.permute.xlu1 %2246  ;;  %6194 = vmatpush3.msra.mxu0 %v7705_v22 }
 0x717   : > { %2250 = vst.msk [vmem:[%s2249_s22] sm:$0xff] %vm1807_vm3, %v2247_v57  ;;  %6189 = vmatmul.mubr.msk.f32.vlgmr.msra.gmra.mxu1 %vm1807_vm3, %v2247_v57  ;;  %6195 = vmatprep.subr.mxu0 %v6695_v21 }
 0x718   : > { %6196 = vmatpush3.msra.mxu0 %v7720_v24  ;;  %6203 = vmatpush3.msra.mxu1 %v7711_v23 }
 0x719   : > { %6197 = vmatprep.subr.mxu0 %v6695_v21  ;;  %6204 = vmatprep.subr.mxu1 %v6695_v21 }
 0x71a   : > { %6198 = vmatpush3.msra.mxu0 %v7734_v26  ;;  %6205 = vmatpush3.msra.mxu1 %v7728_v25 }
 0x71b   : > { %6206 = vmatprep.subr.mxu1 %v6695_v21  ;;  %6210 = vmatprep.mubr.msk.f32.mxu1 %vm6697_vm2, %v6695_v21 }
 0x71c   : > { %6207 = vmatpush3.msra.mxu1 %v7744_v27  ;;  %v5374_v27 = vld [vmem:[%s7797_s9 + $0x10] sm:$0xff] }
 0x71d   : > { %6208 = vmatprep.subr.mxu1 %v6695_v21 }
 0x71e   : > { %6209 = vmatpush3.msra.mxu1 %v7753_v28  ;;  %v2436_v28 = vld [vmem:[%s2435_s24] sm:$0xff] }
 0x7d3   : > { %v2327_v10 = vpop.f32.mrf.mxu0 }
 0x7d4   : > { %v2328_v22 = vadd.f32 %v7415_v8, %v2327_v10 }
 0x7d5   : > { %v6179_v23 = vpop.f32.mrf.mxu0 }
 0x7d6   : > { %2417 = vrot.lane.b32.xlu0 %v2328_v22, %s6698_s7  ;;  %v2409_v21 = vadd.f32 %v5374_v27, %v2328_v22 }
 0x7d7   : > { %v2403_v24 = vpop.f32.mrf.mxu1 }
 0x7d8   : > { %v2404_v25 = vadd.f32 %v7420_v9, %v2403_v24  ;;  %v5375_v58 = vmul.f32 -1.442695, %v2409_v21 }
 0x7d9   : > { %v6190_v26 = vpop.f32.mrf.mxu1 }
 0x7da   : > { %2445 = vrot.lane.b32.xlu1 %v2404_v25, %s6698_s7  ;;  %v2437_v59 = vadd.f32 %v2436_v28, %v2404_v25  ;;  %6601 = vpow2.f32 %v5375_v58 }
 0x7dc   : > { %v5376_v60 = vmul.f32 -1.442695, %v2437_v59 }
 0x7de   : > { %6603 = vpow2.f32 %v5376_v60 }
 0x7e7   : > { %v6602_v61 = vpop.eup %6601 }
 0x7e8   : > { %v2413_v62 = vadd.f32 1.0, %v6602_v61 }
 0x7ea   : > { %6605 = vrcp.f32 %v2413_v62 }
 0x7eb   : > { %v6604_v63 = vpop.eup %6603 }
 0x7ec   : > { %v2441_v0 = vadd.f32 1.0, %v6604_v63 }
 0x7ee   : > { %6607 = vrcp.f32 %v2441_v0 }
 0x7f7   : > { %v6606_v1 = vpop.eup %6605 }
 0x7f8   : > { %v2427_v16 = vsub.f32 1.0, %v6606_v1  ;;  %v2433_v19 = vmul.f32 %v6606_v1, %v7859_v50 }
 0x7fb   : > { %v6608_v3 = vpop.eup %6607 }
 0x7fc   : > { %v2455_v29 = vsub.f32 1.0, %v6608_v3  ;;  %v2461_v31 = vmul.f32 %v6608_v3, %v7864_v55 }
 0x848   : > { %v2418_v6 = vpop.permute.xlu0 %2417 }
 0x849   : > { %v2420_v17 = vmul.f32 %v6606_v1, %v2418_v6  ;;  %v3131_v6 = vld [vmem:[%s8463_s30 + $0x18] sm:$0xff] (%p1790_p0) }
 0x84a   :  { %6269 = vmatprep.subr.mxu1 (%p1790_p0), %v3131_v6 }
 0x84b   : > { %2422 = vrot.lane.b32.xlu0 %v2420_v17, %s6698_s7 }
 0x84c   : > { %v2446_v4 = vpop.permute.xlu1 %2445 }
 0x84d   : > { %v2448_v5 = vmul.f32 %v6608_v3, %v2446_v4  ;;  %v3130_v3 = vld [vmem:[%s8463_s30 + $0x10] sm:$0xff] (%p1790_p0) }
 0x84f   : > { %2450 = vrot.lane.b32.xlu1 %v2448_v5, %s6698_s7 }
 0x8bd   : > { %v2423_v7 = vpop.permute.xlu0 %2422 }
 0x8be   : > { %v2425_v11 = vadd.f32 %v5374_v27, %v2423_v7  ;;  %v7965_v7 = vld [vmem:[%s8463_s30] sm:$0xff] (%p1790_p0) }
 0x8c0   : > { %6609 = vtanh.f32 %v2425_v11 }
 0x8c1   : > { %v2451_v12 = vpop.permute.xlu1 %2450 }
 0x8c2   : > { %v2453_v13 = vadd.f32 %v2451_v12, %v2436_v28 }
 0x8c4   : > { %6611 = vtanh.f32 %v2453_v13 }
 0x8cd   : > { %v6610_v14 = vpop.eup %6609 }
 0x8ce   : > { %2429 = vrot.lane.b32.xlu0 %v6610_v14, %s6696_s1 }
 0x8d1   : > { %v6612_v15 = vpop.eup %6611 }
 0x8d2   : > { %2457 = vrot.lane.b32.xlu1 %v6612_v15, %s6696_s1 }
 0x940   : > { %v2430_v18 = vpop.permute.xlu0 %2429 }
 0x941   : > { %v2432_v20 = vmul.f32 %v2430_v18, %v2427_v16 }
 0x943   : > { %v2434_v2 = vadd.f32 %v2433_v19, %v2432_v20 }
 0x944   : > { %v2458_v30 = vpop.permute.xlu1 %2457 }
 0x945   : > { %v2460_v32 = vmul.f32 %v2458_v30, %v2455_v29  ;;  %2464 = vrot.lane.b32.xlu0 %v2434_v2, %s6696_s1 }
 0x947   : > { %v2462_v33 = vadd.f32 %v2461_v31, %v2460_v32 }
 0x949   : > { %2470 = vrot.lane.b32.xlu1 %v2462_v33, %s6696_s1 }
 0x9b7   : > { %v2465_v34 = vpop.permute.xlu0 %2464 }
 0x9b8   : > { %5379 = vst.msk [vmem:[%s7817_s10 + $0x10] sm:$0xff] %vm1807_vm3, %v2465_v34  ;;  %6200 = vmatmul.mubr.msk.f32.vlgmr.msra.gmra.mxu0 %vm1807_vm3, %v2465_v34 }
 0x9bb   : > { %v2471_v35 = vpop.permute.xlu1 %2470 }
 0x9bc   : > { %2474 = vst.msk [vmem:[%s2473_s3] sm:$0xff] %vm1807_vm3, %v2471_v35  ;;  %6211 = vmatmul.mubr.msk.f32.vlgmr.msra.gmra.mxu1 %vm1807_vm3, %v2471_v35 }
 0x9bd   :  { %6270 = vmatpush3.msra.mxu1 (%p1790_p0), %v3131_v6 }
 0x9be   :  { %6271 = vmatprep.subr.mxu1 (%p1790_p0), %v3130_v3 }
 0x9bf   :  { %6272 = vmatpush3.msra.mxu1 (%p1790_p0), %v3130_v3 }
 0xa78   : > { %v2551_v36 = vpop.f32.mrf.mxu0 }
 0xa79   : > { %v2552_v37 = vadd.f32 %v7415_v8, %v2551_v36 }
 0xa7a   : > { %v6201_v38 = vpop.f32.mrf.mxu0 }
 0xa7b   : > { %2641 = vrot.lane.b32.xlu0 %v2552_v37, %s6698_s7  ;;  %v2633_v43 = vadd.f32 %v5385_v42, %v2552_v37 }
 0xa7c   : > { %v2627_v39 = vpop.f32.mrf.mxu1 }
 0xa7d   : > { %v2628_v40 = vadd.f32 %v7420_v9, %v2627_v39  ;;  %v5386_v45 = vmul.f32 -1.442695, %v2633_v43  ;;  %v3129_v9 = vld [vmem:[%s8463_s30 + $0x8] sm:$0xff] (%p1790_p0) }
 0xa7e   : > { %v6212_v41 = vpop.f32.mrf.mxu1  ;;  %6273 = vmatprep.subr.mxu1 (%p1790_p0), %v3129_v9 }
 0xa7f   : > { %2669 = vrot.lane.b32.xlu1 %v2628_v40, %s6698_s7  ;;  %v2661_v46 = vadd.f32 %v2660_v44, %v2628_v40  ;;  %6613 = vpow2.f32 %v5386_v45  ;;  %6274 = vmatpush3.msra.mxu1 (%p1790_p0), %v3129_v9 }
 0xa80   :  { %6275 = vmatprep.subr.mxu1 (%p1790_p0), %v7965_v7 }
 0xa81   : > { %v5387_v47 = vmul.f32 -1.442695, %v2661_v46  ;;  %6276 = vmatpush3.msra.mxu1 (%p1790_p0), %v7965_v7 }
 0xa82   :  { %6381 = vmatprep.subr.mxu1 (%p1790_p0), %v3131_v6 }
 0xa83   : > { %6615 = vpow2.f32 %v5387_v47 }
 0xa8c   : > { %v6614_v48 = vpop.eup %6613 }
 0xa8d   : > { %v2637_v49 = vadd.f32 1.0, %v6614_v48 }
 0xa8f   : > { %6617 = vrcp.f32 %v2637_v49 }
 0xa90   : > { %v6616_v50 = vpop.eup %6615 }
 0xa91   : > { %v2665_v51 = vadd.f32 1.0, %v6616_v50 }
 0xa93   : > { %6619 = vrcp.f32 %v2665_v51 }
 0xa9c   : > { %v6618_v52 = vpop.eup %6617 }
 0xa9d   : > { %v2651_v27 = vsub.f32 1.0, %v6618_v52  ;;  %v2657_v28 = vmul.f32 %v6618_v52, %v2434_v2 }
 0xaa0   : > { %v6620_v55 = vpop.eup %6619 }
 0xaa1   : > { %v2679_v59 = vsub.f32 1.0, %v6620_v55  ;;  %v2685_v61 = vmul.f32 %v6620_v55, %v2462_v33 }
 0xaed   : > { %v2642_v53 = vpop.permute.xlu0 %2641 }
 0xaee   : > { %v2644_v54 = vmul.f32 %v6618_v52, %v2642_v53 }
 0xaf0   : > { %2646 = vrot.lane.b32.xlu0 %v2644_v54, %s6698_s7 }
 0xaf1   : > { %v2670_v56 = vpop.permute.xlu1 %2669 }
 0xaf2   : > { %v2672_v57 = vmul.f32 %v6620_v55, %v2670_v56 }
 0xaf4   : > { %2674 = vrot.lane.b32.xlu1 %v2672_v57, %s6698_s7  ;;  %s2697_s7 = scalar_lea.vmem [#allocation5], %s7920_s26 }
 0xb62   : > { %v2647_v10 = vpop.permute.xlu0 %2646 }
 0xb63   : > { %v2649_v22 = vadd.f32 %v5385_v42, %v2647_v10 }
 0xb65   : > { %6621 = vtanh.f32 %v2649_v22 }
 0xb66   : > { %v2675_v23 = vpop.permute.xlu1 %2674 }
 0xb67   : > { %v2677_v24 = vadd.f32 %v2675_v23, %v2660_v44 }
 0xb69   : > { %6623 = vtanh.f32 %v2677_v24 }
 0xb72   : > { %v6622_v25 = vpop.eup %6621 }
 0xb73   : > { %2653 = vrot.lane.b32.xlu0 %v6622_v25, %s6696_s1 }
 0xb76   : > { %v6624_v26 = vpop.eup %6623 }
 0xb77   : > { %2681 = vrot.lane.b32.xlu1 %v6624_v26, %s6696_s1 }
 0xbe5   : > { %v2654_v21 = vpop.permute.xlu0 %2653 }
 0xbe6   : > { %v2656_v58 = vmul.f32 %v2654_v21, %v2651_v27 }
 0xbe8   : > { %v2658_v2 = vadd.f32 %v2657_v28, %v2656_v58  }
 0xbe9   : > { %v2682_v60 = vpop.permute.xlu1 %2681 }
 0xbea   : > { %v2684_v62 = vmul.f32 %v2682_v60, %v2679_v59  ;;  %2688 = vrot.lane.b32.xlu0 %v2658_v2, %s6696_s1 }
 0xbec   : > { %v2686_v20 = vadd.f32 %v2685_v61, %v2684_v62  }
 0xbee   : > { %2694 = vrot.lane.b32.xlu1 %v2686_v20, %s6696_s1  ;;  %s8462_s1 = sld [smem:[#allocation10_spill]] (%p1790_p0) }
 0xbf4   :  { %v2735_v1 = vld [vmem:[%s8462_s1 + $0x18] sm:$0xff] (%p1790_p0)  ;;  %v2734_v17 = vld [vmem:[%s8462_s1 + $0x10] sm:$0xff] (%p1790_p0)  ;;  %v2733_v8 = vld [vmem:[%s8462_s1 + $0x8] sm:$0xff] (%p1790_p0) }
 0xbf5   :  { %6213 = vmatprep.subr.mxu0 (%p1790_p0), %v2735_v1  ;;  %v2732_v4 = vld [vmem:[%s8462_s1] sm:$0xff] (%p1790_p0) }
 0xbf6   :  { %6214 = vmatpush3.msra.mxu0 (%p1790_p0), %v2735_v1 }
 0xbf7   :  { %6215 = vmatprep.subr.mxu0 (%p1790_p0), %v2734_v17 }
 0xbf8   :  { %6216 = vmatpush3.msra.mxu0 (%p1790_p0), %v2734_v17 }
 0xbf9   :  { %6217 = vmatprep.subr.mxu0 (%p1790_p0), %v2733_v8 }
 0xbfa   :  { %6218 = vmatpush3.msra.mxu0 (%p1790_p0), %v2733_v8 }
 0xbfb   :  { %6219 = vmatprep.subr.mxu0 (%p1790_p0), %v2732_v4 }
 0xbfc   :  { %6220 = vmatpush3.msra.mxu0 (%p1790_p0), %v2732_v4 }
 0xbfd   :  { %6325 = vmatprep.subr.mxu0 (%p1790_p0), %v2735_v1 }
 0xc5c   : > { %v2689_v63 = vpop.permute.xlu0 %2688 }
 0xc5d   : > { %5390 = vst.msk [vmem:[%s7817_s10 + $0x18] sm:$0xff] %vm1807_vm3, %v2689_v63  ;;  %1792 = sbr.rel (!%p1790_p0) target bundleno = 340 (0x154), region = 138 }
 0xc60   : > { %v2695_v0 = vpop.permute.xlu1 %2694 }
 0xc61   : > { %2698 = vst.msk [vmem:[%s2697_s7] sm:$0xff] %vm1807_vm3, %v2695_v0  ;;  %s8464_s7 = sld [smem:[#allocation12_spill]] (%p1790_p0) }
 0xc64   :  { %v2700_v5 = vld [vmem:[#allocation4] sm:$0xff]  ;;  %v2701_v11 = vld [vmem:[#allocation4 + $0x8] sm:$0xff]  ;;  %v2702_v14 = vld [vmem:[#allocation4 + $0x10] sm:$0xff] }
 0xc65   :  { %6221 = vmatprep.mubr.msk.f32.mxu0 %vm1807_vm3, %v2700_v5  ;;  %v2703_v15 = vld [vmem:[#allocation4 + $0x18] sm:$0xff]  ;;  %v2704_v18 = vld [vmem:[#allocation4 + $0x20] sm:$0xff]  ;;  %v2705_v2 = vld [vmem:[#allocation4 + $0x28] sm:$0xff] }
 0xc66   :  { %6222 = vmatmul.mubr.msk.f32.vlgmr.msra.gmra.mxu0 %vm1807_vm3, %v2701_v11  ;;  %v2706_v29 = vld [vmem:[#allocation4 + $0x30] sm:$0xff]  ;;  %v2707_v32 = vld [vmem:[#allocation4 + $0x38] sm:$0xff]  ;;  %v2708_v33 = vld [vmem:[#allocation4 + $0x40] sm:$0xff] }
 0xc67   :  { %6326 = vmatpush3.msra.mxu0 %v2735_v1  ;;  %6224 = vmatprep.mubr.msk.f32.mxu0 %vm1807_vm3, %v2702_v14  ;;  %v2709_v36 = vld [vmem:[#allocation4 + $0x48] sm:$0xff]  ;;  %v2710_v37 = vld [vmem:[#allocation4 + $0x50] sm:$0xff]  ;;  %v2711_v40 = vld [vmem:[#allocation4 + $0x58] sm:$0xff] }
 0xc68   :  { %v3096_v12 = vld [vmem:[#allocation5] sm:$0xff]  ;;  %v3097_v13 = vld [vmem:[#allocation5 + $0x8] sm:$0xff]  ;;  %v3098_v16 = vld [vmem:[#allocation5 + $0x10] sm:$0xff]  ;;  %6327 = vmatprep.subr.mxu0 %v2734_v17 }
 0xc69   :  { %6277 = vmatprep.mubr.msk.f32.mxu1 %vm1807_vm3, %v3096_v12  ;;  %v3099_v19 = vld [vmem:[#allocation5 + $0x18] sm:$0xff]  ;;  %v3100_v20 = vld [vmem:[#allocation5 + $0x20] sm:$0xff]  ;;  %v3101_v30 = vld [vmem:[#allocation5 + $0x28] sm:$0xff]  ;;  %6328 = vmatpush3.msra.mxu0 %v2734_v17 }
 0xc6a   :  { %6278 = vmatmul.mubr.msk.f32.vlgmr.msra.gmra.mxu1 %vm1807_vm3, %v3097_v13  ;;  %6225 = vmatmul.mubr.msk.f32.gmra.mxu0 %vm1807_vm3, %v2703_v15  ;;  %v3102_v31 = vld [vmem:[#allocation5 + $0x30] sm:$0xff]  ;;  %v3103_v34 = vld [vmem:[#allocation5 + $0x38] sm:$0xff]  ;;  %v3104_v35 = vld [vmem:[#allocation5 + $0x40] sm:$0xff] }
 0xc6b   :  { %6382 = vmatpush3.msra.mxu1 %v3131_v6  ;;  %6280 = vmatprep.mubr.msk.f32.mxu1 %vm1807_vm3, %v3098_v16  ;;  %v3105_v38 = vld [vmem:[#allocation5 + $0x48] sm:$0xff]  ;;  %v3106_v39 = vld [vmem:[#allocation5 + $0x50] sm:$0xff]  ;;  %v2712_v41 = vld [vmem:[#allocation4 + $0x60] sm:$0xff] }
 0xc6c   :  { %6227 = vmatprep.mubr.msk.f32.mxu0 %vm1807_vm3, %v2704_v18  ;;  %6383 = vmatprep.subr.mxu1 %v3130_v3  ;;  %v3107_v42 = vld [vmem:[#allocation5 + $0x58] sm:$0xff]  ;;  %v3108_v43 = vld [vmem:[#allocation5 + $0x60] sm:$0xff]  ;;  %v2713_v44 = vld [vmem:[#allocation4 + $0x68] sm:$0xff] }
 0xc6d   :  { %6384 = vmatpush3.msra.mxu1 %v3130_v3  ;;  %6329 = vmatprep.subr.mxu0 %v2733_v8  ;;  %v2714_v45 = vld [vmem:[#allocation4 + $0x70] sm:$0xff]  ;;  %v3109_v46 = vld [vmem:[#allocation5 + $0x68] sm:$0xff]  ;;  %v2715_v48 = vld [vmem:[#allocation4 + $0x78] sm:$0xff] }
 0xc6e   :  { %6281 = vmatmul.mubr.msk.f32.gmra.mxu1 %vm1807_vm3, %v3099_v19  ;;  %6228 = vmatmul.mubr.msk.f32.gmra.mxu0 %vm1807_vm3, %v2705_v2  ;;  %v3110_v47 = vld [vmem:[#allocation5 + $0x70] sm:$0xff]  ;;  %v2716_v49 = vld [vmem:[#allocation4 + $0x80] sm:$0xff]  ;;  %v3111_v50 = vld [vmem:[#allocation5 + $0x78] sm:$0xff] }
 0xc6f   :  { %6283 = vmatprep.mubr.msk.f32.mxu1 %vm1807_vm3, %v3100_v20  ;;  %6230 = vmatprep.mubr.msk.f32.mxu0 %vm1807_vm3, %v2706_v29  ;;  %v3112_v51 = vld [vmem:[#allocation5 + $0x80] sm:$0xff]  ;;  %v2717_v52 = vld [vmem:[#allocation4 + $0x88] sm:$0xff]  ;;  %v2718_v53 = vld [vmem:[#allocation4 + $0x90] sm:$0xff] }
 0xc70   :  { %6330 = vmatpush3.msra.mxu0 %v2733_v8  ;;  %6385 = vmatprep.subr.mxu1 %v3129_v9  ;;  %v3113_v54 = vld [vmem:[#allocation5 + $0x88] sm:$0xff]  ;;  %v3114_v55 = vld [vmem:[#allocation5 + $0x90] sm:$0xff]  ;;  %v2719_v56 = vld [vmem:[#allocation4 + $0x98] sm:$0xff] }
 0xc71   :  { %6386 = vmatpush3.msra.mxu1 %v3129_v9  ;;  %6331 = vmatprep.subr.mxu0 %v2732_v4  ;;  %v2720_v57 = vld [vmem:[#allocation4 + $0xa0] sm:$0xff]  ;;  %v3115_v10 = vld [vmem:[#allocation5 + $0x98] sm:$0xff]  ;;  %v2721_v23 = vld [vmem:[#allocation4 + $0xa8] sm:$0xff] }
 0xc72   :  { %6284 = vmatmul.mubr.msk.f32.gmra.mxu1 %vm1807_vm3, %v3101_v30  ;;  %6231 = vmatmul.mubr.msk.f32.gmra.mxu0 %vm1807_vm3, %v2707_v32  ;;  %v3116_v22 = vld [vmem:[#allocation5 + $0xa0] sm:$0xff]  ;;  %v2722_v24 = vld [vmem:[#allocation4 + $0xb0] sm:$0xff]  ;;  %v3117_v25 = vld [vmem:[#allocation5 + $0xa8] sm:$0xff] }
 0xc73   :  { %6286 = vmatprep.mubr.msk.f32.mxu1 %vm1807_vm3, %v3102_v31  ;;  %6233 = vmatprep.mubr.msk.f32.mxu0 %vm1807_vm3, %v2708_v33  ;;  %v3118_v26 = vld [vmem:[#allocation5 + $0xb0] sm:$0xff]  ;;  %v2723_v27 = vld [vmem:[#allocation4 + $0xb8] sm:$0xff]  ;;  %v2724_v21 = vld [vmem:[#allocation4 + $0xc0] sm:$0xff] }
 0xc74   :  { %6332 = vmatpush3.msra.mxu0 %v2732_v4  ;;  %6387 = vmatprep.subr.mxu1 %v7965_v7  ;;  %v3119_v28 = vld [vmem:[#allocation5 + $0xb8] sm:$0xff]  ;;  %v3120_v58 = vld [vmem:[#allocation5 + $0xc0] sm:$0xff]  ;;  %v2725_v59 = vld [vmem:[#allocation4 + $0xc8] sm:$0xff] }
 0xc75   :  { %6388 = vmatpush3.msra.mxu1 %v7965_v7  ;;  %v2726_v60 = vld [vmem:[#allocation4 + $0xd0] sm:$0xff]  ;;  %v3121_v61 = vld [vmem:[#allocation5 + $0xc8] sm:$0xff]  ;;  %v2727_v63 = vld [vmem:[#allocation4 + $0xd8] sm:$0xff] }
 0xc76   :  { %6287 = vmatmul.mubr.msk.f32.gmra.mxu1 %vm1807_vm3, %v3103_v34  ;;  %6234 = vmatmul.mubr.msk.f32.gmra.mxu0 %vm1807_vm3, %v2709_v36  ;;  %v3122_v62 = vld [vmem:[#allocation5 + $0xd0] sm:$0xff]  ;;  %v2728_v0 = vld [vmem:[#allocation4 + $0xe0] sm:$0xff]  ;;  %v3123_v1 = vld [vmem:[#allocation5 + $0xd8] sm:$0xff] }
 0xc77   :  { %6289 = vmatprep.mubr.msk.f32.mxu1 %vm1807_vm3, %v3104_v35  ;;  %6236 = vmatprep.mubr.msk.f32.mxu0 %vm1807_vm3, %v2710_v37  ;;  %v3124_v6 = vld [vmem:[#allocation5 + $0xe0] sm:$0xff]  ;;  %v2729_v17 = vld [vmem:[#allocation4 + $0xe8] sm:$0xff]  ;;  %v2730_v3 = vld [vmem:[#allocation4 + $0xf0] sm:$0xff] }
 0xc78   :  { %v3125_v8 = vld [vmem:[#allocation5 + $0xe8] sm:$0xff]  ;;  %v3126_v9 = vld [vmem:[#allocation5 + $0xf0] sm:$0xff]  ;;  %v2731_v4 = vld [vmem:[#allocation4 + $0xf8] sm:$0xff] }
 0xc79   :  { %v3518_v5 = vld [vmem:[#allocation4 + $0x100] sm:$0xff]  ;;  %v3127_v7 = vld [vmem:[#allocation5 + $0xf8] sm:$0xff]  ;;  %v3519_v12 = vld [vmem:[#allocation4 + $0x108] sm:$0xff] }
 0xc7a   :  { %6290 = vmatmul.mubr.msk.f32.gmra.mxu1 %vm1807_vm3, %v3105_v38  ;;  %6237 = vmatmul.mubr.msk.f32.gmra.mxu0 %vm1807_vm3, %v2711_v40  ;;  %v3913_v11 = vld [vmem:[#allocation5 + $0x100] sm:$0xff]  ;;  %v3520_v13 = vld [vmem:[#allocation4 + $0x110] sm:$0xff]  ;;  %v3914_v14 = vld [vmem:[#allocation5 + $0x108] sm:$0xff] }
 0xc7b   :  { %6292 = vmatprep.mubr.msk.f32.mxu1 %vm1807_vm3, %v3106_v39  ;;  %6239 = vmatprep.mubr.msk.f32.mxu0 %vm1807_vm3, %v2712_v41  ;;  %v3915_v15 = vld [vmem:[#allocation5 + $0x110] sm:$0xff]  ;;  %v3521_v16 = vld [vmem:[#allocation4 + $0x118] sm:$0xff]  ;;  %v3522_v18 = vld [vmem:[#allocation4 + $0x120] sm:$0xff] }
 0xc7c   :  { %v3916_v19 = vld [vmem:[#allocation5 + $0x118] sm:$0xff]  ;;  %v3917_v20 = vld [vmem:[#allocation5 + $0x120] sm:$0xff]  ;;  %v3523_v2 = vld [vmem:[#allocation4 + $0x128] sm:$0xff] }
 0xc7d   :  { %v3524_v29 = vld [vmem:[#allocation4 + $0x130] sm:$0xff]  ;;  %v3918_v30 = vld [vmem:[#allocation5 + $0x128] sm:$0xff]  ;;  %v3525_v32 = vld [vmem:[#allocation4 + $0x138] sm:$0xff] }
 0xc7e   :  { %6293 = vmatmul.mubr.msk.f32.gmra.mxu1 %vm1807_vm3, %v3107_v42  ;;  %6240 = vmatmul.mubr.msk.f32.gmra.mxu0 %vm1807_vm3, %v2713_v44  ;;  %v3919_v31 = vld [vmem:[#allocation5 + $0x130] sm:$0xff]  ;;  %v3526_v33 = vld [vmem:[#allocation4 + $0x140] sm:$0xff]  ;;  %v3920_v34 = vld [vmem:[#allocation5 + $0x138] sm:$0xff] }
 0xc7f   :  { %6295 = vmatprep.mubr.msk.f32.mxu1 %vm1807_vm3, %v3108_v43  ;;  %6242 = vmatprep.mubr.msk.f32.mxu0 %vm1807_vm3, %v2714_v45  ;;  %v3921_v35 = vld [vmem:[#allocation5 + $0x140] sm:$0xff]  ;;  %v3527_v36 = vld [vmem:[#allocation4 + $0x148] sm:$0xff]  ;;  %v3528_v37 = vld [vmem:[#allocation4 + $0x150] sm:$0xff] }
 0xc80   :  { %v3922_v38 = vld [vmem:[#allocation5 + $0x148] sm:$0xff]  ;;  %v3923_v39 = vld [vmem:[#allocation5 + $0x150] sm:$0xff]  ;;  %v3529_v40 = vld [vmem:[#allocation4 + $0x158] sm:$0xff] }
 0xc81   :  { %v3530_v41 = vld [vmem:[#allocation4 + $0x160] sm:$0xff]  ;;  %v3924_v42 = vld [vmem:[#allocation5 + $0x158] sm:$0xff]  ;;  %v3531_v44 = vld [vmem:[#allocation4 + $0x168] sm:$0xff] }
 0xc82   :  { %6296 = vmatmul.mubr.msk.f32.gmra.mxu1 %vm1807_vm3, %v3109_v46  ;;  %6243 = vmatmul.mubr.msk.f32.gmra.mxu0 %vm1807_vm3, %v2715_v48  ;;  %v3925_v43 = vld [vmem:[#allocation5 + $0x160] sm:$0xff]  ;;  %v3532_v45 = vld [vmem:[#allocation4 + $0x170] sm:$0xff]  ;;  %v3926_v46 = vld [vmem:[#allocation5 + $0x168] sm:$0xff] }
 0xc83   :  { %6298 = vmatprep.mubr.msk.f32.mxu1 %vm1807_vm3, %v3110_v47  ;;  %6245 = vmatprep.mubr.msk.f32.mxu0 %vm1807_vm3, %v2716_v49  ;;  %v3927_v47 = vld [vmem:[#allocation5 + $0x170] sm:$0xff]  ;;  %v3533_v48 = vld [vmem:[#allocation4 + $0x178] sm:$0xff]  ;;  %v3534_v49 = vld [vmem:[#allocation4 + $0x180] sm:$0xff] }
 0xc86   :  { %6299 = vmatmul.mubr.msk.f32.gmra.mxu1 %vm1807_vm3, %v3111_v50  ;;  %6246 = vmatmul.mubr.msk.f32.gmra.mxu0 %vm1807_vm3, %v2717_v52  ;;  %v3928_v50 = vld [vmem:[#allocation5 + $0x178] sm:$0xff]  ;;  %v3535_v52 = vld [vmem:[#allocation4 + $0x188] sm:$0xff] }
 0xc87   :  { %6301 = vmatprep.mubr.msk.f32.mxu1 %vm1807_vm3, %v3112_v51  ;;  %6248 = vmatprep.mubr.msk.f32.mxu0 %vm1807_vm3, %v2718_v53  ;;  %v3929_v51 = vld [vmem:[#allocation5 + $0x180] sm:$0xff]  ;;  %v3536_v53 = vld [vmem:[#allocation4 + $0x190] sm:$0xff] }
 0xc8a   :  { %6302 = vmatmul.mubr.msk.f32.gmra.mxu1 %vm1807_vm3, %v3113_v54  ;;  %6249 = vmatmul.mubr.msk.f32.gmra.mxu0 %vm1807_vm3, %v2719_v56  ;;  %v3930_v54 = vld [vmem:[#allocation5 + $0x188] sm:$0xff]  ;;  %v3537_v56 = vld [vmem:[#allocation4 + $0x198] sm:$0xff] }
 0xc8b   :  { %6304 = vmatprep.mubr.msk.f32.mxu1 %vm1807_vm3, %v3114_v55  ;;  %6251 = vmatprep.mubr.msk.f32.mxu0 %vm1807_vm3, %v2720_v57  ;;  %v3931_v55 = vld [vmem:[#allocation5 + $0x190] sm:$0xff]  ;;  %v3538_v57 = vld [vmem:[#allocation4 + $0x1a0] sm:$0xff] }
 0xc8e   :  { %6305 = vmatmul.mubr.msk.f32.gmra.mxu1 %vm1807_vm3, %v3115_v10  ;;  %6252 = vmatmul.mubr.msk.f32.gmra.mxu0 %vm1807_vm3, %v2721_v23  ;;  %v3932_v10 = vld [vmem:[#allocation5 + $0x198] sm:$0xff]  ;;  %v3539_v23 = vld [vmem:[#allocation4 + $0x1a8] sm:$0xff] }
 0xc8f   :  { %6307 = vmatprep.mubr.msk.f32.mxu1 %vm1807_vm3, %v3116_v22  ;;  %6254 = vmatprep.mubr.msk.f32.mxu0 %vm1807_vm3, %v2722_v24  ;;  %v3933_v22 = vld [vmem:[#allocation5 + $0x1a0] sm:$0xff]  ;;  %v3540_v24 = vld [vmem:[#allocation4 + $0x1b0] sm:$0xff] }
 0xc92   :  { %6308 = vmatmul.mubr.msk.f32.gmra.mxu1 %vm1807_vm3, %v3117_v25  ;;  %6255 = vmatmul.mubr.msk.f32.gmra.mxu0 %vm1807_vm3, %v2723_v27  ;;  %v3934_v25 = vld [vmem:[#allocation5 + $0x1a8] sm:$0xff]  ;;  %v3541_v27 = vld [vmem:[#allocation4 + $0x1b8] sm:$0xff] }
 0xc93   :  { %6310 = vmatprep.mubr.msk.f32.mxu1 %vm1807_vm3, %v3118_v26  ;;  %6257 = vmatprep.mubr.msk.f32.mxu0 %vm1807_vm3, %v2724_v21  ;;  %v3935_v26 = vld [vmem:[#allocation5 + $0x1b0] sm:$0xff]  ;;  %v3542_v21 = vld [vmem:[#allocation4 + $0x1c0] sm:$0xff] }
 0xc96   :  { %6311 = vmatmul.mubr.msk.f32.gmra.mxu1 %vm1807_vm3, %v3119_v28  ;;  %6258 = vmatmul.mubr.msk.f32.gmra.mxu0 %vm1807_vm3, %v2725_v59  ;;  %v3936_v28 = vld [vmem:[#allocation5 + $0x1b8] sm:$0xff]  ;;  %v3543_v59 = vld [vmem:[#allocation4 + $0x1c8] sm:$0xff] }
 0xc97   :  { %6313 = vmatprep.mubr.msk.f32.mxu1 %vm1807_vm3, %v3120_v58  ;;  %6260 = vmatprep.mubr.msk.f32.mxu0 %vm1807_vm3, %v2726_v60  ;;  %v3937_v58 = vld [vmem:[#allocation5 + $0x1c0] sm:$0xff]  ;;  %v3544_v60 = vld [vmem:[#allocation4 + $0x1d0] sm:$0xff] }
 0xc9a   :  { %6314 = vmatmul.mubr.msk.f32.gmra.mxu1 %vm1807_vm3, %v3121_v61  ;;  %6261 = vmatmul.mubr.msk.f32.gmra.mxu0 %vm1807_vm3, %v2727_v63  ;;  %v3938_v61 = vld [vmem:[#allocation5 + $0x1c8] sm:$0xff]  ;;  %v3545_v63 = vld [vmem:[#allocation4 + $0x1d8] sm:$0xff] }
 0xc9b   :  { %6316 = vmatprep.mubr.msk.f32.mxu1 %vm1807_vm3, %v3122_v62  ;;  %6263 = vmatprep.mubr.msk.f32.mxu0 %vm1807_vm3, %v2728_v0  ;;  %v3939_v62 = vld [vmem:[#allocation5 + $0x1d0] sm:$0xff]  ;;  %v3546_v0 = vld [vmem:[#allocation4 + $0x1e0] sm:$0xff] }
 0xc9e   :  { %6317 = vmatmul.mubr.msk.f32.gmra.mxu1 %vm1807_vm3, %v3123_v1  ;;  %6264 = vmatmul.mubr.msk.f32.gmra.mxu0 %vm1807_vm3, %v2729_v17  ;;  %v3940_v1 = vld [vmem:[#allocation5 + $0x1d8] sm:$0xff]  ;;  %v3547_v17 = vld [vmem:[#allocation4 + $0x1e8] sm:$0xff] }
 0xc9f   :  { %6319 = vmatprep.mubr.msk.f32.mxu1 %vm1807_vm3, %v3124_v6  ;;  %6266 = vmatprep.mubr.msk.f32.mxu0 %vm1807_vm3, %v2730_v3  ;;  %v3941_v6 = vld [vmem:[#allocation5 + $0x1e0] sm:$0xff]  ;;  %v3548_v3 = vld [vmem:[#allocation4 + $0x1f0] sm:$0xff] }
 0xca2   :  { %6320 = vmatmul.mubr.msk.f32.gmra.mxu1 %vm1807_vm3, %v3125_v8  ;;  %6267 = vmatmul.mubr.msk.f32.gmra.mxu0 %vm1807_vm3, %v2731_v4  ;;  %v3942_v8 = vld [vmem:[#allocation5 + $0x1e8] sm:$0xff]  ;;  %v3549_v4 = vld [vmem:[#allocation4 + $0x1f8] sm:$0xff] }
 0xca3   :  { %6322 = vmatprep.mubr.msk.f32.mxu1 %vm1807_vm3, %v3126_v9  ;;  %6333 = vmatprep.mubr.msk.f32.mxu0 %vm1807_vm3, %v3518_v5  ;;  %v3943_v9 = vld [vmem:[#allocation5 + $0x1f0] sm:$0xff]  ;;  %v3944_v5 = vld [vmem:[#allocation5 + $0x1f8] sm:$0xff] }
 0xca6   :  { %6323 = vmatmul.mubr.msk.f32.gmra.mxu1 %vm1807_vm3, %v3127_v7  ;;  %6334 = vmatmul.mubr.msk.f32.vlgmr.msra.gmra.mxu0 %vm1807_vm3, %v3519_v12  ;;  %v8102_v7 = vld [vmem:[%s8464_s7] ss:$0 sm:$0xff] }
 0xca7   :  { %6389 = vmatprep.mubr.msk.f32.mxu1 %vm1807_vm3, %v3913_v11  ;;  %6336 = vmatprep.mubr.msk.f32.mxu0 %vm1807_vm3, %v3520_v13 }
 0xcaa   :  { %6390 = vmatmul.mubr.msk.f32.vlgmr.msra.gmra.mxu1 %vm1807_vm3, %v3914_v14  ;;  %6337 = vmatmul.mubr.msk.f32.gmra.mxu0 %vm1807_vm3, %v3521_v16 }
 0xcab   :  { %6392 = vmatprep.mubr.msk.f32.mxu1 %vm1807_vm3, %v3915_v15  ;;  %6339 = vmatprep.mubr.msk.f32.mxu0 %vm1807_vm3, %v3522_v18  ;;  %v8109_v18 = vld [vmem:[%s8433_s13] ss:$0 sm:$0xff]  ;;  %s8239_s13 = smov 0  }
 0xcae   :  { %6393 = vmatmul.mubr.msk.f32.gmra.mxu1 %vm1807_vm3, %v3916_v19  ;;  %6340 = vmatmul.mubr.msk.f32.gmra.mxu0 %vm1807_vm3, %v3523_v2 }
 0xcaf   :  { %6395 = vmatprep.mubr.msk.f32.mxu1 %vm1807_vm3, %v3917_v20  ;;  %6342 = vmatprep.mubr.msk.f32.mxu0 %vm1807_vm3, %v3524_v29 }
 0xcb2   :  { %6396 = vmatmul.mubr.msk.f32.gmra.mxu1 %vm1807_vm3, %v3918_v30  ;;  %6343 = vmatmul.mubr.msk.f32.gmra.mxu0 %vm1807_vm3, %v3525_v32 }
 0xcb3   :  { %6398 = vmatprep.mubr.msk.f32.mxu1 %vm1807_vm3, %v3919_v31  ;;  %6345 = vmatprep.mubr.msk.f32.mxu0 %vm1807_vm3, %v3526_v33 }
 0xcb6   :  { %6399 = vmatmul.mubr.msk.f32.gmra.mxu1 %vm1807_vm3, %v3920_v34  ;;  %6346 = vmatmul.mubr.msk.f32.gmra.mxu0 %vm1807_vm3, %v3527_v36 }
 0xcb7   :  { %6401 = vmatprep.mubr.msk.f32.mxu1 %vm1807_vm3, %v3921_v35  ;;  %6348 = vmatprep.mubr.msk.f32.mxu0 %vm1807_vm3, %v3528_v37 }
 0xcba   :  { %6402 = vmatmul.mubr.msk.f32.gmra.mxu1 %vm1807_vm3, %v3922_v38  ;;  %6349 = vmatmul.mubr.msk.f32.gmra.mxu0 %vm1807_vm3, %v3529_v40 }
 0xcbb   :  { %6404 = vmatprep.mubr.msk.f32.mxu1 %vm1807_vm3, %v3923_v39  ;;  %6351 = vmatprep.mubr.msk.f32.mxu0 %vm1807_vm3, %v3530_v41 }
 0xcbe   :  { %6405 = vmatmul.mubr.msk.f32.gmra.mxu1 %vm1807_vm3, %v3924_v42  ;;  %6352 = vmatmul.mubr.msk.f32.gmra.mxu0 %vm1807_vm3, %v3531_v44 }
 0xcbf   :  { %6407 = vmatprep.mubr.msk.f32.mxu1 %vm1807_vm3, %v3925_v43  ;;  %6354 = vmatprep.mubr.msk.f32.mxu0 %vm1807_vm3, %v3532_v45 }
 0xcc2   :  { %6408 = vmatmul.mubr.msk.f32.gmra.mxu1 %vm1807_vm3, %v3926_v46  ;;  %6355 = vmatmul.mubr.msk.f32.gmra.mxu0 %vm1807_vm3, %v3533_v48 }
 0xcc3   :  { %6410 = vmatprep.mubr.msk.f32.mxu1 %vm1807_vm3, %v3927_v47  ;;  %6357 = vmatprep.mubr.msk.f32.mxu0 %vm1807_vm3, %v3534_v49 }
 0xcc6   :  { %6411 = vmatmul.mubr.msk.f32.gmra.mxu1 %vm1807_vm3, %v3928_v50  ;;  %6358 = vmatmul.mubr.msk.f32.gmra.mxu0 %vm1807_vm3, %v3535_v52 }
 0xcc7   :  { %6413 = vmatprep.mubr.msk.f32.mxu1 %vm1807_vm3, %v3929_v51  ;;  %6360 = vmatprep.mubr.msk.f32.mxu0 %vm1807_vm3, %v3536_v53 }
 0xcca   :  { %6414 = vmatmul.mubr.msk.f32.gmra.mxu1 %vm1807_vm3, %v3930_v54  ;;  %6361 = vmatmul.mubr.msk.f32.gmra.mxu0 %vm1807_vm3, %v3537_v56 }
 0xccb   :  { %6416 = vmatprep.mubr.msk.f32.mxu1 %vm1807_vm3, %v3931_v55  ;;  %6363 = vmatprep.mubr.msk.f32.mxu0 %vm1807_vm3, %v3538_v57 }
 0xcce   :  { %6417 = vmatmul.mubr.msk.f32.gmra.mxu1 %vm1807_vm3, %v3932_v10  ;;  %6364 = vmatmul.mubr.msk.f32.gmra.mxu0 %vm1807_vm3, %v3539_v23 }
 0xccf   :  { %6419 = vmatprep.mubr.msk.f32.mxu1 %vm1807_vm3, %v3933_v22  ;;  %6366 = vmatprep.mubr.msk.f32.mxu0 %vm1807_vm3, %v3540_v24 }
 0xcd2   :  { %6420 = vmatmul.mubr.msk.f32.gmra.mxu1 %vm1807_vm3, %v3934_v25  ;;  %6367 = vmatmul.mubr.msk.f32.gmra.mxu0 %vm1807_vm3, %v3541_v27 }
 0xcd3   :  { %6422 = vmatprep.mubr.msk.f32.mxu1 %vm1807_vm3, %v3935_v26  ;;  %6369 = vmatprep.mubr.msk.f32.mxu0 %vm1807_vm3, %v3542_v21 }
 0xcd6   :  { %6423 = vmatmul.mubr.msk.f32.gmra.mxu1 %vm1807_vm3, %v3936_v28  ;;  %6370 = vmatmul.mubr.msk.f32.gmra.mxu0 %vm1807_vm3, %v3543_v59 }
 0xcd7   :  { %6425 = vmatprep.mubr.msk.f32.mxu1 %vm1807_vm3, %v3937_v58  ;;  %6372 = vmatprep.mubr.msk.f32.mxu0 %vm1807_vm3, %v3544_v60 }
 0xcda   :  { %6426 = vmatmul.mubr.msk.f32.gmra.mxu1 %vm1807_vm3, %v3938_v61  ;;  %6373 = vmatmul.mubr.msk.f32.gmra.mxu0 %vm1807_vm3, %v3545_v63 }
 0xcdb   :  { %6428 = vmatprep.mubr.msk.f32.mxu1 %vm1807_vm3, %v3939_v62  ;;  %6375 = vmatprep.mubr.msk.f32.mxu0 %vm1807_vm3, %v3546_v0 }
 0xcde   :  { %6429 = vmatmul.mubr.msk.f32.gmra.mxu1 %vm1807_vm3, %v3940_v1  ;;  %6376 = vmatmul.mubr.msk.f32.gmra.mxu0 %vm1807_vm3, %v3547_v17 }
 0xcdf   :  { %6431 = vmatprep.mubr.msk.f32.mxu1 %vm1807_vm3, %v3941_v6  ;;  %6378 = vmatprep.mubr.msk.f32.mxu0 %vm1807_vm3, %v3548_v3 }
 0xce2   :  { %6432 = vmatmul.mubr.msk.f32.gmra.mxu1 %vm1807_vm3, %v3942_v8  ;;  %6379 = vmatmul.mubr.msk.f32.gmra.mxu0 %vm1807_vm3, %v3549_v4 }
 0xce3   :  { %6434 = vmatprep.mubr.msk.f32.mxu1 %vm1807_vm3, %v3943_v9 }
 0xce6   :  { %6435 = vmatmul.mubr.msk.f32.gmra.mxu1 %vm1807_vm3, %v3944_v5 }
 0xd26   :  { %v6223_v11 = vpop.f32.mrf.mxu0 }
 0xd27   :  { %v3065_v12 = vadd.f32 %v6223_v11, %v8102_v7 }
 0xd28   :  { %v2899_v14 = vpop.f32.mrf.mxu0 }
 0xd29   :  { %v3064_v16 = vadd.f32 %v8102_v7, %v2899_v14 }
 0xd2a   :  { %v6279_v13 = vpop.f32.mrf.mxu1  ;;  %v6226_v20 = vpop.f32.mrf.mxu0 }
 0xd2b   :  { %v3454_v15 = vadd.f32 %v6279_v13, %v3065_v12  ;;  %v3067_v29 = vadd.f32 %v6226_v20, %v8102_v7 }
 0xd2c   :  { %v3294_v19 = vpop.f32.mrf.mxu1  ;;  %v2909_v31 = vpop.f32.mrf.mxu0 }
 0xd2d   :  { %3486 = vst.msk [vmem:[#allocation6 + $0x8] sm:$0xff] %vm463_vm1, %v3454_v15  ;;  %v3453_v2 = vadd.f32 %v3294_v19, %v3064_v16  ;;  %v3066_v33 = vadd.f32 %v8102_v7, %v2909_v31 }
 0xd2e   :  { %v6282_v30 = vpop.f32.mrf.mxu1  ;;  %v6229_v35 = vpop.f32.mrf.mxu0 }
 0xd2f   :  { %3485 = vst.msk [vmem:[#allocation6] sm:$0xff] %vm463_vm1, %v3453_v2  ;;  %v3456_v32 = vadd.f32 %v6282_v30, %v3067_v29  ;;  %v3069_v37 = vadd.f32 %v6229_v35, %v8102_v7 }
 0xd30   :  { %v3304_v34 = vpop.f32.mrf.mxu1  ;;  %v2919_v39 = vpop.f32.mrf.mxu0 }
 0xd31   :  { %3488 = vst.msk [vmem:[#allocation6 + $0x18] sm:$0xff] %vm463_vm1, %v3456_v32  ;;  %v3455_v36 = vadd.f32 %v3304_v34, %v3066_v33  ;;  %v3068_v41 = vadd.f32 %v8102_v7, %v2919_v39 }
 0xd32   :  { %v6285_v38 = vpop.f32.mrf.mxu1  ;;  %v6232_v43 = vpop.f32.mrf.mxu0 }
 0xd33   :  { %3487 = vst.msk [vmem:[#allocation6 + $0x10] sm:$0xff] %vm463_vm1, %v3455_v36  ;;  %v3458_v40 = vadd.f32 %v6285_v38, %v3069_v37  ;;  %v3071_v45 = vadd.f32 %v6232_v43, %v8102_v7 }
 0xd34   :  { %v3314_v42 = vpop.f32.mrf.mxu1  ;;  %v2929_v47 = vpop.f32.mrf.mxu0 }
 0xd35   :  { %3490 = vst.msk [vmem:[#allocation6 + $0x28] sm:$0xff] %vm463_vm1, %v3458_v40  ;;  %v3457_v44 = vadd.f32 %v3314_v42, %v3068_v41  ;;  %v3070_v49 = vadd.f32 %v8102_v7, %v2929_v47 }
 0xd36   :  { %v6288_v46 = vpop.f32.mrf.mxu1  ;;  %v6235_v51 = vpop.f32.mrf.mxu0 }
 0xd37   :  { %3489 = vst.msk [vmem:[#allocation6 + $0x20] sm:$0xff] %vm463_vm1, %v3457_v44  ;;  %v3460_v48 = vadd.f32 %v6288_v46, %v3071_v45  ;;  %v3073_v53 = vadd.f32 %v6235_v51, %v8102_v7 }
 0xd38   :  { %v3324_v50 = vpop.f32.mrf.mxu1  ;;  %v2939_v55 = vpop.f32.mrf.mxu0 }
 0xd39   :  { %3492 = vst.msk [vmem:[#allocation6 + $0x38] sm:$0xff] %vm463_vm1, %v3460_v48  ;;  %v3459_v52 = vadd.f32 %v3324_v50, %v3070_v49  ;;  %v3072_v57 = vadd.f32 %v8102_v7, %v2939_v55 }
 0xd3a   :  { %v6291_v54 = vpop.f32.mrf.mxu1  ;;  %v6238_v22 = vpop.f32.mrf.mxu0 }
 0xd3b   :  { %3491 = vst.msk [vmem:[#allocation6 + $0x30] sm:$0xff] %vm463_vm1, %v3459_v52  ;;  %v3462_v56 = vadd.f32 %v6291_v54, %v3073_v53  ;;  %v3075_v24 = vadd.f32 %v6238_v22, %v8102_v7 }
 0xd3c   :  { %v3334_v10 = vpop.f32.mrf.mxu1  ;;  %v2949_v26 = vpop.f32.mrf.mxu0 }
 0xd3d   :  { %3494 = vst.msk [vmem:[#allocation6 + $0x48] sm:$0xff] %vm463_vm1, %v3462_v56  ;;  %v3461_v23 = vadd.f32 %v3334_v10, %v3072_v57  ;;  %v3074_v21 = vadd.f32 %v8102_v7, %v2949_v26 }
 0xd3e   :  { %v6294_v25 = vpop.f32.mrf.mxu1  ;;  %v6241_v58 = vpop.f32.mrf.mxu0 }
 0xd3f   :  { %3493 = vst.msk [vmem:[#allocation6 + $0x40] sm:$0xff] %vm463_vm1, %v3461_v23  ;;  %v3464_v27 = vadd.f32 %v6294_v25, %v3075_v24  ;;  %v3077_v60 = vadd.f32 %v6241_v58, %v8102_v7 }
 0xd40   :  { %v3344_v28 = vpop.f32.mrf.mxu1  ;;  %v2959_v62 = vpop.f32.mrf.mxu0 }
 0xd41   :  { %3496 = vst.msk [vmem:[#allocation6 + $0x58] sm:$0xff] %vm463_vm1, %v3464_v27  ;;  %v3463_v59 = vadd.f32 %v3344_v28, %v3074_v21  ;;  %v3076_v0 = vadd.f32 %v8102_v7, %v2959_v62 }
 0xd42   :  { %v6297_v61 = vpop.f32.mrf.mxu1  ;;  %v6244_v6 = vpop.f32.mrf.mxu0 }
 0xd43   :  { %3495 = vst.msk [vmem:[#allocation6 + $0x50] sm:$0xff] %vm463_vm1, %v3463_v59  ;;  %v3466_v63 = vadd.f32 %v6297_v61, %v3077_v60  ;;  %v3079_v3 = vadd.f32 %v6244_v6, %v8102_v7 }
 0xd44   :  { %v3354_v1 = vpop.f32.mrf.mxu1  ;;  %v2969_v9 = vpop.f32.mrf.mxu0 }
 0xd45   :  { %3498 = vst.msk [vmem:[#allocation6 + $0x68] sm:$0xff] %vm463_vm1, %v3466_v63  ;;  %v3465_v17 = vadd.f32 %v3354_v1, %v3076_v0  ;;  %v3078_v5 = vadd.f32 %v8102_v7, %v2969_v9 }
 0xd46   :  { %v6300_v8 = vpop.f32.mrf.mxu1  ;;  %v6247_v12 = vpop.f32.mrf.mxu0 }
 0xd47   :  { %3497 = vst.msk [vmem:[#allocation6 + $0x60] sm:$0xff] %vm463_vm1, %v3465_v17  ;;  %v3468_v4 = vadd.f32 %v6300_v8, %v3079_v3  ;;  %v3081_v14 = vadd.f32 %v6247_v12, %v8102_v7 }
 0xd48   :  { %v3364_v11 = vpop.f32.mrf.mxu1  ;;  %v2979_v16 = vpop.f32.mrf.mxu0 }
 0xd49   :  { %3500 = vst.msk [vmem:[#allocation6 + $0x78] sm:$0xff] %vm463_vm1, %v3468_v4  ;;  %v3467_v13 = vadd.f32 %v3364_v11, %v3078_v5  ;;  %v3080_v20 = vadd.f32 %v8102_v7, %v2979_v16 }
 0xd4a   :  { %v6303_v15 = vpop.f32.mrf.mxu1  ;;  %v6250_v29 = vpop.f32.mrf.mxu0 }
 0xd4b   :  { %3499 = vst.msk [vmem:[#allocation6 + $0x70] sm:$0xff] %vm463_vm1, %v3467_v13  ;;  %v3470_v19 = vadd.f32 %v6303_v15, %v3081_v14  ;;  %v3083_v31 = vadd.f32 %v6250_v29, %v8102_v7 }
 0xd4c   :  { %v3374_v2 = vpop.f32.mrf.mxu1  ;;  %v2989_v33 = vpop.f32.mrf.mxu0 }
 0xd4d   :  { %3502 = vst.msk [vmem:[#allocation6 + $0x88] sm:$0xff] %vm463_vm1, %v3470_v19  ;;  %v3469_v30 = vadd.f32 %v3374_v2, %v3080_v20  ;;  %v3082_v35 = vadd.f32 %v8102_v7, %v2989_v33 }
 0xd4e   :  { %v6306_v32 = vpop.f32.mrf.mxu1  ;;  %v6253_v37 = vpop.f32.mrf.mxu0 }
 0xd4f   :  { %3501 = vst.msk [vmem:[#allocation6 + $0x80] sm:$0xff] %vm463_vm1, %v3469_v30  ;;  %v3472_v34 = vadd.f32 %v6306_v32, %v3083_v31  ;;  %v3085_v39 = vadd.f32 %v6253_v37, %v8102_v7 }
 0xd50   :  { %v3384_v36 = vpop.f32.mrf.mxu1  ;;  %v2999_v41 = vpop.f32.mrf.mxu0 }
 0xd51   :  { %3504 = vst.msk [vmem:[#allocation6 + $0x98] sm:$0xff] %vm463_vm1, %v3472_v34  ;;  %v3471_v38 = vadd.f32 %v3384_v36, %v3082_v35  ;;  %v3084_v43 = vadd.f32 %v8102_v7, %v2999_v41 }
 0xd52   :  { %v6309_v40 = vpop.f32.mrf.mxu1  ;;  %v6256_v45 = vpop.f32.mrf.mxu0 }
 0xd53   :  { %3503 = vst.msk [vmem:[#allocation6 + $0x90] sm:$0xff] %vm463_vm1, %v3471_v38  ;;  %v3474_v42 = vadd.f32 %v6309_v40, %v3085_v39  ;;  %v3087_v47 = vadd.f32 %v6256_v45, %v8102_v7 }
 0xd54   :  { %v3394_v44 = vpop.f32.mrf.mxu1  ;;  %v3009_v49 = vpop.f32.mrf.mxu0 }
 0xd55   :  { %3506 = vst.msk [vmem:[#allocation6 + $0xa8] sm:$0xff] %vm463_vm1, %v3474_v42  ;;  %v3473_v46 = vadd.f32 %v3394_v44, %v3084_v43  ;;  %v3086_v51 = vadd.f32 %v8102_v7, %v3009_v49 }
 0xd56   :  { %v6312_v48 = vpop.f32.mrf.mxu1  ;;  %v6259_v53 = vpop.f32.mrf.mxu0 }
 0xd57   :  { %3505 = vst.msk [vmem:[#allocation6 + $0xa0] sm:$0xff] %vm463_vm1, %v3473_v46  ;;  %v3476_v50 = vadd.f32 %v6312_v48, %v3087_v47  ;;  %v3089_v55 = vadd.f32 %v6259_v53, %v8102_v7 }
 0xd58   :  { %v3404_v52 = vpop.f32.mrf.mxu1  ;;  %v3019_v57 = vpop.f32.mrf.mxu0 }
 0xd59   :  { %3508 = vst.msk [vmem:[#allocation6 + $0xb8] sm:$0xff] %vm463_vm1, %v3476_v50  ;;  %v3475_v54 = vadd.f32 %v3404_v52, %v3086_v51  ;;  %v3088_v22 = vadd.f32 %v8102_v7, %v3019_v57 }
 0xd5a   :  { %v6315_v56 = vpop.f32.mrf.mxu1  ;;  %v6262_v24 = vpop.f32.mrf.mxu0 }
 0xd5b   :  { %3507 = vst.msk [vmem:[#allocation6 + $0xb0] sm:$0xff] %vm463_vm1, %v3475_v54  ;;  %v3478_v10 = vadd.f32 %v6315_v56, %v3089_v55  ;;  %v3091_v26 = vadd.f32 %v6262_v24, %v8102_v7 }
 0xd5c   :  { %v3414_v23 = vpop.f32.mrf.mxu1  ;;  %v3029_v21 = vpop.f32.mrf.mxu0 }
 0xd5d   :  { %3510 = vst.msk [vmem:[#allocation6 + $0xc8] sm:$0xff] %vm463_vm1, %v3478_v10  ;;  %v3477_v25 = vadd.f32 %v3414_v23, %v3088_v22  ;;  %v3090_v58 = vadd.f32 %v8102_v7, %v3029_v21 }
 0xd5e   :  { %v6318_v27 = vpop.f32.mrf.mxu1  ;;  %v6265_v60 = vpop.f32.mrf.mxu0 }
 0xd5f   :  { %3509 = vst.msk [vmem:[#allocation6 + $0xc0] sm:$0xff] %vm463_vm1, %v3477_v25  ;;  %v3480_v28 = vadd.f32 %v6318_v27, %v3091_v26  ;;  %v3093_v62 = vadd.f32 %v6265_v60, %v8102_v7 }
 0xd60   :  { %v3424_v59 = vpop.f32.mrf.mxu1  ;;  %v3039_v0 = vpop.f32.mrf.mxu0 }
 0xd61   :  { %3512 = vst.msk [vmem:[#allocation6 + $0xd8] sm:$0xff] %vm463_vm1, %v3480_v28  ;;  %v3479_v61 = vadd.f32 %v3424_v59, %v3090_v58  ;;  %v3092_v6 = vadd.f32 %v8102_v7, %v3039_v0 }
 0xd62   :  { %v6321_v63 = vpop.f32.mrf.mxu1  ;;  %v6268_v3 = vpop.f32.mrf.mxu0 }
 0xd63   :  { %3511 = vst.msk [vmem:[#allocation6 + $0xd0] sm:$0xff] %vm463_vm1, %v3479_v61  ;;  %v3482_v1 = vadd.f32 %v6321_v63, %v3093_v62  ;;  %v3095_v9 = vadd.f32 %v6268_v3, %v8102_v7 }
 0xd64   :  { %v3434_v17 = vpop.f32.mrf.mxu1  ;;  %v3049_v5 = vpop.f32.mrf.mxu0 }
 0xd65   :  { %3514 = vst.msk [vmem:[#allocation6 + $0xe8] sm:$0xff] %vm463_vm1, %v3482_v1  ;;  %v3481_v8 = vadd.f32 %v3434_v17, %v3092_v6  ;;  %v3094_v12 = vadd.f32 %v8102_v7, %v3049_v5 }
 0xd66   :  { %v6324_v4 = vpop.f32.mrf.mxu1  ;;  %v6335_v14 = vpop.f32.mrf.mxu0 }
 0xd67   :  { %3513 = vst.msk [vmem:[#allocation6 + $0xe0] sm:$0xff] %vm463_vm1, %v3481_v8  ;;  %v3484_v11 = vadd.f32 %v6324_v4, %v3095_v9  ;;  %v3882_v16 = vadd.f32 %v6335_v14, %v8102_v7 }
 0xd68   :  { %v3444_v13 = vpop.f32.mrf.mxu1  ;;  %v3716_v20 = vpop.f32.mrf.mxu0 }
 0xd69   :  { %3516 = vst.msk [vmem:[#allocation6 + $0xf8] sm:$0xff] %vm463_vm1, %v3484_v11  ;;  %v3483_v15 = vadd.f32 %v3444_v13, %v3094_v12  ;;  %v3881_v29 = vadd.f32 %v8102_v7, %v3716_v20 }
 0xd6a   :  { %v6391_v19 = vpop.f32.mrf.mxu1  ;;  %v6338_v31 = vpop.f32.mrf.mxu0 }
 0xd6b   :  { %3515 = vst.msk [vmem:[#allocation6 + $0xf0] sm:$0xff] %vm463_vm1, %v3483_v15  ;;  %v4271_v2 = vadd.f32 %v6391_v19, %v3882_v16  ;;  %v3884_v33 = vadd.f32 %v6338_v31, %v8102_v7 }
 0xd6c   :  { %v4111_v30 = vpop.f32.mrf.mxu1  ;;  %v3726_v35 = vpop.f32.mrf.mxu0 }
 0xd6d   :  { %4303 = vst.msk [vmem:[#allocation6 + $0x108] sm:$0xff] %vm463_vm1, %v4271_v2  ;;  %v4270_v32 = vadd.f32 %v4111_v30, %v3881_v29  ;;  %v3883_v37 = vadd.f32 %v8102_v7, %v3726_v35 }
 0xd6e   :  { %v6394_v34 = vpop.f32.mrf.mxu1  ;;  %v6341_v39 = vpop.f32.mrf.mxu0 }
 0xd6f   :  { %4302 = vst.msk [vmem:[#allocation6 + $0x100] sm:$0xff] %vm463_vm1, %v4270_v32  ;;  %v4273_v36 = vadd.f32 %v6394_v34, %v3884_v33  ;;  %v3886_v41 = vadd.f32 %v6341_v39, %v8102_v7 }
 0xd70   :  { %v4121_v38 = vpop.f32.mrf.mxu1  ;;  %v3736_v43 = vpop.f32.mrf.mxu0 }
 0xd71   :  { %4305 = vst.msk [vmem:[#allocation6 + $0x118] sm:$0xff] %vm463_vm1, %v4273_v36  ;;  %v4272_v40 = vadd.f32 %v4121_v38, %v3883_v37  ;;  %v3885_v45 = vadd.f32 %v8102_v7, %v3736_v43 }
 0xd72   :  { %v6397_v42 = vpop.f32.mrf.mxu1  ;;  %v6344_v47 = vpop.f32.mrf.mxu0 }
 0xd73   :  { %4304 = vst.msk [vmem:[#allocation6 + $0x110] sm:$0xff] %vm463_vm1, %v4272_v40  ;;  %v4275_v44 = vadd.f32 %v6397_v42, %v3886_v41  ;;  %v3888_v49 = vadd.f32 %v6344_v47, %v8102_v7 }
 0xd74   :  { %v4131_v46 = vpop.f32.mrf.mxu1  ;;  %v3746_v51 = vpop.f32.mrf.mxu0 }
 0xd75   :  { %4307 = vst.msk [vmem:[#allocation6 + $0x128] sm:$0xff] %vm463_vm1, %v4275_v44  ;;  %v4274_v48 = vadd.f32 %v4131_v46, %v3885_v45  ;;  %v3887_v53 = vadd.f32 %v8102_v7, %v3746_v51 }
 0xd76   :  { %v6400_v50 = vpop.f32.mrf.mxu1  ;;  %v6347_v55 = vpop.f32.mrf.mxu0 }
 0xd77   :  { %4306 = vst.msk [vmem:[#allocation6 + $0x120] sm:$0xff] %vm463_vm1, %v4274_v48  ;;  %v4277_v52 = vadd.f32 %v6400_v50, %v3888_v49  ;;  %v3890_v57 = vadd.f32 %v6347_v55, %v8102_v7 }
 0xd78   :  { %v4141_v54 = vpop.f32.mrf.mxu1  ;;  %v3756_v22 = vpop.f32.mrf.mxu0 }
 0xd79   :  { %4309 = vst.msk [vmem:[#allocation6 + $0x138] sm:$0xff] %vm463_vm1, %v4277_v52  ;;  %v4276_v56 = vadd.f32 %v4141_v54, %v3887_v53  ;;  %v3889_v24 = vadd.f32 %v8102_v7, %v3756_v22 }
 0xd7a   :  { %v6403_v10 = vpop.f32.mrf.mxu1  ;;  %v6350_v26 = vpop.f32.mrf.mxu0 }
 0xd7b   :  { %4308 = vst.msk [vmem:[#allocation6 + $0x130] sm:$0xff] %vm463_vm1, %v4276_v56  ;;  %v4279_v23 = vadd.f32 %v6403_v10, %v3890_v57  ;;  %v3892_v21 = vadd.f32 %v6350_v26, %v8102_v7 }
 0xd7c   :  { %v4151_v25 = vpop.f32.mrf.mxu1  ;;  %v3766_v58 = vpop.f32.mrf.mxu0 }
 0xd7d   :  { %4311 = vst.msk [vmem:[#allocation6 + $0x148] sm:$0xff] %vm463_vm1, %v4279_v23  ;;  %v4278_v27 = vadd.f32 %v4151_v25, %v3889_v24  ;;  %v3891_v60 = vadd.f32 %v8102_v7, %v3766_v58 }
 0xd7e   :  { %v6406_v28 = vpop.f32.mrf.mxu1  ;;  %v6353_v62 = vpop.f32.mrf.mxu0 }
 0xd7f   :  { %4310 = vst.msk [vmem:[#allocation6 + $0x140] sm:$0xff] %vm463_vm1, %v4278_v27  ;;  %v4281_v59 = vadd.f32 %v6406_v28, %v3892_v21  ;;  %v3894_v0 = vadd.f32 %v6353_v62, %v8102_v7 }
 0xd80   :  { %v4161_v61 = vpop.f32.mrf.mxu1  ;;  %v3776_v6 = vpop.f32.mrf.mxu0 }
 0xd81   :  { %4313 = vst.msk [vmem:[#allocation6 + $0x158] sm:$0xff] %vm463_vm1, %v4281_v59  ;;  %v4280_v63 = vadd.f32 %v4161_v61, %v3891_v60  ;;  %v3893_v3 = vadd.f32 %v8102_v7, %v3776_v6 }
 0xd82   :  { %v6409_v1 = vpop.f32.mrf.mxu1  ;;  %v6356_v9 = vpop.f32.mrf.mxu0 }
 0xd83   :  { %4312 = vst.msk [vmem:[#allocation6 + $0x150] sm:$0xff] %vm463_vm1, %v4280_v63  ;;  %v4283_v17 = vadd.f32 %v6409_v1, %v3894_v0  ;;  %v3896_v5 = vadd.f32 %v6356_v9, %v8102_v7 }
 0xd84   :  { %v4171_v8 = vpop.f32.mrf.mxu1  ;;  %v3786_v12 = vpop.f32.mrf.mxu0 }
 0xd85   :  { %4315 = vst.msk [vmem:[#allocation6 + $0x168] sm:$0xff] %vm463_vm1, %v4283_v17  ;;  %v4282_v4 = vadd.f32 %v4171_v8, %v3893_v3  ;;  %v3895_v14 = vadd.f32 %v8102_v7, %v3786_v12 }
 0xd86   :  { %v6412_v11 = vpop.f32.mrf.mxu1  ;;  %v6359_v16 = vpop.f32.mrf.mxu0 }
 0xd87   :  { %4314 = vst.msk [vmem:[#allocation6 + $0x160] sm:$0xff] %vm463_vm1, %v4282_v4  ;;  %v4285_v13 = vadd.f32 %v6412_v11, %v3896_v5  ;;  %v3898_v20 = vadd.f32 %v6359_v16, %v8102_v7 }
 0xd88   :  { %v4181_v15 = vpop.f32.mrf.mxu1  ;;  %v3796_v29 = vpop.f32.mrf.mxu0 }
 0xd89   :  { %4317 = vst.msk [vmem:[#allocation6 + $0x178] sm:$0xff] %vm463_vm1, %v4285_v13  ;;  %v4284_v19 = vadd.f32 %v4181_v15, %v3895_v14  ;;  %v3897_v31 = vadd.f32 %v8102_v7, %v3796_v29 }
 0xd8a   :  { %v6415_v2 = vpop.f32.mrf.mxu1  ;;  %v6362_v33 = vpop.f32.mrf.mxu0 }
 0xd8b   :  { %4316 = vst.msk [vmem:[#allocation6 + $0x170] sm:$0xff] %vm463_vm1, %v4284_v19  ;;  %v4287_v30 = vadd.f32 %v6415_v2, %v3898_v20  ;;  %v3900_v35 = vadd.f32 %v6362_v33, %v8102_v7  ;;  %v8237_v2 = vmov 0.0  }
 0xd8c   :  { %v4191_v32 = vpop.f32.mrf.mxu1  ;;  %v3806_v37 = vpop.f32.mrf.mxu0 }
 0xd8d   :  { %4319 = vst.msk [vmem:[#allocation6 + $0x188] sm:$0xff] %vm463_vm1, %v4287_v30  ;;  %v4286_v34 = vadd.f32 %v4191_v32, %v3897_v31  ;;  %v3899_v39 = vadd.f32 %v8102_v7, %v3806_v37 }
 0xd8e   :  { %v6418_v36 = vpop.f32.mrf.mxu1  ;;  %v6365_v41 = vpop.f32.mrf.mxu0 }
 0xd8f   :  { %4318 = vst.msk [vmem:[#allocation6 + $0x180] sm:$0xff] %vm463_vm1, %v4286_v34  ;;  %v4289_v38 = vadd.f32 %v6418_v36, %v3900_v35  ;;  %v3902_v43 = vadd.f32 %v6365_v41, %v8102_v7 }
 0xd90   :  { %v4201_v40 = vpop.f32.mrf.mxu1  ;;  %v3816_v45 = vpop.f32.mrf.mxu0 }
 0xd91   :  { %4321 = vst.msk [vmem:[#allocation6 + $0x198] sm:$0xff] %vm463_vm1, %v4289_v38  ;;  %v4288_v42 = vadd.f32 %v4201_v40, %v3899_v39  ;;  %v3901_v47 = vadd.f32 %v8102_v7, %v3816_v45 }
 0xd92   :  { %v6421_v44 = vpop.f32.mrf.mxu1  ;;  %v6368_v49 = vpop.f32.mrf.mxu0 }
 0xd93   :  { %4320 = vst.msk [vmem:[#allocation6 + $0x190] sm:$0xff] %vm463_vm1, %v4288_v42  ;;  %v4291_v46 = vadd.f32 %v6421_v44, %v3902_v43  ;;  %v3904_v51 = vadd.f32 %v6368_v49, %v8102_v7 }
 0xd94   :  { %v4211_v48 = vpop.f32.mrf.mxu1  ;;  %v3826_v53 = vpop.f32.mrf.mxu0 }
 0xd95   :  { %4323 = vst.msk [vmem:[#allocation6 + $0x1a8] sm:$0xff] %vm463_vm1, %v4291_v46  ;;  %v4290_v50 = vadd.f32 %v4211_v48, %v3901_v47  ;;  %v3903_v55 = vadd.f32 %v8102_v7, %v3826_v53 }
 0xd96   :  { %v6424_v52 = vpop.f32.mrf.mxu1  ;;  %v6371_v57 = vpop.f32.mrf.mxu0 }
 0xd97   :  { %4322 = vst.msk [vmem:[#allocation6 + $0x1a0] sm:$0xff] %vm463_vm1, %v4290_v50  ;;  %v4293_v54 = vadd.f32 %v6424_v52, %v3904_v51  ;;  %v3906_v22 = vadd.f32 %v6371_v57, %v8102_v7 }
 0xd98   :  { %v4221_v56 = vpop.f32.mrf.mxu1  ;;  %v3836_v24 = vpop.f32.mrf.mxu0 }
 0xd99   :  { %4325 = vst.msk [vmem:[#allocation6 + $0x1b8] sm:$0xff] %vm463_vm1, %v4293_v54  ;;  %v4292_v10 = vadd.f32 %v4221_v56, %v3903_v55  ;;  %v3905_v26 = vadd.f32 %v8102_v7, %v3836_v24 }
 0xd9a   :  { %v6427_v23 = vpop.f32.mrf.mxu1  ;;  %v6374_v21 = vpop.f32.mrf.mxu0 }
 0xd9b   :  { %4324 = vst.msk [vmem:[#allocation6 + $0x1b0] sm:$0xff] %vm463_vm1, %v4292_v10  ;;  %v4295_v25 = vadd.f32 %v6427_v23, %v3906_v22  ;;  %v3908_v58 = vadd.f32 %v6374_v21, %v8102_v7 }
 0xd9c   :  { %v4231_v27 = vpop.f32.mrf.mxu1  ;;  %v3846_v60 = vpop.f32.mrf.mxu0 }
 0xd9d   :  { %4327 = vst.msk [vmem:[#allocation6 + $0x1c8] sm:$0xff] %vm463_vm1, %v4295_v25  ;;  %v4294_v28 = vadd.f32 %v4231_v27, %v3905_v26  ;;  %v3907_v62 = vadd.f32 %v8102_v7, %v3846_v60 }
 0xd9e   :  { %v6430_v59 = vpop.f32.mrf.mxu1  ;;  %v6377_v0 = vpop.f32.mrf.mxu0 }
 0xd9f   :  { %4326 = vst.msk [vmem:[#allocation6 + $0x1c0] sm:$0xff] %vm463_vm1, %v4294_v28  ;;  %v4297_v61 = vadd.f32 %v6430_v59, %v3908_v58  ;;  %v3910_v6 = vadd.f32 %v6377_v0, %v8102_v7 }
 0xda0   :  { %v4241_v63 = vpop.f32.mrf.mxu1  ;;  %v3856_v3 = vpop.f32.mrf.mxu0 }
 0xda1   :  { %4329 = vst.msk [vmem:[#allocation6 + $0x1d8] sm:$0xff] %vm463_vm1, %v4297_v61  ;;  %v4296_v1 = vadd.f32 %v4241_v63, %v3907_v62  ;;  %v3909_v9 = vadd.f32 %v8102_v7, %v3856_v3 }
 0xda2   :  { %v6433_v17 = vpop.f32.mrf.mxu1  ;;  %v6380_v5 = vpop.f32.mrf.mxu0 }
 0xda3   :  { %4328 = vst.msk [vmem:[#allocation6 + $0x1d0] sm:$0xff] %vm463_vm1, %v4296_v1  ;;  %v4299_v8 = vadd.f32 %v6433_v17, %v3910_v6  ;;  %v3912_v12 = vadd.f32 %v6380_v5, %v8102_v7 }
 0xda4   :  { %v4251_v4 = vpop.f32.mrf.mxu1  ;;  %v3866_v14 = vpop.f32.mrf.mxu0 }
 0xda5   :  { %4331 = vst.msk [vmem:[#allocation6 + $0x1e8] sm:$0xff] %vm463_vm1, %v4299_v8  ;;  %v4298_v11 = vadd.f32 %v4251_v4, %v3909_v9  ;;  %v3911_v16 = vadd.f32 %v8102_v7, %v3866_v14 }
 0xda6   :  { %v6436_v13 = vpop.f32.mrf.mxu1 }
 0xda7   :  { %4330 = vst.msk [vmem:[#allocation6 + $0x1e0] sm:$0xff] %vm463_vm1, %v4298_v11  ;;  %v4301_v15 = vadd.f32 %v6436_v13, %v3912_v12 }
 0xda8   :  { %v4261_v19 = vpop.f32.mrf.mxu1 }
 0xda9   :  { %4333 = vst.msk [vmem:[#allocation6 + $0x1f8] sm:$0xff] %vm463_vm1, %v4301_v15  ;;  %v4300_v20 = vadd.f32 %v4261_v19, %v3911_v16 }
 0xdab   :  { %4332 = vst.msk [vmem:[#allocation6 + $0x1f0] sm:$0xff] %vm463_vm1, %v4300_v20 }
 0xdac LB: > { %v8250_v7 = vld [vmem:[%s8432_s12 + $0x18] sm:$0xff]  ;;  %v6699_v29 = vmov 0.0   ;;  %v8256_v30 = vld [vmem:[%s8432_s12 + $0x10] sm:$0xff]  ;;  %vm6700_vm4 = vmmov 0   ;;  %s6701_s11 = smov 96   ;;  %v8267_v31 = vld [vmem:[%s8432_s12 + $0x8] sm:$0xff]  ;;  %s6693_s13 = sphi %s8239_s13, %s4346_s13   ;;  %v6689_v2 = vphi %v8237_v2, %v8465_v2  }
 0xdad   : > { %6437 = vmatprep.subr.mxu0 %v6699_v29  ;;  %6445 = vmatprep.mubr.msk.f32.mxu0 %vm6700_vm4, %v6699_v29  ;;  %v4349_v32 = vld [vmem:[%s8432_s12] sm:$0xff]  ;;  %s6702_s25 = smov 64   ;;  %s5522_s29 = sshll.u32 %s6693_s13, 5 }
 0xdae   : > { %4354 = vrot.lane.b32.xlu0 %v6689_v2, %s6701_s11  ;;  %6438 = vmatpush3.msra.mxu0 %v8250_v7  ;;  %s8299_s23 = scalar_lea.vmem [#allocation6], %s5522_s29  ;;  %s4346_s13 = sadd.s32 1, %s6693_s13  }
 0xdaf   : > { %6439 = vmatprep.subr.mxu0 %v6699_v29  ;;  %6448 = vmatprep.subr.mxu1 %v6699_v29  ;;  %p4343_p1 = scmp.ge.s32.totalorder %s4346_s13, 16  }
 0xdb0   : > { %6440 = vmatpush3.msra.mxu0 %v8256_v30  ;;  %6449 = vmatpush3.msra.mxu1 %v8250_v7  ;;  %vm6704_vm5 = vmmov (%p4343_p1), 0   ;;  %s6706_s22 = smov (%p4343_p1), 96   ;;  %vm5134_vm6 = vcmask (%p4343_p1), 80896  }
 0xdb1   : > { %6441 = vmatprep.subr.mxu0 %v6699_v29  ;;  %6450 = vmatprep.subr.mxu1 %v6699_v29 }
 0xdb2   : > { %6442 = vmatpush3.msra.mxu0 %v8267_v31  ;;  %6451 = vmatpush3.msra.mxu1 %v8256_v30  ;;  %v4429_v37 = vld [vmem:[%s8299_s23] sm:$0xff]  ;;  %v5528_v57 = vld [vmem:[%s8299_s23 + $0x8] sm:$0xff]  ;;  %v5533_v3 = vld [vmem:[%s8299_s23 + $0x10] sm:$0xff] }
 0xdb3   : > { %6443 = vmatprep.subr.mxu0 %v6699_v29  ;;  %6452 = vmatprep.subr.mxu1 %v6699_v29 }
 0xdb4   : > { %6444 = vmatpush3.msra.mxu0 %v4349_v32  ;;  %6453 = vmatpush3.msra.mxu1 %v8267_v31 }
 0xdb5   : > { %6454 = vmatprep.subr.mxu1 %v6699_v29  ;;  %6456 = vmatprep.mubr.msk.f32.mxu1 %vm6700_vm4, %v6699_v29 }
 0xdb6   : > { %6455 = vmatpush3.msra.mxu1 %v4349_v32  ;;  %6459 = vmatprep.subr.mxu0 %v6699_v29 }
 0xdb7   : > { %6470 = vmatprep.subr.mxu1 %v6699_v29 }
 0xe20   : > { %v4355_v33 = vpop.permute.xlu0 %4354 }
 0xe21   : > { %6446 = vmatmul.mubr.msk.f32.vlgmr.msra.gmra.mxu0 %vm1807_vm3, %v4355_v33 }
 0xe22   : > { %6460 = vmatpush3.msra.mxu0 %v8250_v7  ;;  %6467 = vmatprep.mubr.msk.f32.mxu0 %vm6700_vm4, %v6699_v29 }
 0xe23   : > { %6461 = vmatprep.subr.mxu0 %v6699_v29 }
 0xe24   : > { %6462 = vmatpush3.msra.mxu0 %v8256_v30 }
 0xe25   : > { %6463 = vmatprep.subr.mxu0 %v6699_v29 }
 0xe26   : > { %6464 = vmatpush3.msra.mxu0 %v8267_v31 }
 0xe27   : > { %6465 = vmatprep.subr.mxu0 %v6699_v29 }
 0xe28   : > { %6466 = vmatpush3.msra.mxu0 %v4349_v32 }
 0xee1   : > { %v4424_v34 = vpop.f32.mrf.mxu0 }
 0xee2   : > { %v4425_v35 = vadd.f32 %v8109_v18, %v4424_v34  ;;  %v5538_v34 = vld [vmem:[%s8299_s23 + $0x18] sm:$0xff] }
 0xee3   : > { %v6447_v36 = vpop.f32.mrf.mxu0 }
 0xee4   : > { %4438 = vrot.lane.b32.xlu0 %v4425_v35, %s6702_s25  ;;  %v4430_v38 = vadd.f32 %v4429_v37, %v4425_v35 }
 0xee6   : > { %v5524_v39 = vmul.f32 -1.442695, %v4430_v38 }
 0xee8   : > { %6625 = vpow2.f32 %v5524_v39 }
 0xef5   : > { %v6626_v40 = vpop.eup %6625 }
 0xef6   : > { %v4434_v41 = vadd.f32 1.0, %v6626_v40 }
 0xef8   : > { %6627 = vrcp.f32 %v4434_v41 }
 0xf05   : > { %v6628_v42 = vpop.eup %6627 }
 0xf06   : > { %v4448_v48 = vsub.f32 1.0, %v6628_v42  ;;  %v4454_v50 = vmul.f32 %v6689_v2, %v6628_v42 }
 0xf56   : > { %v4439_v43 = vpop.permute.xlu0 %4438 }
 0xf57   : > { %v4441_v44 = vmul.f32 %v6628_v42, %v4439_v43 }
 0xf59   : > { %4443 = vrot.lane.b32.xlu1 %v4441_v44, %s6702_s25 }
 0xfcb   : > { %v4444_v45 = vpop.permute.xlu1 %4443 }
 0xfcc   : > { %v4446_v46 = vadd.f32 %v4444_v45, %v4429_v37 }
 0xfce   : > { %6629 = vtanh.f32 %v4446_v46 }
 0xfdb   : > { %v6630_v47 = vpop.eup %6629 }
 0xfdc   : > { %4450 = vrot.lane.b32.xlu1 %v6630_v47, %s6701_s11 }
0x104e   : > { %v4451_v49 = vpop.permute.xlu1 %4450 }
0x104f   : > { %v4453_v51 = vmul.f32 %v4451_v49, %v4448_v48 }
0x1051   : > { %v4455_v52 = vadd.f32 %v4454_v50, %v4453_v51  ;;  %v4781_v50 = vld [vmem:[%s8435_s15 + $0x18] sm:$0xff] (%p4343_p1) }
0x1052   :  { %v4777_v51 = vld [vmem:[%s8434_s14 + $0x18] sm:$0xff] (%p4343_p1) }
0x1053   : > { %4460 = vrot.lane.b32.xlu0 %v4455_v52, %s6701_s11 }
0x10c5   : > { %v4461_v53 = vpop.permute.xlu0 %4460 }
0x10c6   : > { %6457 = vmatmul.mubr.msk.f32.vlgmr.msra.gmra.mxu1 %vm1807_vm3, %v4461_v53  ;;  %v4780_v53 = vld [vmem:[%s8435_s15 + $0x10] sm:$0xff] (%p4343_p1) }
0x10c7   : > { %6471 = vmatpush3.msra.mxu1 %v8250_v7  ;;  %6478 = vmatprep.mubr.msk.f32.mxu1 %vm6700_vm4, %v6699_v29 }
0x10c8   : > { %6472 = vmatprep.subr.mxu1 %v6699_v29 }
0x10c9   : > { %6473 = vmatpush3.msra.mxu1 %v8256_v30 }
0x10ca   : > { %6474 = vmatprep.subr.mxu1 %v6699_v29 }
0x10cb   : > { %6475 = vmatpush3.msra.mxu1 %v8267_v31 }
0x10cc   : > { %6476 = vmatprep.subr.mxu1 %v6699_v29 }
0x10cd   : > { %6477 = vmatpush3.msra.mxu1 %v4349_v32 }
0x1186   : > { %v4530_v54 = vpop.f32.mrf.mxu1 }
0x1187   : > { %v4531_v55 = vadd.f32 %v8109_v18, %v4530_v54  ;;  %v4779_v54 = vld [vmem:[%s8435_s15 + $0x8] sm:$0xff] (%p4343_p1) }
0x1188   : > { %v6458_v56 = vpop.f32.mrf.mxu1 }
0x1189   : > { %4544 = vrot.lane.b32.xlu1 %v4531_v55, %s6702_s25  ;;  %v4536_v10 = vadd.f32 %v5528_v57, %v4531_v55  ;;  %v4775_v55 = vld [vmem:[%s8434_s14 + $0x8] sm:$0xff] (%p4343_p1)  ;;  %v4778_v56 = vld [vmem:[%s8435_s15] sm:$0xff] (%p4343_p1) }
0x118b   : > { %v5529_v22 = vmul.f32 -1.442695, %v4536_v10  ;;  %v4773_v10 = vld [vmem:[#allocation5 + $0x1f8] sm:$0xff] (%p4343_p1) }
0x118d   : > { %6631 = vpow2.f32 %v5529_v22  ;;  %v4772_v22 = vld [vmem:[#allocation4 + $0x1f8] sm:$0xff] (%p4343_p1) }
0x119a   : > { %v6632_v23 = vpop.eup %6631 }
0x119b   : > { %v4540_v24 = vadd.f32 1.0, %v6632_v23  ;;  %v5543_v23 = vld [vmem:[%s8437_s17] ss:$0 sm:$0xff] (%p4343_p1) }
0x119d   : > { %6633 = vrcp.f32 %v4540_v24 }
0x11aa   : > { %v6634_v25 = vpop.eup %6633 }
0x11ab   : > { %v4554_v59 = vsub.f32 1.0, %v6634_v25  ;;  %v4560_v61 = vmul.f32 %v6634_v25, %v4455_v52  ;;  %v6703_v52 = vmov (%p4343_p1), 0.0  }
0x11ac   :  { %6481 = vmatprep.subr.mxu0 (%p4343_p1), %v6703_v52  ;;  %6492 = vmatprep.subr.mxu1 (%p4343_p1), %v6703_v52 }
0x11fb   : > { %v4545_v26 = vpop.permute.xlu1 %4544 }
0x11fc   : > { %v4547_v27 = vmul.f32 %v6634_v25, %v4545_v26  ;;  %v5542_v26 = vld [vmem:[%s8436_s16] ss:$0 sm:$0xff] (%p4343_p1) }
0x11fe   : > { %4549 = vrot.lane.b32.xlu0 %v4547_v27, %s6702_s25 }
0x1270   : > { %v4550_v21 = vpop.permute.xlu0 %4549 }
0x1271   : > { %v4552_v28 = vadd.f32 %v5528_v57, %v4550_v21  ;;  %v4774_v57 = vld [vmem:[%s8434_s14] sm:$0xff] (%p4343_p1) }
0x1273   : > { %6635 = vtanh.f32 %v4552_v28 }
0x1280   : > { %v6636_v58 = vpop.eup %6635 }
0x1281   : > { %4556 = vrot.lane.b32.xlu1 %v6636_v58, %s6701_s11 }
0x12f3   : > { %v4557_v60 = vpop.permute.xlu1 %4556 }
0x12f4   : > { %v4559_v62 = vmul.f32 %v4557_v60, %v4554_v59 }
0x12f6   : > { %v4561_v63 = vadd.f32 %v4560_v61, %v4559_v62 }
0x12f8   : > { %4565 = vrot.lane.b32.xlu0 %v4561_v63, %s6701_s11 }
0x136a   : > { %v4566_v0 = vpop.permute.xlu0 %4565 }
0x136b   : > { %6468 = vmatmul.mubr.msk.f32.vlgmr.msra.gmra.mxu0 %vm1807_vm3, %v4566_v0 }
0x136c   :  { %6482 = vmatpush3.msra.mxu0 (%p4343_p1), %v4781_v50  ;;  %6489 = vmatprep.mubr.msk.f32.mxu0 (%p4343_p1), %vm6704_vm5, %v6703_v52 }
0x136d   :  { %6483 = vmatprep.subr.mxu0 (%p4343_p1), %v6703_v52 }
0x136e   :  { %6484 = vmatpush3.msra.mxu0 (%p4343_p1), %v4780_v53 }
0x136f   :  { %6485 = vmatprep.subr.mxu0 (%p4343_p1), %v6703_v52 }
0x1370   :  { %6486 = vmatpush3.msra.mxu0 (%p4343_p1), %v4779_v54 }
0x1371   :  { %6487 = vmatprep.subr.mxu0 (%p4343_p1), %v6703_v52 }
0x1372   :  { %6488 = vmatpush3.msra.mxu0 (%p4343_p1), %v4778_v56 }
0x1373   :  { %6490 = vmatmul.mubr.msk.f32.vlgmr.msra.gmra.mxu0 (%p4343_p1), %vm1807_vm3, %v4773_v10  ;;  %6503 = vmatprep.subr.mxu0 (%p4343_p1), %v6703_v52 }
0x1374   :  { %6511 = vmatprep.mubr.msk.f32.mxu0 (%p4343_p1), %vm6704_vm5, %v6703_v52 }
0x142b   : > { %v4635_v1 = vpop.f32.mrf.mxu0 }
0x142c   : > { %v4636_v6 = vadd.f32 %v8109_v18, %v4635_v1 }
0x142d   : > { %v6469_v17 = vpop.f32.mrf.mxu0 }
0x142e   : > { %4649 = vrot.lane.b32.xlu1 %v4636_v6, %s6702_s25  ;;  %v4641_v8 = vadd.f32 %v5533_v3, %v4636_v6 }
0x1430   : > { %v5534_v9 = vmul.f32 -1.442695, %v4641_v8  ;;  %v4975_v8 = vld [vmem:[%s8439_s19 + $0x18] sm:$0xff] (%p4343_p1) }
0x1431   :  { %6504 = vmatpush3.msra.mxu0 (%p4343_p1), %v4975_v8 }
0x1432   : > { %6637 = vpow2.f32 %v5534_v9  ;;  %v4970_v9 = vld [vmem:[%s8438_s18 + $0x10] sm:$0xff] (%p4343_p1)  ;;  %6505 = vmatprep.subr.mxu0 (%p4343_p1), %v6703_v52 }
0x1433   :  { %v4851_v24 = vpop.f32.mrf.mxu0 (%p4343_p1) }
0x1435   :  { %v6491_v21 = vpop.f32.mrf.mxu0 (%p4343_p1) }
0x143f   : > { %v6638_v4 = vpop.eup %6637 }
0x1440   : > { %v4645_v5 = vadd.f32 1.0, %v6638_v4  ;;  %v4974_v4 = vld [vmem:[%s8439_s19 + $0x10] sm:$0xff] (%p4343_p1) }
0x1441   :  { %6506 = vmatpush3.msra.mxu0 (%p4343_p1), %v4974_v4 }
0x1442   : > { %6639 = vrcp.f32 %v4645_v5  ;;  %v4969_v5 = vld [vmem:[%s8438_s18 + $0x8] sm:$0xff] (%p4343_p1)  ;;  %6507 = vmatprep.subr.mxu0 (%p4343_p1), %v6703_v52 }
0x144f   : > { %v6640_v11 = vpop.eup %6639 }
0x1450   : > { %v4659_v19 = vsub.f32 1.0, %v6640_v11  ;;  %v4665_v2 = vmul.f32 %v6640_v11, %v4561_v63 }
0x14a0   : > { %v4650_v12 = vpop.permute.xlu1 %4649 }
0x14a1   : > { %v4652_v13 = vmul.f32 %v6640_v11, %v4650_v12  ;;  %v4973_v11 = vld [vmem:[%s8439_s19 + $0x8] sm:$0xff] (%p4343_p1)  ;;  %v4968_v12 = vld [vmem:[%s8438_s18] sm:$0xff] (%p4343_p1) }
0x14a2   :  { %6508 = vmatpush3.msra.mxu0 (%p4343_p1), %v4973_v11 }
0x14a3   : > { %4654 = vrot.lane.b32.xlu0 %v4652_v13, %s6702_s25  ;;  %v4972_v13 = vld [vmem:[%s8439_s19] sm:$0xff] (%p4343_p1)  ;;  %6509 = vmatprep.subr.mxu0 (%p4343_p1), %v6703_v52 }
0x14a4   :  { %6510 = vmatpush3.msra.mxu0 (%p4343_p1), %v4972_v13 }
0x1515   : > { %v4655_v14 = vpop.permute.xlu0 %4654 }
0x1516   : > { %v4657_v15 = vadd.f32 %v5533_v3, %v4655_v14  ;;  %v4971_v3 = vld [vmem:[%s8438_s18 + $0x18] sm:$0xff] (%p4343_p1) }
0x1518   : > { %6641 = vtanh.f32 %v4657_v15 }
0x1525   : > { %v6642_v16 = vpop.eup %6641 }
0x1526   : > { %4661 = vrot.lane.b32.xlu1 %v6642_v16, %s6701_s11 }
0x1598   : > { %v4662_v20 = vpop.permute.xlu1 %4661 }
0x1599   : > { %v4664_v7 = vmul.f32 %v4662_v20, %v4659_v19 }
0x159b   : > { %v4666_v29 = vadd.f32 %v4665_v2, %v4664_v7 }
0x159d   : > { %4670 = vrot.lane.b32.xlu0 %v4666_v29, %s6701_s11 }
0x160f   : > { %v4671_v30 = vpop.permute.xlu0 %4670 }
0x1610   : > { %6479 = vmatmul.mubr.msk.f32.vlgmr.msra.gmra.mxu1 %vm1807_vm3, %v4671_v30 }
0x1611   :  { %6493 = vmatpush3.msra.mxu1 (%p4343_p1), %v4777_v51  ;;  %6500 = vmatprep.mubr.msk.f32.mxu1 (%p4343_p1), %vm6704_vm5, %v6703_v52 }
0x1612   :  { %6494 = vmatprep.subr.mxu1 (%p4343_p1), %v6703_v52 }
0x16d0   : > { %v4740_v31 = vpop.f32.mrf.mxu1 }
0x16d1   : > { %v4741_v32 = vadd.f32 %v8109_v18, %v4740_v31  ;;  %v4776_v18 = vld [vmem:[%s8434_s14 + $0x10] sm:$0xff] (%p4343_p1)  ;;  %s6705_s14 = smov (%p4343_p1), 64  }
0x16d2   : > { %v6480_v33 = vpop.f32.mrf.mxu1  ;;  %6495 = vmatpush3.msra.mxu1 (%p4343_p1), %v4776_v18 }
0x16d3   : > { %4754 = vrot.lane.b32.xlu1 %v4741_v32, %s6702_s25  ;;  %v4746_v35 = vadd.f32 %v5538_v34, %v4741_v32  ;;  %6496 = vmatprep.subr.mxu1 (%p4343_p1), %v6703_v52  ;;  %v5547_v33 = vld [vmem:[%s8440_s20] ss:$0 sm:$0xff] (%p4343_p1) }
0x16d4   :  { %6497 = vmatpush3.msra.mxu1 (%p4343_p1), %v4775_v55 }
0x16d5   : > { %v5539_v36 = vmul.f32 -1.442695, %v4746_v35  ;;  %6498 = vmatprep.subr.mxu1 (%p4343_p1), %v6703_v52 }
0x16d6   :  { %6499 = vmatpush3.msra.mxu1 (%p4343_p1), %v4774_v57 }
0x16d7   : > { %6643 = vpow2.f32 %v5539_v36  ;;  %6501 = vmatmul.mubr.msk.f32.vlgmr.msra.gmra.mxu1 (%p4343_p1), %vm1807_vm3, %v4772_v22  ;;  %6514 = vmatprep.subr.mxu1 (%p4343_p1), %v6703_v52 }
0x16d8   :  { %6522 = vmatprep.mubr.msk.f32.mxu1 (%p4343_p1), %vm6704_vm5, %v6703_v52  ;;  %6515 = vmatpush3.msra.mxu1 (%p4343_p1), %v4971_v3 }
0x16d9   :  { %6516 = vmatprep.subr.mxu1 (%p4343_p1), %v6703_v52 }
0x16da   :  { %6517 = vmatpush3.msra.mxu1 (%p4343_p1), %v4970_v9 }
0x16db   :  { %6518 = vmatprep.subr.mxu1 (%p4343_p1), %v6703_v52 }
0x16dc   :  { %6519 = vmatpush3.msra.mxu1 (%p4343_p1), %v4969_v5 }
0x16dd   :  { %6520 = vmatprep.subr.mxu1 (%p4343_p1), %v6703_v52 }
0x16de   :  { %6521 = vmatpush3.msra.mxu1 (%p4343_p1), %v4968_v12 }
0x16e4   : > { %v6644_v37 = vpop.eup %6643 }
0x16e5   : > { %v4750_v38 = vadd.f32 1.0, %v6644_v37 }
0x16e7   : > { %6645 = vrcp.f32 %v4750_v38 }
0x16f4   : > { %v6646_v39 = vpop.eup %6645 }
0x16f5   : > { %v4764_v45 = vsub.f32 1.0, %v6646_v39  ;;  %v4770_v47 = vmul.f32 %v6646_v39, %v4666_v29 }
0x1745   : > { %v4755_v40 = vpop.permute.xlu1 %4754 }
0x1746   : > { %v4757_v41 = vmul.f32 %v6646_v39, %v4755_v40 }
0x1748   : > { %4759 = vrot.lane.b32.xlu0 %v4757_v41, %s6702_s25 }
0x174c   :  { %4950 = vrot.lane.b32.xlu0 (%p4343_p1), %v5543_v23, %s6705_s14 }
0x1797   :  { %v4924_v25 = vpop.f32.mrf.mxu1 (%p4343_p1) }
0x1798   :  { %v4925_v27 = vadd.f32 (%p4343_p1), %v4924_v25, %v4851_v24 }
0x1799   :  { %v6502_v28 = vpop.f32.mrf.mxu1 (%p4343_p1) }
0x179a   :  { %v4935_v58 = vadd.f32 (%p4343_p1), %v5542_v26, %v4925_v27 }
0x179c   :  { %v4943_v59 = vadd.f32 (%p4343_p1), %v5543_v23, %v4935_v58 }
0x179e   :  { %v5544_v60 = vmul.f32 (%p4343_p1), -1.442695, %v4943_v59 }
0x17ba   : > { %v4760_v42 = vpop.permute.xlu0 %4759 }
0x17bb   : > { %v4762_v43 = vadd.f32 %v5538_v34, %v4760_v42 }
0x17bd   : > { %6647 = vtanh.f32 %v4762_v43 }
0x17be   :  { %6649 = vpow2.f32 (%p4343_p1), %v5544_v60  ;;  %v4951_v63 = vpop.permute.xlu0 (%p4343_p1), %4950 }
0x17ca   : > { %v6648_v44 = vpop.eup %6647 }
0x17cb   : > { %4766 = vrot.lane.b32.xlu1 %v6648_v44, %s6701_s11  ;;  %v6650_v61 = vpop.eup (%p4343_p1), %6649 }
0x17cc   :  { %v4947_v62 = vadd.f32 (%p4343_p1), 1.0, %v6650_v61 }
0x17ce   :  { %6651 = vrcp.f32 (%p4343_p1), %v4947_v62 }
0x17db   :  { %v6652_v0 = vpop.eup (%p4343_p1), %6651 }
0x17dc   :  { %v4953_v1 = vmul.f32 (%p4343_p1), %v6652_v0, %v4951_v63  ;;  %v4960_v16 = vsub.f32 (%p4343_p1), 1.0, %v6652_v0  ;;  %v4966_v20 = vmul.f32 (%p4343_p1), 0.0, %v6652_v0 }
0x17de   :  { %4955 = vrot.lane.b32.xlu0 (%p4343_p1), %v4953_v1, %s6705_s14 }
0x183d   : > { %v4767_v46 = vpop.permute.xlu1 %4766 }
0x183e   : > { %v4769_v48 = vmul.f32 %v4767_v46, %v4764_v45  ;;  %4345 = sbr.rel (!%p4343_p1) target bundleno = 3500 (0xdac), region = 149 }
0x1840   : > { %v4771_v49 = vadd.f32 %v4770_v47, %v4769_v48  }
0x1842   : > { %v8465_v2 = vmov %v4771_v49  ;;  %5052 = vrot.lane.b32.xlu0 (%p4343_p1), %v4771_v49, %s6706_s22 }
0x1850   :  { %v4956_v6 = vpop.permute.xlu0 %4955 }
0x1851   :  { %v4958_v17 = vadd.f32 %v4956_v6, %v4935_v58 }
0x1853   :  { %6653 = vtanh.f32 %v4958_v17 }
0x1860   :  { %v6654_v15 = vpop.eup %6653 }
0x1861   :  { %4962 = vrot.lane.b32.xlu1 %v6654_v15, %s6706_s22 }
0x18b4   :  { %v5053_v14 = vpop.permute.xlu0 %5052 }
0x18b5   :  { %6523 = vmatmul.mubr.msk.f32.vlgmr.msra.gmra.mxu1 %vm1807_vm3, %v5053_v14 }
0x18d3   :  { %v4963_v19 = vpop.permute.xlu1 %4962 }
0x18d4   :  { %v4965_v2 = vmul.f32 %v4963_v19, %v4960_v16 }
0x18d6   :  { %v4967_v7 = vadd.f32 %v4966_v20, %v4965_v2 }
0x18d8   :  { %4977 = vrot.lane.b32.xlu1 %v4967_v7, %s6706_s22 }
0x194a   :  { %v4978_v31 = vpop.permute.xlu1 %4977 }
0x194b   :  { %6512 = vmatmul.mubr.msk.f32.vlgmr.msra.gmra.mxu0 %vm1807_vm3, %v4978_v31 }
0x1975   :  { %v5122_v29 = vpop.f32.mrf.mxu1 }
0x1977   :  { %v6524_v30 = vpop.f32.mrf.mxu1 }
0x1a0b   :  { %v5047_v32 = vpop.f32.mrf.mxu0 }
0x1a0c   :  { %v5123_v34 = vadd.f32 %v5122_v29, %v5047_v32 }
0x1a0d   :  { %v6513_v35 = vpop.f32.mrf.mxu0 }
0x1a0e   :  { %v5133_v36 = vadd.f32 %v5547_v33, %v5123_v34 }
0x1a10   :  { %5135 = vst.msk [vmem:[%s8441_s21] sm:$0xff] %vm5134_vm6, %v5133_v36 }

</bundles_post_ra>
